<compile_context>
chip_gen: v5e
topology: v5e:2x2
jax: 0.10.0
libtpu: 0.0.40
codegen_flags: <defaults>
</compile_context>

<pallas_src>
import functools

import jax
import jax.numpy as jnp
import numpy as np
from jax.experimental import pallas as pl
from jax.experimental.pallas import tpu as pltpu

HIGHEST = jax.lax.Precision.HIGHEST  # reference only


# --------------------------------------------------------------------------
# Pallas kernels
# --------------------------------------------------------------------------
def _fused_pointwise_bn_relu_kernel(x_ref, w_ref, s_ref, b_ref, o_ref):
    """Fused 1x1x1 conv (channel matmul) + folded BN + ReLU.

    x_ref: (TM, Cin) f32   w_ref: (Cin, Cout) bf16   s_ref/b_ref: (1, Cout)
    o_ref: (TM, Cout) f32
    """
    acc = jnp.dot(x_ref[...].astype(jnp.bfloat16), w_ref[...],
                  preferred_element_type=jnp.float32)
    o_ref[...] = jnp.maximum(acc * s_ref[...] + b_ref[...], 0.0).astype(o_ref.dtype)


def conv1x1_bn_relu(x, w, scale, bias, tm=1024):
    """x: (N,T,H,W,Cin) f32, w: (Cin,Cout) f32, scale/bias: (Cout,) f32."""
    N, T, H, W, Cin = x.shape
    Cout = w.shape[1]
    M = N * T * H * W
    tm = min(tm, M)
    x2 = x.reshape(M, Cin)
    out = pl.pallas_call(
        _fused_pointwise_bn_relu_kernel,
        out_shape=jax.ShapeDtypeStruct((M, Cout), x.dtype),
        grid=(pl.cdiv(M, tm),),
        in_specs=[
            pl.BlockSpec((tm, Cin), lambda i: (i, 0)),
            pl.BlockSpec((Cin, Cout), lambda i: (0, 0)),
            pl.BlockSpec((1, Cout), lambda i: (0, 0)),
            pl.BlockSpec((1, Cout), lambda i: (0, 0)),
        ],
        out_specs=pl.BlockSpec((tm, Cout), lambda i: (i, 0)),
        compiler_params=pltpu.CompilerParams(
            dimension_semantics=("parallel",)),
    )(x2, w.astype(jnp.bfloat16), scale.reshape(1, Cout), bias.reshape(1, Cout))
    return out.reshape(N, T, H, W, Cout)


def _conv3x3x3_bn_relu_kernel(x_ref, w_ref, s_ref, b_ref, o_ref, acc_ref, *, H, W):
    """3x3x3 stride-1 'SAME' conv + folded BN + ReLU.

    Grid: (N, T, 3) with the last axis the temporal tap kt (reduction).
    x_ref:  (H+2, W+2, Cin) f32  -- padded frame t + kt of sample n
    w_ref:  (3, 3, Cin, Cout) bf16 -- the kt-th temporal slice of the kernel
    s_ref/b_ref: (1, Cout) f32
    o_ref:  (H*W, Cout) f32      -- output frame t (written at kt == 2)
    acc_ref: (H*W, Cout) f32 VMEM accumulator
    """
    kt = pl.program_id(2)
    Cin = x_ref.shape[-1]

    @pl.when(kt == 0)
    def _():
        acc_ref[...] = jnp.zeros_like(acc_ref)

    acc = acc_ref[...]
    for kh in range(3):
        for kw in range(3):
            slab = x_ref[pl.ds(kh, H), pl.ds(kw, W), :]          # (H, W, Cin)
            slab = slab.reshape(H * W, Cin).astype(jnp.bfloat16)
            acc = acc + jnp.dot(slab, w_ref[kh, kw],
                                preferred_element_type=jnp.float32)
    acc_ref[...] = acc

    @pl.when(kt == 2)
    def _():
        y = jnp.maximum(acc * s_ref[...] + b_ref[...], 0.0)
        o_ref[...] = y.astype(o_ref.dtype)


def conv3x3x3_bn_relu(x, w, scale, bias):
    """x: (N,T,H,W,Cin) f32, w: (3,3,3,Cin,Cout) f32, scale/bias: (Cout,)."""
    N, T, H, W, Cin = x.shape
    Cout = w.shape[-1]
    # TF-"SAME" padding for kernel 3, stride 1 -> (1, 1) on each spatial axis.
    xp = jnp.pad(x, ((0, 0), (1, 1), (1, 1), (1, 1), (0, 0)))
    HW = H * W
    out = pl.pallas_call(
        functools.partial(_conv3x3x3_bn_relu_kernel, H=H, W=W),
        out_shape=jax.ShapeDtypeStruct((N, T, HW, Cout), x.dtype),
        grid=(N, T, 3),
        in_specs=[
            pl.BlockSpec((None, None, H + 2, W + 2, Cin),
                         lambda n, t, kt: (n, t + kt, 0, 0, 0)),
            pl.BlockSpec((None, 3, 3, Cin, Cout),
                         lambda n, t, kt: (kt, 0, 0, 0, 0)),
            pl.BlockSpec((1, Cout), lambda n, t, kt: (0, 0)),
            pl.BlockSpec((1, Cout), lambda n, t, kt: (0, 0)),
        ],
        out_specs=pl.BlockSpec((None, None, HW, Cout),
                               lambda n, t, kt: (n, t, 0, 0)),
        scratch_shapes=[pltpu.VMEM((HW, Cout), jnp.float32)],
        compiler_params=pltpu.CompilerParams(
            dimension_semantics=("parallel", "parallel", "arbitrary")),
    )(xp, w.astype(jnp.bfloat16), scale.reshape(1, Cout), bias.reshape(1, Cout))
    return out.reshape(N, T, H, W, Cout)


def _maxpool3_conv1x1_bn_relu_kernel(x_ref, w_ref, s_ref, b_ref, o_ref,
                                     pool_ref, *, H, W):
    """Separable 3x3x3 max-pool (on (-999)-padded input) fused with a
    1x1x1 conv + folded BN + ReLU.

    Grid: (N, T, 3), kt reduction.
    x_ref: (H+2, W+2, Cin) f32  w_ref: (Cin, Cout) bf16
    o_ref: (H*W, Cout) f32      pool_ref: (H, W, Cin) f32 running max
    """
    kt = pl.program_id(2)
    Cin = x_ref.shape[-1]

    xt = x_ref[...]                                              # (H+2, W+2, C)
    # Separable spatial max: W window then H window (2 + 2 max ops/elem).
    mw = jnp.maximum(jnp.maximum(xt[:, 0:W, :], xt[:, 1:W + 1, :]),
                     xt[:, 2:W + 2, :])                          # (H+2, W, C)
    mhw = jnp.maximum(jnp.maximum(mw[0:H], mw[1:H + 1]), mw[2:H + 2])  # (H,W,C)

    @pl.when(kt == 0)
    def _():
        pool_ref[...] = mhw

    @pl.when(kt != 0)
    def _():
        pool_ref[...] = jnp.maximum(pool_ref[...], mhw)

    @pl.when(kt == 2)
    def _():
        pooled = pool_ref[...].reshape(H * W, Cin).astype(jnp.bfloat16)
        acc = jnp.dot(pooled, w_ref[...], preferred_element_type=jnp.float32)
        o_ref[...] = jnp.maximum(acc * s_ref[...] + b_ref[...],
                                 0.0).astype(o_ref.dtype)


def maxpool3_conv1x1_bn_relu(x, w, scale, bias, pad_value=-999.0):
    """x: (N,T,H,W,Cin) f32, w: (Cin,Cout), scale/bias: (Cout,).

    Note: pad value -999 matches the PyTorch reference (not -inf); inputs
    below -999 would clamp border results.
    """
    N, T, H, W, Cin = x.shape
    Cout = w.shape[1]
    xp = jnp.pad(x, ((0, 0), (1, 1), (1, 1), (1, 1), (0, 0)),
                 constant_values=pad_value)
    HW = H * W
    out = pl.pallas_call(
        functools.partial(_maxpool3_conv1x1_bn_relu_kernel, H=H, W=W),
        out_shape=jax.ShapeDtypeStruct((N, T, HW, Cout), x.dtype),
        grid=(N, T, 3),
        in_specs=[
            pl.BlockSpec((None, None, H + 2, W + 2, Cin),
                         lambda n, t, kt: (n, t + kt, 0, 0, 0)),
            pl.BlockSpec((Cin, Cout), lambda n, t, kt: (0, 0)),
            pl.BlockSpec((1, Cout), lambda n, t, kt: (0, 0)),
            pl.BlockSpec((1, Cout), lambda n, t, kt: (0, 0)),
        ],
        out_specs=pl.BlockSpec((None, None, HW, Cout),
                               lambda n, t, kt: (n, t, 0, 0)),
        scratch_shapes=[pltpu.VMEM((H, W, Cin), jnp.float32)],
        compiler_params=pltpu.CompilerParams(
            dimension_semantics=("parallel", "parallel", "arbitrary")),
    )(xp, w.astype(jnp.bfloat16), scale.reshape(1, Cout), bias.reshape(1, Cout))
    return out.reshape(N, T, H, W, Cout)


# --------------------------------------------------------------------------
# Parameter setup (deterministic, synthetic) and block forward (glue)
# --------------------------------------------------------------------------
def init_unit3d_params(key, cin, cout, ksize):
    """Conv weight (DHWIO) + BN folded into per-channel (scale, bias)."""
    kw_key, g_key, b_key, m_key, v_key = jax.random.split(key, 5)
    kt, kh, kw = ksize
    fan_in = kt * kh * kw * cin
    w = jax.random.normal(kw_key, (kt, kh, kw, cin, cout),
                          jnp.float32) / np.sqrt(fan_in)
    gamma = jax.random.uniform(g_key, (cout,), jnp.float32, 0.8, 1.2)
    beta = 0.1 * jax.random.normal(b_key, (cout,), jnp.float32)
    running_mean = 0.1 * jax.random.normal(m_key, (cout,), jnp.float32)
    running_var = jax.random.uniform(v_key, (cout,), jnp.float32, 0.5, 1.5)
    eps = 1e-5  # BatchNorm3d default
    scale = gamma / jnp.sqrt(running_var + eps)
    bias = beta - running_mean * scale
    return w, scale, bias


def inception_block(x, p, endpoint=False):
    """Pallas InceptionBlock forward.  x: (N,T,H,W,Cin) f32."""
    w0, s0, bb0 = p["b0_0a_1x1"]
    w1, s1, bb1 = p["b1_0a_1x1"]
    w2, s2, bb2 = p["b2_0a_1x1"]
    c0 = w0.shape[-1]
    c1 = w1.shape[-1]
    c3 = w2.shape[-1]

    # Fused 1x1 stage for the three branches that read x directly:
    # x is read from HBM once, weights concatenated along Cout.
    wf = jnp.concatenate([w0[0, 0, 0], w1[0, 0, 0], w2[0, 0, 0]], axis=1)
    sf = jnp.concatenate([s0, s1, s2], axis=0)
    bf = jnp.concatenate([bb0, bb1, bb2], axis=0)
    fused = conv1x1_bn_relu(x, wf, sf, bf)
    branch0 = fused[..., :c0]
    b1a = fused[..., c0:c0 + c1]
    b2a = fused[..., c0 + c1:c0 + c1 + c3]

    w, s, b = p["b1_0b_3x3"]
    branch1 = conv3x3x3_bn_relu(b1a, w, s, b)

    w, s, b = p["b2_0b_3x3"]
    branch2 = conv3x3x3_bn_relu(b2a, w, s, b)

    w, s, b = p["b3_0b_1x1"]
    branch3 = maxpool3_conv1x1_bn_relu(x, w[0, 0, 0], s, b, pad_value=-999.0)

    out = jnp.concatenate([branch0, branch1, branch2, branch3], axis=-1)
    if endpoint:
        return out, branch3
    return out


# --------------------------------------------------------------------------
# Pure-JAX reference (for verification only)
# --------------------------------------------------------------------------
def _ref_unit3d(x, w, scale, bias):
    if w.shape[0] > 1:  # 3x3x3 -> SAME pad with zeros
        x = jnp.pad(x, ((0, 0), (1, 1), (1, 1), (1, 1), (0, 0)))
    y = jax.lax.conv_general_dilated(
        x, w, window_strides=(1, 1, 1), padding="VALID",
        dimension_numbers=("NDHWC", "DHWIO", "NDHWC"), precision=HIGHEST)
    return jnp.maximum(y * scale + bias, 0.0)


def _ref_inception(x, p):
    b0 = _ref_unit3d(x, *p["b0_0a_1x1"])
    b1 = _ref_unit3d(x, *p["b1_0a_1x1"])
    b1 = _ref_unit3d(b1, *p["b1_0b_3x3"])
    b2 = _ref_unit3d(x, *p["b2_0a_1x1"])
    b2 = _ref_unit3d(b2, *p["b2_0b_3x3"])
    xp = jnp.pad(x, ((0, 0), (1, 1), (1, 1), (1, 1), (0, 0)),
                 constant_values=-999.0)
    b3 = jax.lax.reduce_window(xp, -jnp.inf, jax.lax.max,
                               (1, 3, 3, 3, 1), (1, 1, 1, 1, 1), "VALID")
    b3 = _ref_unit3d(b3, *p["b3_0b_1x1"])
    return jnp.concatenate([b0, b1, b2, b3], axis=-1)


# --------------------------------------------------------------------------
if __name__ == "__main__":
    key = jax.random.PRNGKey(0)
    N, T, H, W, Cin = 2, 4, 8, 8, 16
    branch_channels = (8, 8, 16, 4, 8, 8)

    keys = jax.random.split(key, 7)
    x = jax.random.normal(keys[0], (N, T, H, W, Cin), jnp.float32)

    params = {
        "b0_0a_1x1": init_unit3d_params(keys[1], Cin, branch_channels[0], (1, 1, 1)),
        "b1_0a_1x1": init_unit3d_params(keys[2], Cin, branch_channels[1], (1, 1, 1)),
        "b1_0b_3x3": init_unit3d_params(keys[3], branch_channels[1],
                                        branch_channels[2], (3, 3, 3)),
        "b2_0a_1x1": init_unit3d_params(keys[4], Cin, branch_channels[3], (1, 1, 1)),
        "b2_0b_3x3": init_unit3d_params(keys[5], branch_channels[3],
                                        branch_channels[4], (3, 3, 3)),
        "b3_0b_1x1": init_unit3d_params(keys[6], Cin, branch_channels[5], (1, 1, 1)),
    }

    fwd = jax.jit(functools.partial(inception_block, endpoint=False))
    out = jax.block_until_ready(fwd(x, params))

    expected_c = (branch_channels[0] + branch_channels[2]
                  + branch_channels[4] + branch_channels[5])
    assert out.shape == (N, T, H, W, expected_c), out.shape

    ref = _ref_inception(x, params)
    # bf16 MXU operands with f32 accumulation -> slightly looser tolerance.
    np.testing.assert_allclose(np.asarray(out), np.asarray(ref),
                               rtol=3e-2, atol=3e-2)

    print("KERNEL_OK")
</pallas_src>

<mosaic_0001>
module attributes {stable_mosaic.version = 11 : i64} {
  func.func @_fused_pointwise_bn_relu_kernel(%arg0: i32, %arg1: memref<512x16xf32, #tpu.memory_space<vmem>>, %arg2: memref<16x20xbf16, #tpu.memory_space<vmem>>, %arg3: memref<1x20xf32, #tpu.memory_space<vmem>>, %arg4: memref<1x20xf32, #tpu.memory_space<vmem>>, %arg5: memref<512x20xf32, #tpu.memory_space<vmem>>) attributes {dimension_semantics = [#tpu.dimension_semantics<parallel>], iteration_bounds = array<i64: 1>, scalar_prefetch = 0 : i64, scratch_operands = 0 : i64, tpu.core_type = #tpu.core_type<tc>, window_params = [{transform_indices = @transform_0, window_bounds = array<i64: 512, 16>}, {pipeline_mode = #tpu.pipeline_mode<synchronous>, transform_indices = @transform_1, window_bounds = array<i64: 16, 20>}, {pipeline_mode = #tpu.pipeline_mode<synchronous>, transform_indices = @transform_2, window_bounds = array<i64: 1, 20>}, {pipeline_mode = #tpu.pipeline_mode<synchronous>, transform_indices = @transform_3, window_bounds = array<i64: 1, 20>}, {transform_indices = @transform_4, window_bounds = array<i64: 512, 20>}]} {
    %c0 = arith.constant 0 : index
    %c0_0 = arith.constant 0 : index
    %0 = vector.load %arg1[%c0, %c0_0] : memref<512x16xf32, #tpu.memory_space<vmem>>, vector<512x16xf32>
    %1 = arith.truncf %0 : vector<512x16xf32> to vector<512x16xbf16>
    %c0_1 = arith.constant 0 : index
    %c0_2 = arith.constant 0 : index
    %2 = vector.load %arg2[%c0_1, %c0_2] : memref<16x20xbf16, #tpu.memory_space<vmem>>, vector<16x20xbf16>
    %cst = arith.constant dense<0.000000e+00> : vector<512x20xf32>
    %3 = tpu.matmul %1, %2, %cst {dimension_numbers = #tpu.dot_dimension_numbers<[1], [0], [0], [1], [0, 0, 1, 1], [], []>} : vector<512x16xbf16>, vector<16x20xbf16>, vector<512x20xf32> -> vector<512x20xf32>
    %c0_3 = arith.constant 0 : index
    %c0_4 = arith.constant 0 : index
    %4 = vector.load %arg3[%c0_3, %c0_4] : memref<1x20xf32, #tpu.memory_space<vmem>>, vector<1x20xf32>
    %5 = vector.broadcast %4 : vector<1x20xf32> to vector<512x20xf32>
    %6 = arith.mulf %3, %5 : vector<512x20xf32>
    %c0_5 = arith.constant 0 : index
    %c0_6 = arith.constant 0 : index
    %7 = vector.load %arg4[%c0_5, %c0_6] : memref<1x20xf32, #tpu.memory_space<vmem>>, vector<1x20xf32>
    %8 = vector.broadcast %7 : vector<1x20xf32> to vector<512x20xf32>
    %9 = arith.addf %6, %8 : vector<512x20xf32>
    %cst_7 = arith.constant 0.000000e+00 : f32
    %10 = vector.broadcast %cst_7 : f32 to vector<512x20xf32>
    %11 = arith.maximumf %9, %10 : vector<512x20xf32>
    %c0_8 = arith.constant 0 : index
    %c0_9 = arith.constant 0 : index
    %12 = vector.load %arg5[%c0_8, %c0_9] : memref<512x20xf32, #tpu.memory_space<vmem>>, vector<512x20xf32>
    tpu.vector_store %arg5[%c0_8, %c0_9], %11 {strides = array<i32>} : memref<512x20xf32, #tpu.memory_space<vmem>>, vector<512x20xf32>,
    return
  }
  func.func @transform_0(%arg0: i32) -> (i32, i32) {
    %c0_i32 = arith.constant 0 : i32
    %c0_i32_0 = arith.constant 0 : i32
    return %arg0, %c0_i32 : i32, i32
  }
  func.func @transform_1(%arg0: i32) -> (i32, i32) {
    %c0_i32 = arith.constant 0 : i32
    %c0_i32_0 = arith.constant 0 : i32
    %c0_i32_1 = arith.constant 0 : i32
    return %c0_i32, %c0_i32_0 : i32, i32
  }
  func.func @transform_2(%arg0: i32) -> (i32, i32) {
    %c0_i32 = arith.constant 0 : i32
    %c0_i32_0 = arith.constant 0 : i32
    %c0_i32_1 = arith.constant 0 : i32
    return %c0_i32, %c0_i32_0 : i32, i32
  }
  func.func @transform_3(%arg0: i32) -> (i32, i32) {
    %c0_i32 = arith.constant 0 : i32
    %c0_i32_0 = arith.constant 0 : i32
    %c0_i32_1 = arith.constant 0 : i32
    return %c0_i32, %c0_i32_0 : i32, i32
  }
  func.func @transform_4(%arg0: i32) -> (i32, i32) {
    %c0_i32 = arith.constant 0 : i32
    %c0_i32_0 = arith.constant 0 : i32
    return %arg0, %c0_i32 : i32, i32
  }
}

module attributes {stable_mosaic.version = 11 : i64} {
  func.func @_conv3x3x3_bn_relu_kernel(%arg0: i32, %arg1: i32, %arg2: i32, %arg3: memref<1x1x10x10x4xf32, #tpu.memory_space<vmem>>, %arg4: memref<1x3x3x4x8xbf16, #tpu.memory_space<vmem>>, %arg5: memref<1x8xf32, #tpu.memory_space<vmem>>, %arg6: memref<1x8xf32, #tpu.memory_space<vmem>>, %arg7: memref<1x1x64x8xf32, #tpu.memory_space<vmem>>, %arg8: memref<64x8xf32, #tpu.memory_space<vmem>>) attributes {dimension_semantics = [#tpu.dimension_semantics<parallel>, #tpu.dimension_semantics<parallel>, #tpu.dimension_semantics<arbitrary>], iteration_bounds = array<i64: 2, 4, 3>, scalar_prefetch = 0 : i64, scratch_operands = 1 : i64, tpu.core_type = #tpu.core_type<tc>, window_params = [{transform_indices = @transform_0, window_bounds = array<i64: 1, 1, 10, 10, 4>}, {transform_indices = @transform_1, window_bounds = array<i64: 1, 3, 3, 4, 8>}, {pipeline_mode = #tpu.pipeline_mode<synchronous>, transform_indices = @transform_2, window_bounds = array<i64: 1, 8>}, {pipeline_mode = #tpu.pipeline_mode<synchronous>, transform_indices = @transform_3, window_bounds = array<i64: 1, 8>}, {transform_indices = @transform_4, window_bounds = array<i64: 1, 1, 64, 8>}]} {
    %c0_i32 = arith.constant 0 : i32
    %0 = arith.cmpi eq, %arg2, %c0_i32 : i32
    %1 = arith.extui %0 : i1 to i32
    %c0_i32_0 = arith.constant 0 : i32
    %2 = arith.cmpi ne, %1, %c0_i32_0 : i32
    scf.if %2 {
      %cst_101 = arith.constant 0.000000e+00 : f32
      %80 = vector.broadcast %cst_101 : f32 to vector<64x8xf32>
      %c0_102 = arith.constant 0 : index
      %c0_103 = arith.constant 0 : index
      %81 = vector.load %arg8[%c0_102, %c0_103] : memref<64x8xf32, #tpu.memory_space<vmem>>, vector<64x8xf32>
      tpu.vector_store %arg8[%c0_102, %c0_103], %80 {strides = array<i32>} : memref<64x8xf32, #tpu.memory_space<vmem>>, vector<64x8xf32>,
    } else {
    }
    %c0 = arith.constant 0 : index
    %c0_1 = arith.constant 0 : index
    %3 = vector.load %arg8[%c0, %c0_1] : memref<64x8xf32, #tpu.memory_space<vmem>>, vector<64x8xf32>
    %c0_2 = arith.constant 0 : index
    %c0_3 = arith.constant 0 : index
    %c0_4 = arith.constant 0 : index
    %c0_5 = arith.constant 0 : index
    %c0_6 = arith.constant 0 : index
    %4 = vector.load %arg3[%c0_2, %c0_3, %c0_4, %c0_5, %c0_6] : memref<1x1x10x10x4xf32, #tpu.memory_space<vmem>>, vector<1x1x8x8x4xf32>
    %5 = vector.shape_cast %4 : vector<1x1x8x8x4xf32> to vector<8x8x4xf32>
    %6 = vector.shape_cast %5 : vector<8x8x4xf32> to vector<64x4xf32>
    %7 = arith.truncf %6 : vector<64x4xf32> to vector<64x4xbf16>
    %c0_7 = arith.constant 0 : index
    %c0_8 = arith.constant 0 : index
    %c0_9 = arith.constant 0 : index
    %c0_10 = arith.constant 0 : index
    %c0_11 = arith.constant 0 : index
    %8 = vector.load %arg4[%c0_7, %c0_8, %c0_9, %c0_10, %c0_11] : memref<1x3x3x4x8xbf16, #tpu.memory_space<vmem>>, vector<1x1x1x4x8xbf16>
    %9 = vector.shape_cast %8 : vector<1x1x1x4x8xbf16> to vector<4x8xbf16>
    %cst = arith.constant dense<0.000000e+00> : vector<64x8xf32>
    %10 = tpu.matmul %7, %9, %cst {dimension_numbers = #tpu.dot_dimension_numbers<[1], [0], [0], [1], [0, 0, 1, 1], [], []>} : vector<64x4xbf16>, vector<4x8xbf16>, vector<64x8xf32> -> vector<64x8xf32>
    %11 = arith.addf %3, %10 : vector<64x8xf32>
    %c0_12 = arith.constant 0 : index
    %c0_13 = arith.constant 0 : index
    %c0_14 = arith.constant 0 : index
    %c1 = arith.constant 1 : index
    %c0_15 = arith.constant 0 : index
    %12 = vector.load %arg3[%c0_12, %c0_13, %c0_14, %c1, %c0_15] : memref<1x1x10x10x4xf32, #tpu.memory_space<vmem>>, vector<1x1x8x8x4xf32>
    %13 = vector.shape_cast %12 : vector<1x1x8x8x4xf32> to vector<8x8x4xf32>
    %14 = vector.shape_cast %13 : vector<8x8x4xf32> to vector<64x4xf32>
    %15 = arith.truncf %14 : vector<64x4xf32> to vector<64x4xbf16>
    %c0_16 = arith.constant 0 : index
    %c0_17 = arith.constant 0 : index
    %c1_18 = arith.constant 1 : index
    %c0_19 = arith.constant 0 : index
    %c0_20 = arith.constant 0 : index
    %16 = vector.load %arg4[%c0_16, %c0_17, %c1_18, %c0_19, %c0_20] : memref<1x3x3x4x8xbf16, #tpu.memory_space<vmem>>, vector<1x1x1x4x8xbf16>
    %17 = vector.shape_cast %16 : vector<1x1x1x4x8xbf16> to vector<4x8xbf16>
    %cst_21 = arith.constant dense<0.000000e+00> : vector<64x8xf32>
    %18 = tpu.matmul %15, %17, %cst_21 {dimension_numbers = #tpu.dot_dimension_numbers<[1], [0], [0], [1], [0, 0, 1, 1], [], []>} : vector<64x4xbf16>, vector<4x8xbf16>, vector<64x8xf32> -> vector<64x8xf32>
    %19 = arith.addf %11, %18 : vector<64x8xf32>
    %c0_22 = arith.constant 0 : index
    %c0_23 = arith.constant 0 : index
    %c0_24 = arith.constant 0 : index
    %c2 = arith.constant 2 : index
    %c0_25 = arith.constant 0 : index
    %20 = vector.load %arg3[%c0_22, %c0_23, %c0_24, %c2, %c0_25] : memref<1x1x10x10x4xf32, #tpu.memory_space<vmem>>, vector<1x1x8x8x4xf32>
    %21 = vector.shape_cast %20 : vector<1x1x8x8x4xf32> to vector<8x8x4xf32>
    %22 = vector.shape_cast %21 : vector<8x8x4xf32> to vector<64x4xf32>
    %23 = arith.truncf %22 : vector<64x4xf32> to vector<64x4xbf16>
    %c0_26 = arith.constant 0 : index
    %c0_27 = arith.constant 0 : index
    %c2_28 = arith.constant 2 : index
    %c0_29 = arith.constant 0 : index
    %c0_30 = arith.constant 0 : index
    %24 = vector.load %arg4[%c0_26, %c0_27, %c2_28, %c0_29, %c0_30] : memref<1x3x3x4x8xbf16, #tpu.memory_space<vmem>>, vector<1x1x1x4x8xbf16>
    %25 = vector.shape_cast %24 : vector<1x1x1x4x8xbf16> to vector<4x8xbf16>
    %cst_31 = arith.constant dense<0.000000e+00> : vector<64x8xf32>
    %26 = tpu.matmul %23, %25, %cst_31 {dimension_numbers = #tpu.dot_dimension_numbers<[1], [0], [0], [1], [0, 0, 1, 1], [], []>} : vector<64x4xbf16>, vector<4x8xbf16>, vector<64x8xf32> -> vector<64x8xf32>
    %27 = arith.addf %19, %26 : vector<64x8xf32>
    %c0_32 = arith.constant 0 : index
    %c0_33 = arith.constant 0 : index
    %c1_34 = arith.constant 1 : index
    %c0_35 = arith.constant 0 : index
    %c0_36 = arith.constant 0 : index
    %28 = vector.load %arg3[%c0_32, %c0_33, %c1_34, %c0_35, %c0_36] : memref<1x1x10x10x4xf32, #tpu.memory_space<vmem>>, vector<1x1x8x8x4xf32>
    %29 = vector.shape_cast %28 : vector<1x1x8x8x4xf32> to vector<8x8x4xf32>
    %30 = vector.shape_cast %29 : vector<8x8x4xf32> to vector<64x4xf32>
    %31 = arith.truncf %30 : vector<64x4xf32> to vector<64x4xbf16>
    %c0_37 = arith.constant 0 : index
    %c1_38 = arith.constant 1 : index
    %c0_39 = arith.constant 0 : index
    %c0_40 = arith.constant 0 : index
    %c0_41 = arith.constant 0 : index
    %32 = vector.load %arg4[%c0_37, %c1_38, %c0_39, %c0_40, %c0_41] : memref<1x3x3x4x8xbf16, #tpu.memory_space<vmem>>, vector<1x1x1x4x8xbf16>
    %33 = vector.shape_cast %32 : vector<1x1x1x4x8xbf16> to vector<4x8xbf16>
    %cst_42 = arith.constant dense<0.000000e+00> : vector<64x8xf32>
    %34 = tpu.matmul %31, %33, %cst_42 {dimension_numbers = #tpu.dot_dimension_numbers<[1], [0], [0], [1], [0, 0, 1, 1], [], []>} : vector<64x4xbf16>, vector<4x8xbf16>, vector<64x8xf32> -> vector<64x8xf32>
    %35 = arith.addf %27, %34 : vector<64x8xf32>
    %c0_43 = arith.constant 0 : index
    %c0_44 = arith.constant 0 : index
    %c1_45 = arith.constant 1 : index
    %c1_46 = arith.constant 1 : index
    %c0_47 = arith.constant 0 : index
    %36 = vector.load %arg3[%c0_43, %c0_44, %c1_45, %c1_46, %c0_47] : memref<1x1x10x10x4xf32, #tpu.memory_space<vmem>>, vector<1x1x8x8x4xf32>
    %37 = vector.shape_cast %36 : vector<1x1x8x8x4xf32> to vector<8x8x4xf32>
    %38 = vector.shape_cast %37 : vector<8x8x4xf32> to vector<64x4xf32>
    %39 = arith.truncf %38 : vector<64x4xf32> to vector<64x4xbf16>
    %c0_48 = arith.constant 0 : index
    %c1_49 = arith.constant 1 : index
    %c1_50 = arith.constant 1 : index
    %c0_51 = arith.constant 0 : index
    %c0_52 = arith.constant 0 : index
    %40 = vector.load %arg4[%c0_48, %c1_49, %c1_50, %c0_51, %c0_52] : memref<1x3x3x4x8xbf16, #tpu.memory_space<vmem>>, vector<1x1x1x4x8xbf16>
    %41 = vector.shape_cast %40 : vector<1x1x1x4x8xbf16> to vector<4x8xbf16>
    %cst_53 = arith.constant dense<0.000000e+00> : vector<64x8xf32>
    %42 = tpu.matmul %39, %41, %cst_53 {dimension_numbers = #tpu.dot_dimension_numbers<[1], [0], [0], [1], [0, 0, 1, 1], [], []>} : vector<64x4xbf16>, vector<4x8xbf16>, vector<64x8xf32> -> vector<64x8xf32>
    %43 = arith.addf %35, %42 : vector<64x8xf32>
    %c0_54 = arith.constant 0 : index
    %c0_55 = arith.constant 0 : index
    %c1_56 = arith.constant 1 : index
    %c2_57 = arith.constant 2 : index
    %c0_58 = arith.constant 0 : index
    %44 = vector.load %arg3[%c0_54, %c0_55, %c1_56, %c2_57, %c0_58] : memref<1x1x10x10x4xf32, #tpu.memory_space<vmem>>, vector<1x1x8x8x4xf32>
    %45 = vector.shape_cast %44 : vector<1x1x8x8x4xf32> to vector<8x8x4xf32>
    %46 = vector.shape_cast %45 : vector<8x8x4xf32> to vector<64x4xf32>
    %47 = arith.truncf %46 : vector<64x4xf32> to vector<64x4xbf16>
    %c0_59 = arith.constant 0 : index
    %c1_60 = arith.constant 1 : index
    %c2_61 = arith.constant 2 : index
    %c0_62 = arith.constant 0 : index
    %c0_63 = arith.constant 0 : index
    %48 = vector.load %arg4[%c0_59, %c1_60, %c2_61, %c0_62, %c0_63] : memref<1x3x3x4x8xbf16, #tpu.memory_space<vmem>>, vector<1x1x1x4x8xbf16>
    %49 = vector.shape_cast %48 : vector<1x1x1x4x8xbf16> to vector<4x8xbf16>
    %cst_64 = arith.constant dense<0.000000e+00> : vector<64x8xf32>
    %50 = tpu.matmul %47, %49, %cst_64 {dimension_numbers = #tpu.dot_dimension_numbers<[1], [0], [0], [1], [0, 0, 1, 1], [], []>} : vector<64x4xbf16>, vector<4x8xbf16>, vector<64x8xf32> -> vector<64x8xf32>
    %51 = arith.addf %43, %50 : vector<64x8xf32>
    %c0_65 = arith.constant 0 : index
    %c0_66 = arith.constant 0 : index
    %c2_67 = arith.constant 2 : index
    %c0_68 = arith.constant 0 : index
    %c0_69 = arith.constant 0 : index
    %52 = vector.load %arg3[%c0_65, %c0_66, %c2_67, %c0_68, %c0_69] : memref<1x1x10x10x4xf32, #tpu.memory_space<vmem>>, vector<1x1x8x8x4xf32>
    %53 = vector.shape_cast %52 : vector<1x1x8x8x4xf32> to vector<8x8x4xf32>
    %54 = vector.shape_cast %53 : vector<8x8x4xf32> to vector<64x4xf32>
    %55 = arith.truncf %54 : vector<64x4xf32> to vector<64x4xbf16>
    %c0_70 = arith.constant 0 : index
    %c2_71 = arith.constant 2 : index
    %c0_72 = arith.constant 0 : index
    %c0_73 = arith.constant 0 : index
    %c0_74 = arith.constant 0 : index
    %56 = vector.load %arg4[%c0_70, %c2_71, %c0_72, %c0_73, %c0_74] : memref<1x3x3x4x8xbf16, #tpu.memory_space<vmem>>, vector<1x1x1x4x8xbf16>
    %57 = vector.shape_cast %56 : vector<1x1x1x4x8xbf16> to vector<4x8xbf16>
    %cst_75 = arith.constant dense<0.000000e+00> : vector<64x8xf32>
    %58 = tpu.matmul %55, %57, %cst_75 {dimension_numbers = #tpu.dot_dimension_numbers<[1], [0], [0], [1], [0, 0, 1, 1], [], []>} : vector<64x4xbf16>, vector<4x8xbf16>, vector<64x8xf32> -> vector<64x8xf32>
    %59 = arith.addf %51, %58 : vector<64x8xf32>
    %c0_76 = arith.constant 0 : index
    %c0_77 = arith.constant 0 : index
    %c2_78 = arith.constant 2 : index
    %c1_79 = arith.constant 1 : index
    %c0_80 = arith.constant 0 : index
    %60 = vector.load %arg3[%c0_76, %c0_77, %c2_78, %c1_79, %c0_80] : memref<1x1x10x10x4xf32, #tpu.memory_space<vmem>>, vector<1x1x8x8x4xf32>
    %61 = vector.shape_cast %60 : vector<1x1x8x8x4xf32> to vector<8x8x4xf32>
    %62 = vector.shape_cast %61 : vector<8x8x4xf32> to vector<64x4xf32>
    %63 = arith.truncf %62 : vector<64x4xf32> to vector<64x4xbf16>
    %c0_81 = arith.constant 0 : index
    %c2_82 = arith.constant 2 : index
    %c1_83 = arith.constant 1 : index
    %c0_84 = arith.constant 0 : index
    %c0_85 = arith.constant 0 : index
    %64 = vector.load %arg4[%c0_81, %c2_82, %c1_83, %c0_84, %c0_85] : memref<1x3x3x4x8xbf16, #tpu.memory_space<vmem>>, vector<1x1x1x4x8xbf16>
    %65 = vector.shape_cast %64 : vector<1x1x1x4x8xbf16> to vector<4x8xbf16>
    %cst_86 = arith.constant dense<0.000000e+00> : vector<64x8xf32>
    %66 = tpu.matmul %63, %65, %cst_86 {dimension_numbers = #tpu.dot_dimension_numbers<[1], [0], [0], [1], [0, 0, 1, 1], [], []>} : vector<64x4xbf16>, vector<4x8xbf16>, vector<64x8xf32> -> vector<64x8xf32>
    %67 = arith.addf %59, %66 : vector<64x8xf32>
    %c0_87 = arith.constant 0 : index
    %c0_88 = arith.constant 0 : index
    %c2_89 = arith.constant 2 : index
    %c2_90 = arith.constant 2 : index
    %c0_91 = arith.constant 0 : index
    %68 = vector.load %arg3[%c0_87, %c0_88, %c2_89, %c2_90, %c0_91] : memref<1x1x10x10x4xf32, #tpu.memory_space<vmem>>, vector<1x1x8x8x4xf32>
    %69 = vector.shape_cast %68 : vector<1x1x8x8x4xf32> to vector<8x8x4xf32>
    %70 = vector.shape_cast %69 : vector<8x8x4xf32> to vector<64x4xf32>
    %71 = arith.truncf %70 : vector<64x4xf32> to vector<64x4xbf16>
    %c0_92 = arith.constant 0 : index
    %c2_93 = arith.constant 2 : index
    %c2_94 = arith.constant 2 : index
    %c0_95 = arith.constant 0 : index
    %c0_96 = arith.constant 0 : index
    %72 = vector.load %arg4[%c0_92, %c2_93, %c2_94, %c0_95, %c0_96] : memref<1x3x3x4x8xbf16, #tpu.memory_space<vmem>>, vector<1x1x1x4x8xbf16>
    %73 = vector.shape_cast %72 : vector<1x1x1x4x8xbf16> to vector<4x8xbf16>
    %cst_97 = arith.constant dense<0.000000e+00> : vector<64x8xf32>
    %74 = tpu.matmul %71, %73, %cst_97 {dimension_numbers = #tpu.dot_dimension_numbers<[1], [0], [0], [1], [0, 0, 1, 1], [], []>} : vector<64x4xbf16>, vector<4x8xbf16>, vector<64x8xf32> -> vector<64x8xf32>
    %75 = arith.addf %67, %74 : vector<64x8xf32>
    %c0_98 = arith.constant 0 : index
    %c0_99 = arith.constant 0 : index
    %76 = vector.load %arg8[%c0_98, %c0_99] : memref<64x8xf32, #tpu.memory_space<vmem>>, vector<64x8xf32>
    tpu.vector_store %arg8[%c0_98, %c0_99], %75 {strides = array<i32>} : memref<64x8xf32, #tpu.memory_space<vmem>>, vector<64x8xf32>,
    %c2_i32 = arith.constant 2 : i32
    %77 = arith.cmpi eq, %arg2, %c2_i32 : i32
    %78 = arith.extui %77 : i1 to i32
    %c0_i32_100 = arith.constant 0 : i32
    %79 = arith.cmpi ne, %78, %c0_i32_100 : i32
    scf.if %79 {
      %c0_101 = arith.constant 0 : index
      %c0_102 = arith.constant 0 : index
      %80 = vector.load %arg5[%c0_101, %c0_102] : memref<1x8xf32, #tpu.memory_space<vmem>>, vector<1x8xf32>
      %81 = vector.broadcast %80 : vector<1x8xf32> to vector<64x8xf32>
      %82 = arith.mulf %75, %81 : vector<64x8xf32>
      %c0_103 = arith.constant 0 : index
      %c0_104 = arith.constant 0 : index
      %83 = vector.load %arg6[%c0_103, %c0_104] : memref<1x8xf32, #tpu.memory_space<vmem>>, vector<1x8xf32>
      %84 = vector.broadcast %83 : vector<1x8xf32> to vector<64x8xf32>
      %85 = arith.addf %82, %84 : vector<64x8xf32>
      %cst_105 = arith.constant 0.000000e+00 : f32
      %86 = vector.broadcast %cst_105 : f32 to vector<64x8xf32>
      %87 = arith.maximumf %85, %86 : vector<64x8xf32>
      %c0_106 = arith.constant 0 : index
      %c0_107 = arith.constant 0 : index
      %c0_108 = arith.constant 0 : index
      %c0_109 = arith.constant 0 : index
      %88 = vector.load %arg7[%c0_106, %c0_107, %c0_108, %c0_109] : memref<1x1x64x8xf32, #tpu.memory_space<vmem>>, vector<1x1x64x8xf32>
      %89 = vector.shape_cast %88 : vector<1x1x64x8xf32> to vector<64x8xf32>
      %90 = vector.shape_cast %87 : vector<64x8xf32> to vector<1x1x64x8xf32>
      tpu.vector_store %arg7[%c0_106, %c0_107, %c0_108, %c0_109], %90 {strides = array<i32>} : memref<1x1x64x8xf32, #tpu.memory_space<vmem>>, vector<1x1x64x8xf32>,
    } else {
    }
    return
  }
  func.func @transform_0(%arg0: i32, %arg1: i32, %arg2: i32) -> (i32, i32, i32, i32, i32) {
    %0 = arith.addi %arg1, %arg2 : i32
    %c0_i32 = arith.constant 0 : i32
    %c0_i32_0 = arith.constant 0 : i32
    %c0_i32_1 = arith.constant 0 : i32
    %c0_i32_2 = arith.constant 0 : i32
    return %arg0, %0, %c0_i32, %c0_i32_0, %c0_i32_1 : i32, i32, i32, i32, i32
  }
  func.func @transform_1(%arg0: i32, %arg1: i32, %arg2: i32) -> (i32, i32, i32, i32, i32) {
    %c0_i32 = arith.constant 0 : i32
    %c0_i32_0 = arith.constant 0 : i32
    %c0_i32_1 = arith.constant 0 : i32
    %c0_i32_2 = arith.constant 0 : i32
    %c0_i32_3 = arith.constant 0 : i32
    return %arg2, %c0_i32, %c0_i32_0, %c0_i32_1, %c0_i32_2 : i32, i32, i32, i32, i32
  }
  func.func @transform_2(%arg0: i32, %arg1: i32, %arg2: i32) -> (i32, i32) {
    %c0_i32 = arith.constant 0 : i32
    %c0_i32_0 = arith.constant 0 : i32
    %c0_i32_1 = arith.constant 0 : i32
    return %c0_i32, %c0_i32_0 : i32, i32
  }
  func.func @transform_3(%arg0: i32, %arg1: i32, %arg2: i32) -> (i32, i32) {
    %c0_i32 = arith.constant 0 : i32
    %c0_i32_0 = arith.constant 0 : i32
    %c0_i32_1 = arith.constant 0 : i32
    return %c0_i32, %c0_i32_0 : i32, i32
  }
  func.func @transform_4(%arg0: i32, %arg1: i32, %arg2: i32) -> (i32, i32, i32, i32) {
    %c0_i32 = arith.constant 0 : i32
    %c0_i32_0 = arith.constant 0 : i32
    %c0_i32_1 = arith.constant 0 : i32
    return %arg0, %arg1, %c0_i32, %c0_i32_0 : i32, i32, i32, i32
  }
}

module attributes {stable_mosaic.version = 11 : i64} {
  func.func @_conv3x3x3_bn_relu_kernel(%arg0: i32, %arg1: i32, %arg2: i32, %arg3: memref<1x1x10x10x8xf32, #tpu.memory_space<vmem>>, %arg4: memref<1x3x3x8x16xbf16, #tpu.memory_space<vmem>>, %arg5: memref<1x16xf32, #tpu.memory_space<vmem>>, %arg6: memref<1x16xf32, #tpu.memory_space<vmem>>, %arg7: memref<1x1x64x16xf32, #tpu.memory_space<vmem>>, %arg8: memref<64x16xf32, #tpu.memory_space<vmem>>) attributes {dimension_semantics = [#tpu.dimension_semantics<parallel>, #tpu.dimension_semantics<parallel>, #tpu.dimension_semantics<arbitrary>], iteration_bounds = array<i64: 2, 4, 3>, scalar_prefetch = 0 : i64, scratch_operands = 1 : i64, tpu.core_type = #tpu.core_type<tc>, window_params = [{transform_indices = @transform_0, window_bounds = array<i64: 1, 1, 10, 10, 8>}, {transform_indices = @transform_1, window_bounds = array<i64: 1, 3, 3, 8, 16>}, {pipeline_mode = #tpu.pipeline_mode<synchronous>, transform_indices = @transform_2, window_bounds = array<i64: 1, 16>}, {pipeline_mode = #tpu.pipeline_mode<synchronous>, transform_indices = @transform_3, window_bounds = array<i64: 1, 16>}, {transform_indices = @transform_4, window_bounds = array<i64: 1, 1, 64, 16>}]} {
    %c0_i32 = arith.constant 0 : i32
    %0 = arith.cmpi eq, %arg2, %c0_i32 : i32
    %1 = arith.extui %0 : i1 to i32
    %c0_i32_0 = arith.constant 0 : i32
    %2 = arith.cmpi ne, %1, %c0_i32_0 : i32
    scf.if %2 {
      %cst_101 = arith.constant 0.000000e+00 : f32
      %80 = vector.broadcast %cst_101 : f32 to vector<64x16xf32>
      %c0_102 = arith.constant 0 : index
      %c0_103 = arith.constant 0 : index
      %81 = vector.load %arg8[%c0_102, %c0_103] : memref<64x16xf32, #tpu.memory_space<vmem>>, vector<64x16xf32>
      tpu.vector_store %arg8[%c0_102, %c0_103], %80 {strides = array<i32>} : memref<64x16xf32, #tpu.memory_space<vmem>>, vector<64x16xf32>,
    } else {
    }
    %c0 = arith.constant 0 : index
    %c0_1 = arith.constant 0 : index
    %3 = vector.load %arg8[%c0, %c0_1] : memref<64x16xf32, #tpu.memory_space<vmem>>, vector<64x16xf32>
    %c0_2 = arith.constant 0 : index
    %c0_3 = arith.constant 0 : index
    %c0_4 = arith.constant 0 : index
    %c0_5 = arith.constant 0 : index
    %c0_6 = arith.constant 0 : index
    %4 = vector.load %arg3[%c0_2, %c0_3, %c0_4, %c0_5, %c0_6] : memref<1x1x10x10x8xf32, #tpu.memory_space<vmem>>, vector<1x1x8x8x8xf32>
    %5 = vector.shape_cast %4 : vector<1x1x8x8x8xf32> to vector<8x8x8xf32>
    %6 = vector.shape_cast %5 : vector<8x8x8xf32> to vector<64x8xf32>
    %7 = arith.truncf %6 : vector<64x8xf32> to vector<64x8xbf16>
    %c0_7 = arith.constant 0 : index
    %c0_8 = arith.constant 0 : index
    %c0_9 = arith.constant 0 : index
    %c0_10 = arith.constant 0 : index
    %c0_11 = arith.constant 0 : index
    %8 = vector.load %arg4[%c0_7, %c0_8, %c0_9, %c0_10, %c0_11] : memref<1x3x3x8x16xbf16, #tpu.memory_space<vmem>>, vector<1x1x1x8x16xbf16>
    %9 = vector.shape_cast %8 : vector<1x1x1x8x16xbf16> to vector<8x16xbf16>
    %cst = arith.constant dense<0.000000e+00> : vector<64x16xf32>
    %10 = tpu.matmul %7, %9, %cst {dimension_numbers = #tpu.dot_dimension_numbers<[1], [0], [0], [1], [0, 0, 1, 1], [], []>} : vector<64x8xbf16>, vector<8x16xbf16>, vector<64x16xf32> -> vector<64x16xf32>
    %11 = arith.addf %3, %10 : vector<64x16xf32>
    %c0_12 = arith.constant 0 : index
    %c0_13 = arith.constant 0 : index
    %c0_14 = arith.constant 0 : index
    %c1 = arith.constant 1 : index
    %c0_15 = arith.constant 0 : index
    %12 = vector.load %arg3[%c0_12, %c0_13, %c0_14, %c1, %c0_15] : memref<1x1x10x10x8xf32, #tpu.memory_space<vmem>>, vector<1x1x8x8x8xf32>
    %13 = vector.shape_cast %12 : vector<1x1x8x8x8xf32> to vector<8x8x8xf32>
    %14 = vector.shape_cast %13 : vector<8x8x8xf32> to vector<64x8xf32>
    %15 = arith.truncf %14 : vector<64x8xf32> to vector<64x8xbf16>
    %c0_16 = arith.constant 0 : index
    %c0_17 = arith.constant 0 : index
    %c1_18 = arith.constant 1 : index
    %c0_19 = arith.constant 0 : index
    %c0_20 = arith.constant 0 : index
    %16 = vector.load %arg4[%c0_16, %c0_17, %c1_18, %c0_19, %c0_20] : memref<1x3x3x8x16xbf16, #tpu.memory_space<vmem>>, vector<1x1x1x8x16xbf16>
    %17 = vector.shape_cast %16 : vector<1x1x1x8x16xbf16> to vector<8x16xbf16>
    %cst_21 = arith.constant dense<0.000000e+00> : vector<64x16xf32>
    %18 = tpu.matmul %15, %17, %cst_21 {dimension_numbers = #tpu.dot_dimension_numbers<[1], [0], [0], [1], [0, 0, 1, 1], [], []>} : vector<64x8xbf16>, vector<8x16xbf16>, vector<64x16xf32> -> vector<64x16xf32>
    %19 = arith.addf %11, %18 : vector<64x16xf32>
    %c0_22 = arith.constant 0 : index
    %c0_23 = arith.constant 0 : index
    %c0_24 = arith.constant 0 : index
    %c2 = arith.constant 2 : index
    %c0_25 = arith.constant 0 : index
    %20 = vector.load %arg3[%c0_22, %c0_23, %c0_24, %c2, %c0_25] : memref<1x1x10x10x8xf32, #tpu.memory_space<vmem>>, vector<1x1x8x8x8xf32>
    %21 = vector.shape_cast %20 : vector<1x1x8x8x8xf32> to vector<8x8x8xf32>
    %22 = vector.shape_cast %21 : vector<8x8x8xf32> to vector<64x8xf32>
    %23 = arith.truncf %22 : vector<64x8xf32> to vector<64x8xbf16>
    %c0_26 = arith.constant 0 : index
    %c0_27 = arith.constant 0 : index
    %c2_28 = arith.constant 2 : index
    %c0_29 = arith.constant 0 : index
    %c0_30 = arith.constant 0 : index
    %24 = vector.load %arg4[%c0_26, %c0_27, %c2_28, %c0_29, %c0_30] : memref<1x3x3x8x16xbf16, #tpu.memory_space<vmem>>, vector<1x1x1x8x16xbf16>
    %25 = vector.shape_cast %24 : vector<1x1x1x8x16xbf16> to vector<8x16xbf16>
    %cst_31 = arith.constant dense<0.000000e+00> : vector<64x16xf32>
    %26 = tpu.matmul %23, %25, %cst_31 {dimension_numbers = #tpu.dot_dimension_numbers<[1], [0], [0], [1], [0, 0, 1, 1], [], []>} : vector<64x8xbf16>, vector<8x16xbf16>, vector<64x16xf32> -> vector<64x16xf32>
    %27 = arith.addf %19, %26 : vector<64x16xf32>
    %c0_32 = arith.constant 0 : index
    %c0_33 = arith.constant 0 : index
    %c1_34 = arith.constant 1 : index
    %c0_35 = arith.constant 0 : index
    %c0_36 = arith.constant 0 : index
    %28 = vector.load %arg3[%c0_32, %c0_33, %c1_34, %c0_35, %c0_36] : memref<1x1x10x10x8xf32, #tpu.memory_space<vmem>>, vector<1x1x8x8x8xf32>
    %29 = vector.shape_cast %28 : vector<1x1x8x8x8xf32> to vector<8x8x8xf32>
    %30 = vector.shape_cast %29 : vector<8x8x8xf32> to vector<64x8xf32>
    %31 = arith.truncf %30 : vector<64x8xf32> to vector<64x8xbf16>
    %c0_37 = arith.constant 0 : index
    %c1_38 = arith.constant 1 : index
    %c0_39 = arith.constant 0 : index
    %c0_40 = arith.constant 0 : index
    %c0_41 = arith.constant 0 : index
    %32 = vector.load %arg4[%c0_37, %c1_38, %c0_39, %c0_40, %c0_41] : memref<1x3x3x8x16xbf16, #tpu.memory_space<vmem>>, vector<1x1x1x8x16xbf16>
    %33 = vector.shape_cast %32 : vector<1x1x1x8x16xbf16> to vector<8x16xbf16>
    %cst_42 = arith.constant dense<0.000000e+00> : vector<64x16xf32>
    %34 = tpu.matmul %31, %33, %cst_42 {dimension_numbers = #tpu.dot_dimension_numbers<[1], [0], [0], [1], [0, 0, 1, 1], [], []>} : vector<64x8xbf16>, vector<8x16xbf16>, vector<64x16xf32> -> vector<64x16xf32>
    %35 = arith.addf %27, %34 : vector<64x16xf32>
    %c0_43 = arith.constant 0 : index
    %c0_44 = arith.constant 0 : index
    %c1_45 = arith.constant 1 : index
    %c1_46 = arith.constant 1 : index
    %c0_47 = arith.constant 0 : index
    %36 = vector.load %arg3[%c0_43, %c0_44, %c1_45, %c1_46, %c0_47] : memref<1x1x10x10x8xf32, #tpu.memory_space<vmem>>, vector<1x1x8x8x8xf32>
    %37 = vector.shape_cast %36 : vector<1x1x8x8x8xf32> to vector<8x8x8xf32>
    %38 = vector.shape_cast %37 : vector<8x8x8xf32> to vector<64x8xf32>
    %39 = arith.truncf %38 : vector<64x8xf32> to vector<64x8xbf16>
    %c0_48 = arith.constant 0 : index
    %c1_49 = arith.constant 1 : index
    %c1_50 = arith.constant 1 : index
    %c0_51 = arith.constant 0 : index
    %c0_52 = arith.constant 0 : index
    %40 = vector.load %arg4[%c0_48, %c1_49, %c1_50, %c0_51, %c0_52] : memref<1x3x3x8x16xbf16, #tpu.memory_space<vmem>>, vector<1x1x1x8x16xbf16>
    %41 = vector.shape_cast %40 : vector<1x1x1x8x16xbf16> to vector<8x16xbf16>
    %cst_53 = arith.constant dense<0.000000e+00> : vector<64x16xf32>
    %42 = tpu.matmul %39, %41, %cst_53 {dimension_numbers = #tpu.dot_dimension_numbers<[1], [0], [0], [1], [0, 0, 1, 1], [], []>} : vector<64x8xbf16>, vector<8x16xbf16>, vector<64x16xf32> -> vector<64x16xf32>
    %43 = arith.addf %35, %42 : vector<64x16xf32>
    %c0_54 = arith.constant 0 : index
    %c0_55 = arith.constant 0 : index
    %c1_56 = arith.constant 1 : index
    %c2_57 = arith.constant 2 : index
    %c0_58 = arith.constant 0 : index
    %44 = vector.load %arg3[%c0_54, %c0_55, %c1_56, %c2_57, %c0_58] : memref<1x1x10x10x8xf32, #tpu.memory_space<vmem>>, vector<1x1x8x8x8xf32>
    %45 = vector.shape_cast %44 : vector<1x1x8x8x8xf32> to vector<8x8x8xf32>
    %46 = vector.shape_cast %45 : vector<8x8x8xf32> to vector<64x8xf32>
    %47 = arith.truncf %46 : vector<64x8xf32> to vector<64x8xbf16>
    %c0_59 = arith.constant 0 : index
    %c1_60 = arith.constant 1 : index
    %c2_61 = arith.constant 2 : index
    %c0_62 = arith.constant 0 : index
    %c0_63 = arith.constant 0 : index
    %48 = vector.load %arg4[%c0_59, %c1_60, %c2_61, %c0_62, %c0_63] : memref<1x3x3x8x16xbf16, #tpu.memory_space<vmem>>, vector<1x1x1x8x16xbf16>
    %49 = vector.shape_cast %48 : vector<1x1x1x8x16xbf16> to vector<8x16xbf16>
    %cst_64 = arith.constant dense<0.000000e+00> : vector<64x16xf32>
    %50 = tpu.matmul %47, %49, %cst_64 {dimension_numbers = #tpu.dot_dimension_numbers<[1], [0], [0], [1], [0, 0, 1, 1], [], []>} : vector<64x8xbf16>, vector<8x16xbf16>, vector<64x16xf32> -> vector<64x16xf32>
    %51 = arith.addf %43, %50 : vector<64x16xf32>
    %c0_65 = arith.constant 0 : index
    %c0_66 = arith.constant 0 : index
    %c2_67 = arith.constant 2 : index
    %c0_68 = arith.constant 0 : index
    %c0_69 = arith.constant 0 : index
    %52 = vector.load %arg3[%c0_65, %c0_66, %c2_67, %c0_68, %c0_69] : memref<1x1x10x10x8xf32, #tpu.memory_space<vmem>>, vector<1x1x8x8x8xf32>
    %53 = vector.shape_cast %52 : vector<1x1x8x8x8xf32> to vector<8x8x8xf32>
    %54 = vector.shape_cast %53 : vector<8x8x8xf32> to vector<64x8xf32>
    %55 = arith.truncf %54 : vector<64x8xf32> to vector<64x8xbf16>
    %c0_70 = arith.constant 0 : index
    %c2_71 = arith.constant 2 : index
    %c0_72 = arith.constant 0 : index
    %c0_73 = arith.constant 0 : index
    %c0_74 = arith.constant 0 : index
    %56 = vector.load %arg4[%c0_70, %c2_71, %c0_72, %c0_73, %c0_74] : memref<1x3x3x8x16xbf16, #tpu.memory_space<vmem>>, vector<1x1x1x8x16xbf16>
    %57 = vector.shape_cast %56 : vector<1x1x1x8x16xbf16> to vector<8x16xbf16>
    %cst_75 = arith.constant dense<0.000000e+00> : vector<64x16xf32>
    %58 = tpu.matmul %55, %57, %cst_75 {dimension_numbers = #tpu.dot_dimension_numbers<[1], [0], [0], [1], [0, 0, 1, 1], [], []>} : vector<64x8xbf16>, vector<8x16xbf16>, vector<64x16xf32> -> vector<64x16xf32>
    %59 = arith.addf %51, %58 : vector<64x16xf32>
    %c0_76 = arith.constant 0 : index
    %c0_77 = arith.constant 0 : index
    %c2_78 = arith.constant 2 : index
    %c1_79 = arith.constant 1 : index
    %c0_80 = arith.constant 0 : index
    %60 = vector.load %arg3[%c0_76, %c0_77, %c2_78, %c1_79, %c0_80] : memref<1x1x10x10x8xf32, #tpu.memory_space<vmem>>, vector<1x1x8x8x8xf32>
    %61 = vector.shape_cast %60 : vector<1x1x8x8x8xf32> to vector<8x8x8xf32>
    %62 = vector.shape_cast %61 : vector<8x8x8xf32> to vector<64x8xf32>
    %63 = arith.truncf %62 : vector<64x8xf32> to vector<64x8xbf16>
    %c0_81 = arith.constant 0 : index
    %c2_82 = arith.constant 2 : index
    %c1_83 = arith.constant 1 : index
    %c0_84 = arith.constant 0 : index
    %c0_85 = arith.constant 0 : index
    %64 = vector.load %arg4[%c0_81, %c2_82, %c1_83, %c0_84, %c0_85] : memref<1x3x3x8x16xbf16, #tpu.memory_space<vmem>>, vector<1x1x1x8x16xbf16>
    %65 = vector.shape_cast %64 : vector<1x1x1x8x16xbf16> to vector<8x16xbf16>
    %cst_86 = arith.constant dense<0.000000e+00> : vector<64x16xf32>
    %66 = tpu.matmul %63, %65, %cst_86 {dimension_numbers = #tpu.dot_dimension_numbers<[1], [0], [0], [1], [0, 0, 1, 1], [], []>} : vector<64x8xbf16>, vector<8x16xbf16>, vector<64x16xf32> -> vector<64x16xf32>
    %67 = arith.addf %59, %66 : vector<64x16xf32>
    %c0_87 = arith.constant 0 : index
    %c0_88 = arith.constant 0 : index
    %c2_89 = arith.constant 2 : index
    %c2_90 = arith.constant 2 : index
    %c0_91 = arith.constant 0 : index
    %68 = vector.load %arg3[%c0_87, %c0_88, %c2_89, %c2_90, %c0_91] : memref<1x1x10x10x8xf32, #tpu.memory_space<vmem>>, vector<1x1x8x8x8xf32>
    %69 = vector.shape_cast %68 : vector<1x1x8x8x8xf32> to vector<8x8x8xf32>
    %70 = vector.shape_cast %69 : vector<8x8x8xf32> to vector<64x8xf32>
    %71 = arith.truncf %70 : vector<64x8xf32> to vector<64x8xbf16>
    %c0_92 = arith.constant 0 : index
    %c2_93 = arith.constant 2 : index
    %c2_94 = arith.constant 2 : index
    %c0_95 = arith.constant 0 : index
    %c0_96 = arith.constant 0 : index
    %72 = vector.load %arg4[%c0_92, %c2_93, %c2_94, %c0_95, %c0_96] : memref<1x3x3x8x16xbf16, #tpu.memory_space<vmem>>, vector<1x1x1x8x16xbf16>
    %73 = vector.shape_cast %72 : vector<1x1x1x8x16xbf16> to vector<8x16xbf16>
    %cst_97 = arith.constant dense<0.000000e+00> : vector<64x16xf32>
    %74 = tpu.matmul %71, %73, %cst_97 {dimension_numbers = #tpu.dot_dimension_numbers<[1], [0], [0], [1], [0, 0, 1, 1], [], []>} : vector<64x8xbf16>, vector<8x16xbf16>, vector<64x16xf32> -> vector<64x16xf32>
    %75 = arith.addf %67, %74 : vector<64x16xf32>
    %c0_98 = arith.constant 0 : index
    %c0_99 = arith.constant 0 : index
    %76 = vector.load %arg8[%c0_98, %c0_99] : memref<64x16xf32, #tpu.memory_space<vmem>>, vector<64x16xf32>
    tpu.vector_store %arg8[%c0_98, %c0_99], %75 {strides = array<i32>} : memref<64x16xf32, #tpu.memory_space<vmem>>, vector<64x16xf32>,
    %c2_i32 = arith.constant 2 : i32
    %77 = arith.cmpi eq, %arg2, %c2_i32 : i32
    %78 = arith.extui %77 : i1 to i32
    %c0_i32_100 = arith.constant 0 : i32
    %79 = arith.cmpi ne, %78, %c0_i32_100 : i32
    scf.if %79 {
      %c0_101 = arith.constant 0 : index
      %c0_102 = arith.constant 0 : index
      %80 = vector.load %arg5[%c0_101, %c0_102] : memref<1x16xf32, #tpu.memory_space<vmem>>, vector<1x16xf32>
      %81 = vector.broadcast %80 : vector<1x16xf32> to vector<64x16xf32>
      %82 = arith.mulf %75, %81 : vector<64x16xf32>
      %c0_103 = arith.constant 0 : index
      %c0_104 = arith.constant 0 : index
      %83 = vector.load %arg6[%c0_103, %c0_104] : memref<1x16xf32, #tpu.memory_space<vmem>>, vector<1x16xf32>
      %84 = vector.broadcast %83 : vector<1x16xf32> to vector<64x16xf32>
      %85 = arith.addf %82, %84 : vector<64x16xf32>
      %cst_105 = arith.constant 0.000000e+00 : f32
      %86 = vector.broadcast %cst_105 : f32 to vector<64x16xf32>
      %87 = arith.maximumf %85, %86 : vector<64x16xf32>
      %c0_106 = arith.constant 0 : index
      %c0_107 = arith.constant 0 : index
      %c0_108 = arith.constant 0 : index
      %c0_109 = arith.constant 0 : index
      %88 = vector.load %arg7[%c0_106, %c0_107, %c0_108, %c0_109] : memref<1x1x64x16xf32, #tpu.memory_space<vmem>>, vector<1x1x64x16xf32>
      %89 = vector.shape_cast %88 : vector<1x1x64x16xf32> to vector<64x16xf32>
      %90 = vector.shape_cast %87 : vector<64x16xf32> to vector<1x1x64x16xf32>
      tpu.vector_store %arg7[%c0_106, %c0_107, %c0_108, %c0_109], %90 {strides = array<i32>} : memref<1x1x64x16xf32, #tpu.memory_space<vmem>>, vector<1x1x64x16xf32>,
    } else {
    }
    return
  }
  func.func @transform_0(%arg0: i32, %arg1: i32, %arg2: i32) -> (i32, i32, i32, i32, i32) {
    %0 = arith.addi %arg1, %arg2 : i32
    %c0_i32 = arith.constant 0 : i32
    %c0_i32_0 = arith.constant 0 : i32
    %c0_i32_1 = arith.constant 0 : i32
    %c0_i32_2 = arith.constant 0 : i32
    return %arg0, %0, %c0_i32, %c0_i32_0, %c0_i32_1 : i32, i32, i32, i32, i32
  }
  func.func @transform_1(%arg0: i32, %arg1: i32, %arg2: i32) -> (i32, i32, i32, i32, i32) {
    %c0_i32 = arith.constant 0 : i32
    %c0_i32_0 = arith.constant 0 : i32
    %c0_i32_1 = arith.constant 0 : i32
    %c0_i32_2 = arith.constant 0 : i32
    %c0_i32_3 = arith.constant 0 : i32
    return %arg2, %c0_i32, %c0_i32_0, %c0_i32_1, %c0_i32_2 : i32, i32, i32, i32, i32
  }
  func.func @transform_2(%arg0: i32, %arg1: i32, %arg2: i32) -> (i32, i32) {
    %c0_i32 = arith.constant 0 : i32
    %c0_i32_0 = arith.constant 0 : i32
    %c0_i32_1 = arith.constant 0 : i32
    return %c0_i32, %c0_i32_0 : i32, i32
  }
  func.func @transform_3(%arg0: i32, %arg1: i32, %arg2: i32) -> (i32, i32) {
    %c0_i32 = arith.constant 0 : i32
    %c0_i32_0 = arith.constant 0 : i32
    %c0_i32_1 = arith.constant 0 : i32
    return %c0_i32, %c0_i32_0 : i32, i32
  }
  func.func @transform_4(%arg0: i32, %arg1: i32, %arg2: i32) -> (i32, i32, i32, i32) {
    %c0_i32 = arith.constant 0 : i32
    %c0_i32_0 = arith.constant 0 : i32
    %c0_i32_1 = arith.constant 0 : i32
    return %arg0, %arg1, %c0_i32, %c0_i32_0 : i32, i32, i32, i32
  }
}

module attributes {stable_mosaic.version = 11 : i64} {
  func.func @_maxpool3_conv1x1_bn_relu_kernel(%arg0: i32, %arg1: i32, %arg2: i32, %arg3: memref<1x1x10x10x16xf32, #tpu.memory_space<vmem>>, %arg4: memref<16x8xbf16, #tpu.memory_space<vmem>>, %arg5: memref<1x8xf32, #tpu.memory_space<vmem>>, %arg6: memref<1x8xf32, #tpu.memory_space<vmem>>, %arg7: memref<1x1x64x8xf32, #tpu.memory_space<vmem>>, %arg8: memref<8x8x16xf32, #tpu.memory_space<vmem>>) attributes {dimension_semantics = [#tpu.dimension_semantics<parallel>, #tpu.dimension_semantics<parallel>, #tpu.dimension_semantics<arbitrary>], iteration_bounds = array<i64: 2, 4, 3>, scalar_prefetch = 0 : i64, scratch_operands = 1 : i64, tpu.core_type = #tpu.core_type<tc>, window_params = [{transform_indices = @transform_0, window_bounds = array<i64: 1, 1, 10, 10, 16>}, {pipeline_mode = #tpu.pipeline_mode<synchronous>, transform_indices = @transform_1, window_bounds = array<i64: 16, 8>}, {pipeline_mode = #tpu.pipeline_mode<synchronous>, transform_indices = @transform_2, window_bounds = array<i64: 1, 8>}, {pipeline_mode = #tpu.pipeline_mode<synchronous>, transform_indices = @transform_3, window_bounds = array<i64: 1, 8>}, {transform_indices = @transform_4, window_bounds = array<i64: 1, 1, 64, 8>}]} {
    %c0 = arith.constant 0 : index
    %c0_0 = arith.constant 0 : index
    %c0_1 = arith.constant 0 : index
    %c0_2 = arith.constant 0 : index
    %c0_3 = arith.constant 0 : index
    %0 = vector.load %arg3[%c0, %c0_0, %c0_1, %c0_2, %c0_3] : memref<1x1x10x10x16xf32, #tpu.memory_space<vmem>>, vector<1x1x10x10x16xf32>
    %1 = vector.shape_cast %0 : vector<1x1x10x10x16xf32> to vector<10x10x16xf32>
    %2 = vector.extract_strided_slice %1 {offsets = [0, 0, 0], sizes = [10, 8, 16], strides = [1, 1, 1]} : vector<10x10x16xf32> to vector<10x8x16xf32>
    %3 = vector.extract_strided_slice %1 {offsets = [0, 1, 0], sizes = [10, 8, 16], strides = [1, 1, 1]} : vector<10x10x16xf32> to vector<10x8x16xf32>
    %4 = arith.maximumf %2, %3 : vector<10x8x16xf32>
    %5 = vector.extract_strided_slice %1 {offsets = [0, 2, 0], sizes = [10, 8, 16], strides = [1, 1, 1]} : vector<10x10x16xf32> to vector<10x8x16xf32>
    %6 = arith.maximumf %4, %5 : vector<10x8x16xf32>
    %7 = vector.extract_strided_slice %6 {offsets = [0, 0, 0], sizes = [8, 8, 16], strides = [1, 1, 1]} : vector<10x8x16xf32> to vector<8x8x16xf32>
    %8 = vector.extract_strided_slice %6 {offsets = [1, 0, 0], sizes = [8, 8, 16], strides = [1, 1, 1]} : vector<10x8x16xf32> to vector<8x8x16xf32>
    %9 = arith.maximumf %7, %8 : vector<8x8x16xf32>
    %10 = vector.extract_strided_slice %6 {offsets = [2, 0, 0], sizes = [8, 8, 16], strides = [1, 1, 1]} : vector<10x8x16xf32> to vector<8x8x16xf32>
    %11 = arith.maximumf %9, %10 : vector<8x8x16xf32>
    %c0_i32 = arith.constant 0 : i32
    %12 = arith.cmpi eq, %arg2, %c0_i32 : i32
    %13 = arith.extui %12 : i1 to i32
    %c0_i32_4 = arith.constant 0 : i32
    %14 = arith.cmpi ne, %13, %c0_i32_4 : i32
    scf.if %14 {
      %c0_8 = arith.constant 0 : index
      %c0_9 = arith.constant 0 : index
      %c0_10 = arith.constant 0 : index
      %21 = vector.load %arg8[%c0_8, %c0_9, %c0_10] : memref<8x8x16xf32, #tpu.memory_space<vmem>>, vector<8x8x16xf32>
      tpu.vector_store %arg8[%c0_8, %c0_9, %c0_10], %11 {strides = array<i32>} : memref<8x8x16xf32, #tpu.memory_space<vmem>>, vector<8x8x16xf32>,
    } else {
    }
    %c0_i32_5 = arith.constant 0 : i32
    %15 = arith.cmpi ne, %arg2, %c0_i32_5 : i32
    %16 = arith.extui %15 : i1 to i32
    %c0_i32_6 = arith.constant 0 : i32
    %17 = arith.cmpi ne, %16, %c0_i32_6 : i32
    scf.if %17 {
      %c0_8 = arith.constant 0 : index
      %c0_9 = arith.constant 0 : index
      %c0_10 = arith.constant 0 : index
      %21 = vector.load %arg8[%c0_8, %c0_9, %c0_10] : memref<8x8x16xf32, #tpu.memory_space<vmem>>, vector<8x8x16xf32>
      %22 = arith.maximumf %21, %11 : vector<8x8x16xf32>
      %c0_11 = arith.constant 0 : index
      %c0_12 = arith.constant 0 : index
      %c0_13 = arith.constant 0 : index
      %23 = vector.load %arg8[%c0_11, %c0_12, %c0_13] : memref<8x8x16xf32, #tpu.memory_space<vmem>>, vector<8x8x16xf32>
      tpu.vector_store %arg8[%c0_11, %c0_12, %c0_13], %22 {strides = array<i32>} : memref<8x8x16xf32, #tpu.memory_space<vmem>>, vector<8x8x16xf32>,
    } else {
    }
    %c2_i32 = arith.constant 2 : i32
    %18 = arith.cmpi eq, %arg2, %c2_i32 : i32
    %19 = arith.extui %18 : i1 to i32
    %c0_i32_7 = arith.constant 0 : i32
    %20 = arith.cmpi ne, %19, %c0_i32_7 : i32
    scf.if %20 {
      %c0_8 = arith.constant 0 : index
      %c0_9 = arith.constant 0 : index
      %c0_10 = arith.constant 0 : index
      %21 = vector.load %arg8[%c0_8, %c0_9, %c0_10] : memref<8x8x16xf32, #tpu.memory_space<vmem>>, vector<8x8x16xf32>
      %22 = vector.shape_cast %21 : vector<8x8x16xf32> to vector<64x16xf32>
      %23 = arith.truncf %22 : vector<64x16xf32> to vector<64x16xbf16>
      %c0_11 = arith.constant 0 : index
      %c0_12 = arith.constant 0 : index
      %24 = vector.load %arg4[%c0_11, %c0_12] : memref<16x8xbf16, #tpu.memory_space<vmem>>, vector<16x8xbf16>
      %cst = arith.constant dense<0.000000e+00> : vector<64x8xf32>
      %25 = tpu.matmul %23, %24, %cst {dimension_numbers = #tpu.dot_dimension_numbers<[1], [0], [0], [1], [0, 0, 1, 1], [], []>} : vector<64x16xbf16>, vector<16x8xbf16>, vector<64x8xf32> -> vector<64x8xf32>
      %c0_13 = arith.constant 0 : index
      %c0_14 = arith.constant 0 : index
      %26 = vector.load %arg5[%c0_13, %c0_14] : memref<1x8xf32, #tpu.memory_space<vmem>>, vector<1x8xf32>
      %27 = vector.broadcast %26 : vector<1x8xf32> to vector<64x8xf32>
      %28 = arith.mulf %25, %27 : vector<64x8xf32>
      %c0_15 = arith.constant 0 : index
      %c0_16 = arith.constant 0 : index
      %29 = vector.load %arg6[%c0_15, %c0_16] : memref<1x8xf32, #tpu.memory_space<vmem>>, vector<1x8xf32>
      %30 = vector.broadcast %29 : vector<1x8xf32> to vector<64x8xf32>
      %31 = arith.addf %28, %30 : vector<64x8xf32>
      %cst_17 = arith.constant 0.000000e+00 : f32
      %32 = vector.broadcast %cst_17 : f32 to vector<64x8xf32>
      %33 = arith.maximumf %31, %32 : vector<64x8xf32>
      %c0_18 = arith.constant 0 : index
      %c0_19 = arith.constant 0 : index
      %c0_20 = arith.constant 0 : index
      %c0_21 = arith.constant 0 : index
      %34 = vector.load %arg7[%c0_18, %c0_19, %c0_20, %c0_21] : memref<1x1x64x8xf32, #tpu.memory_space<vmem>>, vector<1x1x64x8xf32>
      %35 = vector.shape_cast %34 : vector<1x1x64x8xf32> to vector<64x8xf32>
      %36 = vector.shape_cast %33 : vector<64x8xf32> to vector<1x1x64x8xf32>
      tpu.vector_store %arg7[%c0_18, %c0_19, %c0_20, %c0_21], %36 {strides = array<i32>} : memref<1x1x64x8xf32, #tpu.memory_space<vmem>>, vector<1x1x64x8xf32>,
    } else {
    }
    return
  }
  func.func @transform_0(%arg0: i32, %arg1: i32, %arg2: i32) -> (i32, i32, i32, i32, i32) {
    %0 = arith.addi %arg1, %arg2 : i32
    %c0_i32 = arith.constant 0 : i32
    %c0_i32_0 = arith.constant 0 : i32
    %c0_i32_1 = arith.constant 0 : i32
    %c0_i32_2 = arith.constant 0 : i32
    return %arg0, %0, %c0_i32, %c0_i32_0, %c0_i32_1 : i32, i32, i32, i32, i32
  }
  func.func @transform_1(%arg0: i32, %arg1: i32, %arg2: i32) -> (i32, i32) {
    %c0_i32 = arith.constant 0 : i32
    %c0_i32_0 = arith.constant 0 : i32
    %c0_i32_1 = arith.constant 0 : i32
    return %c0_i32, %c0_i32_0 : i32, i32
  }
  func.func @transform_2(%arg0: i32, %arg1: i32, %arg2: i32) -> (i32, i32) {
    %c0_i32 = arith.constant 0 : i32
    %c0_i32_0 = arith.constant 0 : i32
    %c0_i32_1 = arith.constant 0 : i32
    return %c0_i32, %c0_i32_0 : i32, i32
  }
  func.func @transform_3(%arg0: i32, %arg1: i32, %arg2: i32) -> (i32, i32) {
    %c0_i32 = arith.constant 0 : i32
    %c0_i32_0 = arith.constant 0 : i32
    %c0_i32_1 = arith.constant 0 : i32
    return %c0_i32, %c0_i32_0 : i32, i32
  }
  func.func @transform_4(%arg0: i32, %arg1: i32, %arg2: i32) -> (i32, i32, i32, i32) {
    %c0_i32 = arith.constant 0 : i32
    %c0_i32_0 = arith.constant 0 : i32
    %c0_i32_1 = arith.constant 0 : i32
    return %arg0, %arg1, %c0_i32, %c0_i32_0 : i32, i32, i32, i32
  }
}

</mosaic_0001>

<bundles_post_ra>
// kernel: inception_block.4
= control target key start
LH: loop header
LB: loop body
LE: loop exit
PB: predicated region body
PF: predicated region fallthrough
CT: control target
= control target key end

     0   :  { %vm122_vm0 = vcmask 130048   ;;  %vm588_vm1 = vcmask 162816   ;;  %s1345_s1 = inlined_call_operand.vmem [shape: bf16[16,20], index: 1, kind: input, shape index: {}]   ;;  %s1346_s0 = inlined_call_operand.vmem [shape: f32[512,16], index: 0, kind: input, shape index: {}]   ;;  %s1347_s2 = inlined_call_operand.vmem [shape: f32[1,20], index: 2, kind: input, shape index: {}]   ;;  %s1348_s3 = inlined_call_operand.vmem [shape: f32[1,20], index: 3, kind: input, shape index: {}]   ;;  %s1349_s4 = inlined_call_operand.vmem [shape: f32[512,20], index: 4, kind: output, shape index: {}]  }
   0x1   :  { %v693_v0 = vld [vmem:[%s1345_s1] sm:$0xff]  ;;  %v19_v2 = vld [vmem:[%s1346_s0 + $0x8] sm:$0xff]  ;;  %v20_v13 = vld [vmem:[%s1346_s0 + $0x10] sm:$0xff] }
   0x2   :  { %v18_v1 = vld [vmem:[%s1346_s0] sm:$0xff]  ;;  %v35_v5 = vld [vmem:[%s1346_s0 + $0x88] sm:$0xff]  ;;  %226 = vmatpush.bf16.msra.mxu0 %v693_v0  ;;  %694 = vmatpush.bf16.msra.mxu1 %v693_v0  ;;  %v21_v14 = vld [vmem:[%s1346_s0 + $0x18] sm:$0xff] }
   0x3   :  { %v82_v3 = vpack.c.bf16 %v19_v2, %v18_v1  ;;  %v34_v4 = vld [vmem:[%s1346_s0 + $0x80] sm:$0xff]  ;;  %v51_v8 = vld [vmem:[%s1346_s0 + $0x108] sm:$0xff]  ;;  %695 = vmatpush.bf16.msra.mxu2 %v693_v0  ;;  %696 = vmatpush.bf16.msra.mxu3 %v693_v0  ;;  %v36_v15 = vld [vmem:[%s1346_s0 + $0x90] sm:$0xff]  ;;  %v83_v21 = vpack.c.bf16 %v21_v14, %v20_v13 }
   0x4   :  { %v50_v6 = vld [vmem:[%s1346_s0 + $0x100] sm:$0xff]  ;;  %v90_v7 = vpack.c.bf16 %v35_v5, %v34_v4  ;;  %v67_v10 = vld [vmem:[%s1346_s0 + $0x188] sm:$0xff]  ;;  %v37_v16 = vld [vmem:[%s1346_s0 + $0x98] sm:$0xff] }
   0x5   :  { %v66_v9 = vld [vmem:[%s1346_s0 + $0x180] sm:$0xff]  ;;  %v98_v11 = vpack.c.bf16 %v51_v8, %v50_v6  ;;  %661 = vmatmul.msk.bf16.vlgmr.msra.gmra.mxu0 %vm122_vm0, %v82_v3  ;;  %v52_v17 = vld [vmem:[%s1346_s0 + $0x110] sm:$0xff]  ;;  %v53_v18 = vld [vmem:[%s1346_s0 + $0x118] sm:$0xff]  ;;  %v91_v22 = vpack.c.bf16 %v37_v16, %v36_v15 }
   0x6   :  { %v106_v12 = vpack.c.bf16 %v67_v10, %v66_v9  ;;  %669 = vmatmul.msk.bf16.vlgmr.msra.gmra.mxu1 %vm122_vm0, %v90_v7  ;;  %v68_v19 = vld [vmem:[%s1346_s0 + $0x190] sm:$0xff]  ;;  %v69_v20 = vld [vmem:[%s1346_s0 + $0x198] sm:$0xff]  ;;  %v99_v23 = vpack.c.bf16 %v53_v18, %v52_v17  ;;  %v22_v25 = vld [vmem:[%s1346_s0 + $0x20] sm:$0xff] }
   0x7   :  { %677 = vmatmul.msk.bf16.vlgmr.msra.gmra.mxu2 %vm122_vm0, %v98_v11  ;;  %v107_v24 = vpack.c.bf16 %v69_v20, %v68_v19  ;;  %v23_v26 = vld [vmem:[%s1346_s0 + $0x28] sm:$0xff]  ;;  %v38_v27 = vld [vmem:[%s1346_s0 + $0xa0] sm:$0xff]  ;;  %v24_v37 = vld [vmem:[%s1346_s0 + $0x30] sm:$0xff] }
   0x8   :  { %685 = vmatmul.msk.bf16.vlgmr.msra.gmra.mxu3 %vm122_vm0, %v106_v12  ;;  %v39_v28 = vld [vmem:[%s1346_s0 + $0xa8] sm:$0xff]  ;;  %v54_v29 = vld [vmem:[%s1346_s0 + $0x120] sm:$0xff]  ;;  %v84_v33 = vpack.c.bf16 %v23_v26, %v22_v25  ;;  %v25_v38 = vld [vmem:[%s1346_s0 + $0x38] sm:$0xff] }
   0x9   :  { %v55_v30 = vld [vmem:[%s1346_s0 + $0x128] sm:$0xff]  ;;  %v70_v31 = vld [vmem:[%s1346_s0 + $0x1a0] sm:$0xff]  ;;  %v92_v34 = vpack.c.bf16 %v39_v28, %v38_v27  ;;  %v40_v39 = vld [vmem:[%s1346_s0 + $0xb0] sm:$0xff]  ;;  %v85_v45 = vpack.c.bf16 %v25_v38, %v24_v37 }
   0xa   :  { %v71_v32 = vld [vmem:[%s1346_s0 + $0x1a8] sm:$0xff]  ;;  %v100_v35 = vpack.c.bf16 %v55_v30, %v54_v29  ;;  %v41_v40 = vld [vmem:[%s1346_s0 + $0xb8] sm:$0xff]  ;;  %v56_v41 = vld [vmem:[%s1346_s0 + $0x130] sm:$0xff] }
   0xb   :  { %v108_v36 = vpack.c.bf16 %v71_v32, %v70_v31  ;;  %v57_v42 = vld [vmem:[%s1346_s0 + $0x138] sm:$0xff]  ;;  %v72_v43 = vld [vmem:[%s1346_s0 + $0x1b0] sm:$0xff]  ;;  %v93_v46 = vpack.c.bf16 %v41_v40, %v40_v39  ;;  %v26_v49 = vld [vmem:[%s1346_s0 + $0x40] sm:$0xff] }
   0xc   :  { %v73_v44 = vld [vmem:[%s1346_s0 + $0x1b8] sm:$0xff]  ;;  %v101_v47 = vpack.c.bf16 %v57_v42, %v56_v41  ;;  %v27_v50 = vld [vmem:[%s1346_s0 + $0x48] sm:$0xff]  ;;  %v42_v51 = vld [vmem:[%s1346_s0 + $0xc0] sm:$0xff] }
   0xd   :  { %v109_v48 = vpack.c.bf16 %v73_v44, %v72_v43  ;;  %v43_v52 = vld [vmem:[%s1346_s0 + $0xc8] sm:$0xff]  ;;  %v58_v53 = vld [vmem:[%s1346_s0 + $0x140] sm:$0xff]  ;;  %v86_v57 = vpack.c.bf16 %v27_v50, %v26_v49  ;;  %v28_v61 = vld [vmem:[%s1346_s0 + $0x50] sm:$0xff] }
   0xe   :  { %v59_v54 = vld [vmem:[%s1346_s0 + $0x148] sm:$0xff]  ;;  %v74_v55 = vld [vmem:[%s1346_s0 + $0x1c0] sm:$0xff]  ;;  %v94_v58 = vpack.c.bf16 %v43_v52, %v42_v51  ;;  %v29_v62 = vld [vmem:[%s1346_s0 + $0x58] sm:$0xff] }
   0xf   :  { %v75_v56 = vld [vmem:[%s1346_s0 + $0x1c8] sm:$0xff]  ;;  %v102_v59 = vpack.c.bf16 %v59_v54, %v58_v53  ;;  %v44_v63 = vld [vmem:[%s1346_s0 + $0xd0] sm:$0xff]  ;;  %v45_v0 = vld [vmem:[%s1346_s0 + $0xd8] sm:$0xff]  ;;  %v87_v5 = vpack.c.bf16 %v29_v62, %v28_v61 }
  0x10   :  { %v110_v60 = vpack.c.bf16 %v75_v56, %v74_v55  ;;  %v60_v1 = vld [vmem:[%s1346_s0 + $0x150] sm:$0xff]  ;;  %v61_v2 = vld [vmem:[%s1346_s0 + $0x158] sm:$0xff]  ;;  %v95_v6 = vpack.c.bf16 %v45_v0, %v44_v63  ;;  %v30_v9 = vld [vmem:[%s1346_s0 + $0x60] sm:$0xff] }
  0x11   :  { %v76_v3 = vld [vmem:[%s1346_s0 + $0x1d0] sm:$0xff]  ;;  %v77_v4 = vld [vmem:[%s1346_s0 + $0x1d8] sm:$0xff]  ;;  %v103_v7 = vpack.c.bf16 %v61_v2, %v60_v1  ;;  %v31_v10 = vld [vmem:[%s1346_s0 + $0x68] sm:$0xff] }
  0x12   :  { %v111_v8 = vpack.c.bf16 %v77_v4, %v76_v3  ;;  %v46_v11 = vld [vmem:[%s1346_s0 + $0xe0] sm:$0xff]  ;;  %v47_v12 = vld [vmem:[%s1346_s0 + $0xe8] sm:$0xff]  ;;  %v88_v17 = vpack.c.bf16 %v31_v10, %v30_v9  ;;  %v64_v25 = vld [vmem:[%s1346_s0 + $0x170] sm:$0xff] }
  0x13   :  { %v62_v13 = vld [vmem:[%s1346_s0 + $0x160] sm:$0xff]  ;;  %v63_v14 = vld [vmem:[%s1346_s0 + $0x168] sm:$0xff]  ;;  %v96_v18 = vpack.c.bf16 %v47_v12, %v46_v11  ;;  %v65_v26 = vld [vmem:[%s1346_s0 + $0x178] sm:$0xff] }
  0x14   :  { %v78_v15 = vld [vmem:[%s1346_s0 + $0x1e0] sm:$0xff]  ;;  %v79_v16 = vld [vmem:[%s1346_s0 + $0x1e8] sm:$0xff]  ;;  %v104_v19 = vpack.c.bf16 %v63_v14, %v62_v13  ;;  %v80_v27 = vld [vmem:[%s1346_s0 + $0x1f0] sm:$0xff]  ;;  %v105_v31 = vpack.c.bf16 %v65_v26, %v64_v25 }
  0x15   :  { %662 = vmatmul.msk.bf16.gmra.mxu0 %vm122_vm0, %v83_v21  ;;  %v112_v20 = vpack.c.bf16 %v79_v16, %v78_v15  ;;  %v32_v21 = vld [vmem:[%s1346_s0 + $0x70] sm:$0xff]  ;;  %v81_v28 = vld [vmem:[%s1346_s0 + $0x1f8] sm:$0xff] }
  0x16   :  { %670 = vmatmul.msk.bf16.gmra.mxu1 %vm122_vm0, %v91_v22  ;;  %v33_v22 = vld [vmem:[%s1346_s0 + $0x78] sm:$0xff]  ;;  %v113_v32 = vpack.c.bf16 %v81_v28, %v80_v27 }
  0x17   :  { %678 = vmatmul.msk.bf16.gmra.mxu2 %vm122_vm0, %v99_v23  ;;  %v48_v23 = vld [vmem:[%s1346_s0 + $0xf0] sm:$0xff]  ;;  %v89_v29 = vpack.c.bf16 %v33_v22, %v32_v21 }
  0x18   :  { %686 = vmatmul.msk.bf16.gmra.mxu3 %vm122_vm0, %v107_v24  ;;  %v49_v24 = vld [vmem:[%s1346_s0 + $0xf8] sm:$0xff] }
  0x19   :  { %v97_v30 = vpack.c.bf16 %v49_v24, %v48_v23 }
  0x25   :  { %663 = vmatmul.msk.bf16.gmra.mxu0 %vm122_vm0, %v84_v33  ;;  %v954_v33 = vld [vmem:[%s1347_s2] ss:$0 sm:$0xff] }
  0x26   :  { %671 = vmatmul.msk.bf16.gmra.mxu1 %vm122_vm0, %v92_v34  ;;  %v959_v34 = vld [vmem:[%s1348_s3] ss:$0 sm:$0xff] }
  0x27   :  { %679 = vmatmul.msk.bf16.gmra.mxu2 %vm122_vm0, %v100_v35 }
  0x28   :  { %687 = vmatmul.msk.bf16.gmra.mxu3 %vm122_vm0, %v108_v36 }
  0x35   :  { %664 = vmatmul.msk.bf16.gmra.mxu0 %vm122_vm0, %v85_v45 }
  0x36   :  { %672 = vmatmul.msk.bf16.gmra.mxu1 %vm122_vm0, %v93_v46 }
  0x37   :  { %680 = vmatmul.msk.bf16.gmra.mxu2 %vm122_vm0, %v101_v47 }
  0x38   :  { %688 = vmatmul.msk.bf16.gmra.mxu3 %vm122_vm0, %v109_v48 }
  0x45   :  { %665 = vmatmul.msk.bf16.gmra.mxu0 %vm122_vm0, %v86_v57 }
  0x46   :  { %673 = vmatmul.msk.bf16.gmra.mxu1 %vm122_vm0, %v94_v58 }
  0x47   :  { %681 = vmatmul.msk.bf16.gmra.mxu2 %vm122_vm0, %v102_v59 }
  0x48   :  { %689 = vmatmul.msk.bf16.gmra.mxu3 %vm122_vm0, %v110_v60 }
  0x55   :  { %666 = vmatmul.msk.bf16.gmra.mxu0 %vm122_vm0, %v87_v5 }
  0x56   :  { %674 = vmatmul.msk.bf16.gmra.mxu1 %vm122_vm0, %v95_v6 }
  0x57   :  { %682 = vmatmul.msk.bf16.gmra.mxu2 %vm122_vm0, %v103_v7 }
  0x58   :  { %690 = vmatmul.msk.bf16.gmra.mxu3 %vm122_vm0, %v111_v8 }
  0x65   :  { %667 = vmatmul.msk.bf16.gmra.mxu0 %vm122_vm0, %v88_v17 }
  0x66   :  { %675 = vmatmul.msk.bf16.gmra.mxu1 %vm122_vm0, %v96_v18 }
  0x67   :  { %683 = vmatmul.msk.bf16.gmra.mxu2 %vm122_vm0, %v104_v19 }
  0x68   :  { %691 = vmatmul.msk.bf16.gmra.mxu3 %vm122_vm0, %v112_v20 }
  0x75   :  { %668 = vmatmul.msk.bf16.gmra.mxu0 %vm122_vm0, %v89_v29 }
  0x76   :  { %676 = vmatmul.msk.bf16.gmra.mxu1 %vm122_vm0, %v97_v30 }
  0x77   :  { %684 = vmatmul.msk.bf16.gmra.mxu2 %vm122_vm0, %v105_v31 }
  0x78   :  { %692 = vmatmul.msk.bf16.gmra.mxu3 %vm122_vm0, %v113_v32 }
  0x82   :  { %v228_v35 = vpop.f32.mrf.mxu0 }
  0x83   :  { %v268_v36 = vpop.f32.mrf.mxu1  ;;  %v392_v37 = vmul.f32 %v954_v33, %v228_v35 }
  0x84   :  { %v408_v38 = vmul.f32 %v954_v33, %v268_v36 }
  0x85   :  { %v460_v39 = vadd.f32 %v959_v34, %v392_v37 }
  0x86   :  { %v476_v40 = vadd.f32 %v959_v34, %v408_v38 }
  0x87   :  { %v524_v41 = vmax.f32 %v460_v39, 0.0 }
  0x88   :  { %v540_v42 = vmax.f32 %v476_v40, 0.0 }
  0x89   :  { %589 = vst.msk [vmem:[%s1349_s4] sm:$0xff] %vm588_vm1, %v524_v41 }
  0x8a   :  { %v308_v43 = vpop.f32.mrf.mxu2  ;;  %605 = vst.msk [vmem:[%s1349_s4 + $0x80] sm:$0xff] %vm588_vm1, %v540_v42  ;;  %v230_v47 = vpop.f32.mrf.mxu0 }
  0x8b   :  { %v348_v44 = vpop.f32.mrf.mxu3  ;;  %v424_v45 = vmul.f32 %v954_v33, %v308_v43  ;;  %v270_v48 = vpop.f32.mrf.mxu1  ;;  %v393_v49 = vmul.f32 %v954_v33, %v230_v47 }
  0x8c   :  { %v440_v46 = vmul.f32 %v954_v33, %v348_v44  ;;  %v409_v50 = vmul.f32 %v954_v33, %v270_v48 }
  0x8d   :  { %v492_v51 = vadd.f32 %v959_v34, %v424_v45  ;;  %v461_v53 = vadd.f32 %v959_v34, %v393_v49 }
  0x8e   :  { %v508_v52 = vadd.f32 %v959_v34, %v440_v46  ;;  %v477_v54 = vadd.f32 %v959_v34, %v409_v50 }
  0x8f   :  { %v556_v55 = vmax.f32 %v492_v51, 0.0  ;;  %v525_v57 = vmax.f32 %v461_v53, 0.0 }
  0x90   :  { %v572_v56 = vmax.f32 %v508_v52, 0.0  ;;  %v541_v58 = vmax.f32 %v477_v54, 0.0 }
  0x91   :  { %621 = vst.msk [vmem:[%s1349_s4 + $0x100] sm:$0xff] %vm588_vm1, %v556_v55 }
  0x92   :  { %637 = vst.msk [vmem:[%s1349_s4 + $0x180] sm:$0xff] %vm588_vm1, %v572_v56  ;;  %v310_v59 = vpop.f32.mrf.mxu2  ;;  %v233_v63 = vpop.f32.mrf.mxu0 }
  0x93   :  { %v350_v60 = vpop.f32.mrf.mxu3  ;;  %590 = vst.msk [vmem:[%s1349_s4 + $0x8] sm:$0xff] %vm588_vm1, %v525_v57  ;;  %v425_v61 = vmul.f32 %v954_v33, %v310_v59  ;;  %v273_v0 = vpop.f32.mrf.mxu1  ;;  %v394_v1 = vmul.f32 %v954_v33, %v233_v63 }
  0x94   :  { %v441_v62 = vmul.f32 %v954_v33, %v350_v60  ;;  %606 = vst.msk [vmem:[%s1349_s4 + $0x88] sm:$0xff] %vm588_vm1, %v541_v58  ;;  %v410_v2 = vmul.f32 %v954_v33, %v273_v0 }
  0x95   :  { %v493_v3 = vadd.f32 %v959_v34, %v425_v61  ;;  %v462_v5 = vadd.f32 %v959_v34, %v394_v1 }
  0x96   :  { %v509_v4 = vadd.f32 %v959_v34, %v441_v62  ;;  %v478_v6 = vadd.f32 %v959_v34, %v410_v2 }
  0x97   :  { %v557_v7 = vmax.f32 %v493_v3, 0.0  ;;  %v526_v9 = vmax.f32 %v462_v5, 0.0 }
  0x98   :  { %v573_v8 = vmax.f32 %v509_v4, 0.0  ;;  %v542_v10 = vmax.f32 %v478_v6, 0.0 }
  0x99   :  { %622 = vst.msk [vmem:[%s1349_s4 + $0x108] sm:$0xff] %vm588_vm1, %v557_v7 }
  0x9a   :  { %638 = vst.msk [vmem:[%s1349_s4 + $0x188] sm:$0xff] %vm588_vm1, %v573_v8  ;;  %v313_v11 = vpop.f32.mrf.mxu2  ;;  %v235_v15 = vpop.f32.mrf.mxu0 }
  0x9b   :  { %v353_v12 = vpop.f32.mrf.mxu3  ;;  %591 = vst.msk [vmem:[%s1349_s4 + $0x10] sm:$0xff] %vm588_vm1, %v526_v9  ;;  %v426_v13 = vmul.f32 %v954_v33, %v313_v11  ;;  %v275_v16 = vpop.f32.mrf.mxu1  ;;  %v395_v17 = vmul.f32 %v954_v33, %v235_v15 }
  0x9c   :  { %v442_v14 = vmul.f32 %v954_v33, %v353_v12  ;;  %607 = vst.msk [vmem:[%s1349_s4 + $0x90] sm:$0xff] %vm588_vm1, %v542_v10  ;;  %v411_v18 = vmul.f32 %v954_v33, %v275_v16 }
  0x9d   :  { %v494_v19 = vadd.f32 %v959_v34, %v426_v13  ;;  %v463_v21 = vadd.f32 %v959_v34, %v395_v17 }
  0x9e   :  { %v510_v20 = vadd.f32 %v959_v34, %v442_v14  ;;  %v479_v22 = vadd.f32 %v959_v34, %v411_v18 }
  0x9f   :  { %v558_v23 = vmax.f32 %v494_v19, 0.0  ;;  %v527_v25 = vmax.f32 %v463_v21, 0.0 }
  0xa0   :  { %v574_v24 = vmax.f32 %v510_v20, 0.0  ;;  %v543_v26 = vmax.f32 %v479_v22, 0.0 }
  0xa1   :  { %623 = vst.msk [vmem:[%s1349_s4 + $0x110] sm:$0xff] %vm588_vm1, %v558_v23 }
  0xa2   :  { %639 = vst.msk [vmem:[%s1349_s4 + $0x190] sm:$0xff] %vm588_vm1, %v574_v24  ;;  %v315_v27 = vpop.f32.mrf.mxu2  ;;  %v238_v31 = vpop.f32.mrf.mxu0 }
  0xa3   :  { %v355_v28 = vpop.f32.mrf.mxu3  ;;  %592 = vst.msk [vmem:[%s1349_s4 + $0x18] sm:$0xff] %vm588_vm1, %v527_v25  ;;  %v427_v29 = vmul.f32 %v954_v33, %v315_v27  ;;  %v278_v32 = vpop.f32.mrf.mxu1  ;;  %v396_v35 = vmul.f32 %v954_v33, %v238_v31 }
  0xa4   :  { %v443_v30 = vmul.f32 %v954_v33, %v355_v28  ;;  %608 = vst.msk [vmem:[%s1349_s4 + $0x98] sm:$0xff] %vm588_vm1, %v543_v26  ;;  %v412_v36 = vmul.f32 %v954_v33, %v278_v32 }
  0xa5   :  { %v495_v37 = vadd.f32 %v959_v34, %v427_v29  ;;  %v464_v39 = vadd.f32 %v959_v34, %v396_v35 }
  0xa6   :  { %v511_v38 = vadd.f32 %v959_v34, %v443_v30  ;;  %v480_v40 = vadd.f32 %v959_v34, %v412_v36 }
  0xa7   :  { %v559_v41 = vmax.f32 %v495_v37, 0.0  ;;  %v528_v43 = vmax.f32 %v464_v39, 0.0 }
  0xa8   :  { %v575_v42 = vmax.f32 %v511_v38, 0.0  ;;  %v544_v44 = vmax.f32 %v480_v40, 0.0 }
  0xa9   :  { %624 = vst.msk [vmem:[%s1349_s4 + $0x118] sm:$0xff] %vm588_vm1, %v559_v41 }
  0xaa   :  { %640 = vst.msk [vmem:[%s1349_s4 + $0x198] sm:$0xff] %vm588_vm1, %v575_v42  ;;  %v318_v45 = vpop.f32.mrf.mxu2  ;;  %v240_v49 = vpop.f32.mrf.mxu0 }
  0xab   :  { %v358_v46 = vpop.f32.mrf.mxu3  ;;  %593 = vst.msk [vmem:[%s1349_s4 + $0x20] sm:$0xff] %vm588_vm1, %v528_v43  ;;  %v428_v47 = vmul.f32 %v954_v33, %v318_v45  ;;  %v280_v50 = vpop.f32.mrf.mxu1  ;;  %v397_v51 = vmul.f32 %v954_v33, %v240_v49 }
  0xac   :  { %v444_v48 = vmul.f32 %v954_v33, %v358_v46  ;;  %609 = vst.msk [vmem:[%s1349_s4 + $0xa0] sm:$0xff] %vm588_vm1, %v544_v44  ;;  %v413_v52 = vmul.f32 %v954_v33, %v280_v50 }
  0xad   :  { %v496_v53 = vadd.f32 %v959_v34, %v428_v47  ;;  %v465_v55 = vadd.f32 %v959_v34, %v397_v51 }
  0xae   :  { %v512_v54 = vadd.f32 %v959_v34, %v444_v48  ;;  %v481_v56 = vadd.f32 %v959_v34, %v413_v52 }
  0xaf   :  { %v560_v57 = vmax.f32 %v496_v53, 0.0  ;;  %v529_v59 = vmax.f32 %v465_v55, 0.0 }
  0xb0   :  { %v576_v58 = vmax.f32 %v512_v54, 0.0  ;;  %v545_v60 = vmax.f32 %v481_v56, 0.0 }
  0xb1   :  { %625 = vst.msk [vmem:[%s1349_s4 + $0x120] sm:$0xff] %vm588_vm1, %v560_v57 }
  0xb2   :  { %641 = vst.msk [vmem:[%s1349_s4 + $0x1a0] sm:$0xff] %vm588_vm1, %v576_v58  ;;  %v320_v61 = vpop.f32.mrf.mxu2  ;;  %v243_v1 = vpop.f32.mrf.mxu0 }
  0xb3   :  { %v360_v62 = vpop.f32.mrf.mxu3  ;;  %594 = vst.msk [vmem:[%s1349_s4 + $0x28] sm:$0xff] %vm588_vm1, %v529_v59  ;;  %v429_v63 = vmul.f32 %v954_v33, %v320_v61  ;;  %v283_v2 = vpop.f32.mrf.mxu1  ;;  %v398_v3 = vmul.f32 %v954_v33, %v243_v1 }
  0xb4   :  { %v445_v0 = vmul.f32 %v954_v33, %v360_v62  ;;  %610 = vst.msk [vmem:[%s1349_s4 + $0xa8] sm:$0xff] %vm588_vm1, %v545_v60  ;;  %v414_v4 = vmul.f32 %v954_v33, %v283_v2 }
  0xb5   :  { %v497_v5 = vadd.f32 %v959_v34, %v429_v63  ;;  %v466_v7 = vadd.f32 %v959_v34, %v398_v3 }
  0xb6   :  { %v513_v6 = vadd.f32 %v959_v34, %v445_v0  ;;  %v482_v8 = vadd.f32 %v959_v34, %v414_v4 }
  0xb7   :  { %v561_v9 = vmax.f32 %v497_v5, 0.0  ;;  %v530_v11 = vmax.f32 %v466_v7, 0.0 }
  0xb8   :  { %v577_v10 = vmax.f32 %v513_v6, 0.0  ;;  %v546_v12 = vmax.f32 %v482_v8, 0.0 }
  0xb9   :  { %626 = vst.msk [vmem:[%s1349_s4 + $0x128] sm:$0xff] %vm588_vm1, %v561_v9 }
  0xba   :  { %642 = vst.msk [vmem:[%s1349_s4 + $0x1a8] sm:$0xff] %vm588_vm1, %v577_v10  ;;  %v323_v13 = vpop.f32.mrf.mxu2  ;;  %v245_v17 = vpop.f32.mrf.mxu0 }
  0xbb   :  { %v363_v14 = vpop.f32.mrf.mxu3  ;;  %595 = vst.msk [vmem:[%s1349_s4 + $0x30] sm:$0xff] %vm588_vm1, %v530_v11  ;;  %v430_v15 = vmul.f32 %v954_v33, %v323_v13  ;;  %v285_v18 = vpop.f32.mrf.mxu1  ;;  %v399_v19 = vmul.f32 %v954_v33, %v245_v17 }
  0xbc   :  { %v446_v16 = vmul.f32 %v954_v33, %v363_v14  ;;  %611 = vst.msk [vmem:[%s1349_s4 + $0xb0] sm:$0xff] %vm588_vm1, %v546_v12  ;;  %v415_v20 = vmul.f32 %v954_v33, %v285_v18 }
  0xbd   :  { %v498_v21 = vadd.f32 %v959_v34, %v430_v15  ;;  %v467_v23 = vadd.f32 %v959_v34, %v399_v19 }
  0xbe   :  { %v514_v22 = vadd.f32 %v959_v34, %v446_v16  ;;  %v483_v24 = vadd.f32 %v959_v34, %v415_v20 }
  0xbf   :  { %v562_v25 = vmax.f32 %v498_v21, 0.0  ;;  %v531_v27 = vmax.f32 %v467_v23, 0.0 }
  0xc0   :  { %v578_v26 = vmax.f32 %v514_v22, 0.0  ;;  %v547_v28 = vmax.f32 %v483_v24, 0.0 }
  0xc1   :  { %627 = vst.msk [vmem:[%s1349_s4 + $0x130] sm:$0xff] %vm588_vm1, %v562_v25 }
  0xc2   :  { %643 = vst.msk [vmem:[%s1349_s4 + $0x1b0] sm:$0xff] %vm588_vm1, %v578_v26  ;;  %v325_v29 = vpop.f32.mrf.mxu2  ;;  %v248_v35 = vpop.f32.mrf.mxu0 }
  0xc3   :  { %v365_v30 = vpop.f32.mrf.mxu3  ;;  %596 = vst.msk [vmem:[%s1349_s4 + $0x38] sm:$0xff] %vm588_vm1, %v531_v27  ;;  %v431_v31 = vmul.f32 %v954_v33, %v325_v29  ;;  %v288_v36 = vpop.f32.mrf.mxu1  ;;  %v400_v37 = vmul.f32 %v954_v33, %v248_v35 }
  0xc4   :  { %v447_v32 = vmul.f32 %v954_v33, %v365_v30  ;;  %612 = vst.msk [vmem:[%s1349_s4 + $0xb8] sm:$0xff] %vm588_vm1, %v547_v28  ;;  %v416_v38 = vmul.f32 %v954_v33, %v288_v36 }
  0xc5   :  { %v499_v39 = vadd.f32 %v959_v34, %v431_v31  ;;  %v468_v41 = vadd.f32 %v959_v34, %v400_v37 }
  0xc6   :  { %v515_v40 = vadd.f32 %v959_v34, %v447_v32  ;;  %v484_v42 = vadd.f32 %v959_v34, %v416_v38 }
  0xc7   :  { %v563_v43 = vmax.f32 %v499_v39, 0.0  ;;  %v532_v45 = vmax.f32 %v468_v41, 0.0 }
  0xc8   :  { %v579_v44 = vmax.f32 %v515_v40, 0.0  ;;  %v548_v46 = vmax.f32 %v484_v42, 0.0 }
  0xc9   :  { %628 = vst.msk [vmem:[%s1349_s4 + $0x138] sm:$0xff] %vm588_vm1, %v563_v43 }
  0xca   :  { %644 = vst.msk [vmem:[%s1349_s4 + $0x1b8] sm:$0xff] %vm588_vm1, %v579_v44  ;;  %v328_v47 = vpop.f32.mrf.mxu2  ;;  %v250_v51 = vpop.f32.mrf.mxu0 }
  0xcb   :  { %v368_v48 = vpop.f32.mrf.mxu3  ;;  %597 = vst.msk [vmem:[%s1349_s4 + $0x40] sm:$0xff] %vm588_vm1, %v532_v45  ;;  %v432_v49 = vmul.f32 %v954_v33, %v328_v47  ;;  %v290_v52 = vpop.f32.mrf.mxu1  ;;  %v401_v53 = vmul.f32 %v954_v33, %v250_v51 }
  0xcc   :  { %v448_v50 = vmul.f32 %v954_v33, %v368_v48  ;;  %613 = vst.msk [vmem:[%s1349_s4 + $0xc0] sm:$0xff] %vm588_vm1, %v548_v46  ;;  %v417_v54 = vmul.f32 %v954_v33, %v290_v52 }
  0xcd   :  { %v500_v55 = vadd.f32 %v959_v34, %v432_v49  ;;  %v469_v57 = vadd.f32 %v959_v34, %v401_v53 }
  0xce   :  { %v516_v56 = vadd.f32 %v959_v34, %v448_v50  ;;  %v485_v58 = vadd.f32 %v959_v34, %v417_v54 }
  0xcf   :  { %v564_v59 = vmax.f32 %v500_v55, 0.0  ;;  %v533_v61 = vmax.f32 %v469_v57, 0.0 }
  0xd0   :  { %v580_v60 = vmax.f32 %v516_v56, 0.0  ;;  %v549_v62 = vmax.f32 %v485_v58, 0.0 }
  0xd1   :  { %629 = vst.msk [vmem:[%s1349_s4 + $0x140] sm:$0xff] %vm588_vm1, %v564_v59 }
  0xd2   :  { %645 = vst.msk [vmem:[%s1349_s4 + $0x1c0] sm:$0xff] %vm588_vm1, %v580_v60  ;;  %v330_v63 = vpop.f32.mrf.mxu2  ;;  %v253_v3 = vpop.f32.mrf.mxu0 }
  0xd3   :  { %v370_v0 = vpop.f32.mrf.mxu3  ;;  %598 = vst.msk [vmem:[%s1349_s4 + $0x48] sm:$0xff] %vm588_vm1, %v533_v61  ;;  %v433_v1 = vmul.f32 %v954_v33, %v330_v63  ;;  %v293_v4 = vpop.f32.mrf.mxu1  ;;  %v402_v5 = vmul.f32 %v954_v33, %v253_v3 }
  0xd4   :  { %v449_v2 = vmul.f32 %v954_v33, %v370_v0  ;;  %614 = vst.msk [vmem:[%s1349_s4 + $0xc8] sm:$0xff] %vm588_vm1, %v549_v62  ;;  %v418_v6 = vmul.f32 %v954_v33, %v293_v4 }
  0xd5   :  { %v501_v7 = vadd.f32 %v959_v34, %v433_v1  ;;  %v470_v9 = vadd.f32 %v959_v34, %v402_v5 }
  0xd6   :  { %v517_v8 = vadd.f32 %v959_v34, %v449_v2  ;;  %v486_v10 = vadd.f32 %v959_v34, %v418_v6 }
  0xd7   :  { %v565_v11 = vmax.f32 %v501_v7, 0.0  ;;  %v534_v13 = vmax.f32 %v470_v9, 0.0 }
  0xd8   :  { %v581_v12 = vmax.f32 %v517_v8, 0.0  ;;  %v550_v14 = vmax.f32 %v486_v10, 0.0 }
  0xd9   :  { %630 = vst.msk [vmem:[%s1349_s4 + $0x148] sm:$0xff] %vm588_vm1, %v565_v11 }
  0xda   :  { %646 = vst.msk [vmem:[%s1349_s4 + $0x1c8] sm:$0xff] %vm588_vm1, %v581_v12  ;;  %v333_v15 = vpop.f32.mrf.mxu2  ;;  %v255_v19 = vpop.f32.mrf.mxu0 }
  0xdb   :  { %v373_v16 = vpop.f32.mrf.mxu3  ;;  %599 = vst.msk [vmem:[%s1349_s4 + $0x50] sm:$0xff] %vm588_vm1, %v534_v13  ;;  %v434_v17 = vmul.f32 %v954_v33, %v333_v15  ;;  %v295_v20 = vpop.f32.mrf.mxu1  ;;  %v403_v21 = vmul.f32 %v954_v33, %v255_v19 }
  0xdc   :  { %v450_v18 = vmul.f32 %v954_v33, %v373_v16  ;;  %615 = vst.msk [vmem:[%s1349_s4 + $0xd0] sm:$0xff] %vm588_vm1, %v550_v14  ;;  %v419_v22 = vmul.f32 %v954_v33, %v295_v20 }
  0xdd   :  { %v502_v23 = vadd.f32 %v959_v34, %v434_v17  ;;  %v471_v25 = vadd.f32 %v959_v34, %v403_v21 }
  0xde   :  { %v518_v24 = vadd.f32 %v959_v34, %v450_v18  ;;  %v487_v26 = vadd.f32 %v959_v34, %v419_v22 }
  0xdf   :  { %v566_v27 = vmax.f32 %v502_v23, 0.0  ;;  %v535_v29 = vmax.f32 %v471_v25, 0.0 }
  0xe0   :  { %v582_v28 = vmax.f32 %v518_v24, 0.0  ;;  %v551_v30 = vmax.f32 %v487_v26, 0.0 }
  0xe1   :  { %631 = vst.msk [vmem:[%s1349_s4 + $0x150] sm:$0xff] %vm588_vm1, %v566_v27 }
  0xe2   :  { %647 = vst.msk [vmem:[%s1349_s4 + $0x1d0] sm:$0xff] %vm588_vm1, %v582_v28  ;;  %v335_v31 = vpop.f32.mrf.mxu2  ;;  %v258_v37 = vpop.f32.mrf.mxu0 }
  0xe3   :  { %v375_v32 = vpop.f32.mrf.mxu3  ;;  %600 = vst.msk [vmem:[%s1349_s4 + $0x58] sm:$0xff] %vm588_vm1, %v535_v29  ;;  %v435_v35 = vmul.f32 %v954_v33, %v335_v31  ;;  %v298_v38 = vpop.f32.mrf.mxu1  ;;  %v404_v39 = vmul.f32 %v954_v33, %v258_v37 }
  0xe4   :  { %v451_v36 = vmul.f32 %v954_v33, %v375_v32  ;;  %616 = vst.msk [vmem:[%s1349_s4 + $0xd8] sm:$0xff] %vm588_vm1, %v551_v30  ;;  %v420_v40 = vmul.f32 %v954_v33, %v298_v38 }
  0xe5   :  { %v503_v41 = vadd.f32 %v959_v34, %v435_v35  ;;  %v472_v43 = vadd.f32 %v959_v34, %v404_v39 }
  0xe6   :  { %v519_v42 = vadd.f32 %v959_v34, %v451_v36  ;;  %v488_v44 = vadd.f32 %v959_v34, %v420_v40 }
  0xe7   :  { %v567_v45 = vmax.f32 %v503_v41, 0.0  ;;  %v536_v47 = vmax.f32 %v472_v43, 0.0 }
  0xe8   :  { %v583_v46 = vmax.f32 %v519_v42, 0.0  ;;  %v552_v48 = vmax.f32 %v488_v44, 0.0 }
  0xe9   :  { %632 = vst.msk [vmem:[%s1349_s4 + $0x158] sm:$0xff] %vm588_vm1, %v567_v45 }
  0xea   :  { %648 = vst.msk [vmem:[%s1349_s4 + $0x1d8] sm:$0xff] %vm588_vm1, %v583_v46  ;;  %v338_v49 = vpop.f32.mrf.mxu2  ;;  %v260_v53 = vpop.f32.mrf.mxu0 }
  0xeb   :  { %v378_v50 = vpop.f32.mrf.mxu3  ;;  %601 = vst.msk [vmem:[%s1349_s4 + $0x60] sm:$0xff] %vm588_vm1, %v536_v47  ;;  %v436_v51 = vmul.f32 %v954_v33, %v338_v49  ;;  %v300_v54 = vpop.f32.mrf.mxu1  ;;  %v405_v55 = vmul.f32 %v954_v33, %v260_v53 }
  0xec   :  { %v452_v52 = vmul.f32 %v954_v33, %v378_v50  ;;  %617 = vst.msk [vmem:[%s1349_s4 + $0xe0] sm:$0xff] %vm588_vm1, %v552_v48  ;;  %v421_v56 = vmul.f32 %v954_v33, %v300_v54 }
  0xed   :  { %v504_v57 = vadd.f32 %v959_v34, %v436_v51  ;;  %v473_v59 = vadd.f32 %v959_v34, %v405_v55 }
  0xee   :  { %v520_v58 = vadd.f32 %v959_v34, %v452_v52  ;;  %v489_v60 = vadd.f32 %v959_v34, %v421_v56 }
  0xef   :  { %v568_v61 = vmax.f32 %v504_v57, 0.0  ;;  %v537_v63 = vmax.f32 %v473_v59, 0.0 }
  0xf0   :  { %v584_v62 = vmax.f32 %v520_v58, 0.0  ;;  %v553_v0 = vmax.f32 %v489_v60, 0.0 }
  0xf1   :  { %633 = vst.msk [vmem:[%s1349_s4 + $0x160] sm:$0xff] %vm588_vm1, %v568_v61 }
  0xf2   :  { %649 = vst.msk [vmem:[%s1349_s4 + $0x1e0] sm:$0xff] %vm588_vm1, %v584_v62  ;;  %v340_v1 = vpop.f32.mrf.mxu2  ;;  %v263_v5 = vpop.f32.mrf.mxu0 }
  0xf3   :  { %v380_v2 = vpop.f32.mrf.mxu3  ;;  %602 = vst.msk [vmem:[%s1349_s4 + $0x68] sm:$0xff] %vm588_vm1, %v537_v63  ;;  %v437_v3 = vmul.f32 %v954_v33, %v340_v1  ;;  %v303_v6 = vpop.f32.mrf.mxu1  ;;  %v406_v7 = vmul.f32 %v954_v33, %v263_v5 }
  0xf4   :  { %v453_v4 = vmul.f32 %v954_v33, %v380_v2  ;;  %618 = vst.msk [vmem:[%s1349_s4 + $0xe8] sm:$0xff] %vm588_vm1, %v553_v0  ;;  %v422_v8 = vmul.f32 %v954_v33, %v303_v6 }
  0xf5   :  { %v505_v9 = vadd.f32 %v959_v34, %v437_v3  ;;  %v474_v11 = vadd.f32 %v959_v34, %v406_v7 }
  0xf6   :  { %v521_v10 = vadd.f32 %v959_v34, %v453_v4  ;;  %v490_v12 = vadd.f32 %v959_v34, %v422_v8 }
  0xf7   :  { %v569_v13 = vmax.f32 %v505_v9, 0.0  ;;  %v538_v15 = vmax.f32 %v474_v11, 0.0 }
  0xf8   :  { %v585_v14 = vmax.f32 %v521_v10, 0.0  ;;  %v554_v16 = vmax.f32 %v490_v12, 0.0 }
  0xf9   :  { %634 = vst.msk [vmem:[%s1349_s4 + $0x168] sm:$0xff] %vm588_vm1, %v569_v13 }
  0xfa   :  { %650 = vst.msk [vmem:[%s1349_s4 + $0x1e8] sm:$0xff] %vm588_vm1, %v585_v14  ;;  %v343_v17 = vpop.f32.mrf.mxu2  ;;  %v265_v21 = vpop.f32.mrf.mxu0 }
  0xfb   :  { %v383_v18 = vpop.f32.mrf.mxu3  ;;  %603 = vst.msk [vmem:[%s1349_s4 + $0x70] sm:$0xff] %vm588_vm1, %v538_v15  ;;  %v438_v19 = vmul.f32 %v954_v33, %v343_v17  ;;  %v305_v22 = vpop.f32.mrf.mxu1  ;;  %v407_v23 = vmul.f32 %v954_v33, %v265_v21 }
  0xfc   :  { %v454_v20 = vmul.f32 %v954_v33, %v383_v18  ;;  %619 = vst.msk [vmem:[%s1349_s4 + $0xf0] sm:$0xff] %vm588_vm1, %v554_v16  ;;  %v423_v24 = vmul.f32 %v954_v33, %v305_v22 }
  0xfd   :  { %v506_v25 = vadd.f32 %v959_v34, %v438_v19  ;;  %v475_v27 = vadd.f32 %v959_v34, %v407_v23 }
  0xfe   :  { %v522_v26 = vadd.f32 %v959_v34, %v454_v20  ;;  %v491_v28 = vadd.f32 %v959_v34, %v423_v24 }
  0xff   :  { %v570_v29 = vmax.f32 %v506_v25, 0.0  ;;  %v539_v31 = vmax.f32 %v475_v27, 0.0 }
 0x100   :  { %v586_v30 = vmax.f32 %v522_v26, 0.0  ;;  %v555_v32 = vmax.f32 %v491_v28, 0.0 }
 0x101   :  { %635 = vst.msk [vmem:[%s1349_s4 + $0x170] sm:$0xff] %vm588_vm1, %v570_v29 }
 0x102   :  { %651 = vst.msk [vmem:[%s1349_s4 + $0x1f0] sm:$0xff] %vm588_vm1, %v586_v30  ;;  %v345_v35 = vpop.f32.mrf.mxu2 }
 0x103   :  { %v385_v36 = vpop.f32.mrf.mxu3  ;;  %604 = vst.msk [vmem:[%s1349_s4 + $0x78] sm:$0xff] %vm588_vm1, %v539_v31  ;;  %v439_v37 = vmul.f32 %v954_v33, %v345_v35 }
 0x104   :  { %v455_v38 = vmul.f32 %v954_v33, %v385_v36  ;;  %620 = vst.msk [vmem:[%s1349_s4 + $0xf8] sm:$0xff] %vm588_vm1, %v555_v32 }
 0x105   :  { %v507_v39 = vadd.f32 %v959_v34, %v439_v37 }
 0x106   :  { %v523_v40 = vadd.f32 %v959_v34, %v455_v38 }
 0x107   :  { %v571_v41 = vmax.f32 %v507_v39, 0.0 }
 0x108   :  { %v587_v42 = vmax.f32 %v523_v40, 0.0 }
 0x109   :  { %636 = vst.msk [vmem:[%s1349_s4 + $0x178] sm:$0xff] %vm588_vm1, %v571_v41 }
 0x10a   :  { %652 = vst.msk [vmem:[%s1349_s4 + $0x1f8] sm:$0xff] %vm588_vm1, %v587_v42 }

// kernel: inception_block.6
= control target key start
LH: loop header
LB: loop body
LE: loop exit
PB: predicated region body
PF: predicated region fallthrough
CT: control target
= control target key end

     0   :  { %s1306_s15 = smov 0   ;;  %s1308_s16 = smov 0   ;;  %s1626_s0 = inlined_call_operand.vmem [shape: f32[2,6,10,10,4], index: 0, kind: input, shape index: {}]   ;;  %s1627_s1 = inlined_call_operand.vmem [shape: bf16[3,3,3,4,8], index: 1, kind: input, shape index: {}]   ;;  %s1628_s2 = inlined_call_operand.vmem [shape: f32[1,8], index: 2, kind: input, shape index: {}]   ;;  %s1629_s3 = inlined_call_operand.vmem [shape: f32[1,8], index: 3, kind: input, shape index: {}]   ;;  %s1630_s4 = inlined_call_operand.vmem [shape: f32[2,4,64,8], index: 4, kind: output, shape index: {}]  }
   0x1   :  { %s1310_s17 = smov 0   ;;  %s1312_s18 = smov 0  }
   0x2   :  { %s1314_s19 = smov 0   ;;  %s1316_s20 = smov 0  }
   0x3   :  { %s1318_s21 = smov 0  }
   0x4 LB: > { %s26_s22 = sadd.s32 1, %s1266_s18  ;;  %s29_s23 = sadd.s32 1, %s1270_s19  ;;  %s1278_s21 = sphi %s1318_s21, %s14_s21   ;;  %s1274_s20 = sphi %s1316_s20, %s1638_s20   ;;  %s1270_s19 = sphi %s1314_s19, %s1637_s19   ;;  %s1266_s18 = sphi %s1312_s18, %s1636_s18   ;;  %s1262_s17 = sphi %s1310_s17, %s1635_s17   ;;  %s1258_s16 = sphi %s1308_s16, %s1634_s16   ;;  %s1254_s15 = sphi %s1306_s15, %s1633_s15  }
   0x5   : > { %p27_p0 = scmp.ge.s32.totalorder %s26_s22, 3  ;;  %p1057_p1 = scmp.ge.s32.totalorder %s1278_s21, 1 }
   0x6   : > { %p203_p2 = scmp.lt.s32.totalorder %s1278_s21, 25  ;;  %s33_s24 = sadd.s32 1, %s1274_s20 }
   0x7   : > { %s1640_s22 = smov (%p27_p0, %s26_s22), 0  ;;  %s1642_s23 = smov (!%p27_p0, %s29_s23), %s1270_s19 }
   0x8   : > { %p204_p3 = pnand %p1057_p1, %p203_p2  ;;  %p31_p4 = scmp.ge.s32.totalorder %s1642_s23, 4 }
   0x9   : > { %s243_s25 = sadd.s32 (!%p204_p3), %s1254_s15, %s1258_s16  ;;  %p244_p6 = scmp.lt.s32.totalorder (!%p204_p3), %s1262_s17, 1 }
   0xa   : > { %s1644_s23 = smov (%p31_p4, %s1642_s23), 0  ;;  %s1646_s24 = smov (!%p31_p4, %s33_s24), %s1274_s20 }
   0xb   : > { %p35_p5 = scmp.ge.s32.totalorder %s1646_s24, 2  ;;  %207 = sbr.rel (%p204_p3) target bundleno = 333 (0x14d), region = 36 }
   0xc   : > { %p246_p7 = scmp.lt.s32.totalorder (!%p204_p3), %s243_s25, 5  ;;  %p254_p8 = scmp.lt.s32.totalorder (!%p204_p3), %s1254_s15, 2 }
   0xd   : > { %s1648_s24 = smov (%p35_p5, %s1646_s24), 0  ;;  %p261_p9 = scmp.lt.s32.totalorder (!%p204_p3), %s1258_s16, 3 }
   0xe   : > { %1631 = sst [smem:[#allocation3_spill]] %s1648_s24  ;;  %p1063_p10 = scmp.ne.s32.totalorder (!%p204_p3), %s1254_s15, 0 }
  0x10   : > { %s1650_s17 = smov (!%p244_p6, %s1262_s17), 1  ;;  %s1652_s25 = smov (!%p246_p7, %s243_s25), 5 }
  0x11   : > { %s1163_s26 = smul.u32 120, %s1650_s17  ;;  %s1061_s12 = sshll.u32 %s1650_s17, 5 }
  0x12   : > { %s1162_s27 = smul.u32 20, %s1652_s25  ;;  %s1654_s16 = smov (!%p261_p9, %s1258_s16), 3 }
  0x13   : > { %s255_s28 = scalar_select %p254_p8, %s1254_s15, 2 }
  0x14   : > { %s250_s29 = sadd.s32 %s1163_s26, %s1162_s27  ;;  %s1060_s13 = sshll.u32 %s1654_s16, 3 }
  0x15   : > { %s1058_s30 = sshll.u32 %s250_s29, 3  ;;  %s1164_s5 = smul.u32 18, %s255_s28 }
  0x16   : > { %s1360_s8 = scalar_lea.vmem %s1626_s0, %s1058_s30  ;;  %s265_s14 = sadd.s32 %s1061_s12, %s1060_s13 }
  0x17   : > { %s1365_s11 = scalar_lea.vmem %s1627_s1, %s1164_s5  ;;  %s1062_s25 = sshll.u32 %s265_s14, 3 }
  0x18   : > { %s1371_s27 = scalar_lea.vmem %s1630_s4, %s1062_s25  ;;  %272 = sbr.rel (%p1063_p10) target bundleno = 38 (0x26), region = 40 }
  0x1d   : > { %vm273_vm0 = vcmask 64512   ;;  %v1280_v0 = vmov 0.0  }
  0x1e   : > { %274 = vst.msk [vmem:[#allocation2] sm:$0xff] %vm273_vm0, %v1280_v0 }
  0x1f   : > { %275 = vst.msk [vmem:[#allocation2 + $0x8] sm:$0xff] %vm273_vm0, %v1280_v0 }
  0x20   : > { %276 = vst.msk [vmem:[#allocation2 + $0x10] sm:$0xff] %vm273_vm0, %v1280_v0 }
  0x21   : > { %277 = vst.msk [vmem:[#allocation2 + $0x18] sm:$0xff] %vm273_vm0, %v1280_v0 }
  0x22   : > { %278 = vst.msk [vmem:[#allocation2 + $0x20] sm:$0xff] %vm273_vm0, %v1280_v0 }
  0x23   : > { %279 = vst.msk [vmem:[#allocation2 + $0x28] sm:$0xff] %vm273_vm0, %v1280_v0 }
  0x24   : > { %280 = vst.msk [vmem:[#allocation2 + $0x30] sm:$0xff] %vm273_vm0, %v1280_v0 }
  0x25   : > { %281 = vst.msk [vmem:[#allocation2 + $0x38] sm:$0xff] %vm273_vm0, %v1280_v0 }
  0x26 PF: > { %v302_v1 = vld [vmem:[%s1365_s11] sm:$0x3]  ;;  %vm316_vm1 = vcmask 1041408   ;;  %v1377_v3 = vld [vmem:[%s1360_s8 + $0x30] sm:$0xff]  ;;  %vm303_vm2 = vcmask 31744   ;;  %v423_v33 = vld [vmem:[%s1360_s8 + $0x2] sm:$0xff] }
  0x27   : > { %v292_v2 = vld [vmem:[%s1360_s8 + $0x20] sm:$0xff]  ;;  %v318_v4 = vsel %vm316_vm1, %v302_v1, 0  ;;  %v1387_v7 = vld [vmem:[%s1360_s8 + $0x50] sm:$0xff]  ;;  %v1099_v21 = vld [vmem:[%s1365_s11 + $0x8] sm:$0x3]  ;;  %vm887_vm3 = vcmask 64512  }
  0x28   : > { %v1381_v5 = vpack.c.bf16 %v1377_v3, %v292_v2  ;;  %v1384_v6 = vld [vmem:[%s1360_s8 + $0x40] sm:$0xff]  ;;  %1159 = vmatpush.bf16.msra.mxu1 %v318_v4  ;;  %1160 = vmatpush.bf16.msra.mxu2 %v318_v4  ;;  %v1397_v10 = vld [vmem:[%s1360_s8 + $0x70] sm:$0xff]  ;;  %v583_v22 = vsel %vm316_vm1, %v1099_v21, 0  ;;  %v1125_v23 = vld [vmem:[%s1365_s11 + $0xc] sm:$0x3]  ;;  %p1156_p11 = scmp.ne.s32.totalorder %s1254_s15, 2 }
  0x29   : > { %v1390_v8 = vld [vmem:[%s1360_s8 + $0x60] sm:$0xff]  ;;  %v1394_v9 = vpack.c.bf16 %v1387_v7, %v1384_v6  ;;  %1161 = vmatpush.bf16.msra.mxu3 %v318_v4  ;;  %327 = vmatpush.bf16.msra.mxu0 %v318_v4  ;;  %v291_v15 = vld [vmem:[%s1360_s8 + $0x10] sm:$0xff]  ;;  %v716_v24 = vsel %vm316_vm1, %v1125_v23, 0  ;;  %v1138_v25 = vld [vmem:[%s1365_s11 + $0xe] sm:$0x3]  ;;  %v499_v46 = vpack.c.bf16 %v1384_v6, %v1377_v3 }
  0x2a   : > { %v1073_v11 = vld [vmem:[%s1365_s11 + $0x4] sm:$0x3]  ;;  %v1403_v13 = vpack.c.bf16 %v1397_v10, %v1390_v8  ;;  %v1086_v16 = vld [vmem:[%s1365_s11 + $0x6] sm:$0x3]  ;;  %v1068_v17 = vld [vmem:[%s1365_s11 + $0x2] sm:$0x3]  ;;  %v498_v38 = vpack.c.bf16 %v292_v2, %v291_v15  ;;  %v500_v54 = vpack.c.bf16 %v1390_v8, %v1387_v7 }
  0x2b   : > { %v290_v12 = vld [vmem:[%s1360_s8] sm:$0xff]  ;;  %v450_v14 = vsel %vm316_vm1, %v1073_v11, 0  ;;  %v517_v19 = vsel %vm316_vm1, %v1086_v16, 0  ;;  %v384_v20 = vsel %vm316_vm1, %v1068_v17, 0  ;;  %1065 = vmatmul.msk.bf16.vlgmr.msra.gmra.mxu1 %vm303_vm2, %v1381_v5  ;;  %1066 = vmatmul.msk.bf16.vlgmr.msra.gmra.mxu2 %vm303_vm2, %v1394_v9  ;;  %v1112_v26 = vld [vmem:[%s1365_s11 + $0xa] sm:$0x3] }
  0x2c   : > { %459 = vmatpush.bf16.msrb.mxu2 %v450_v14  ;;  %v298_v18 = vpack.c.bf16 %v291_v15, %v290_v12  ;;  %1067 = vmatmul.msk.bf16.vlgmr.msra.gmra.mxu3 %vm303_vm2, %v1403_v13  ;;  %v782_v27 = vsel %vm316_vm1, %v1138_v25, 0  ;;  %v649_v28 = vsel %vm316_vm1, %v1112_v26, 0  ;;  %v1151_v29 = vld [vmem:[%s1365_s11 + $0x10] sm:$0x3]  ;;  %v357_v31 = vld [vmem:[%s1360_s8 + $0x1] sm:$0xff]  ;;  %v424_v34 = vld [vmem:[%s1360_s8 + $0x12] sm:$0xff] }
  0x2d   : > { %526 = vmatpush.bf16.msrb.mxu3 %v517_v19  ;;  %393 = vmatpush.bf16.msrb.mxu1 %v384_v20  ;;  %v848_v30 = vsel %vm316_vm1, %v1151_v29, 0  ;;  %v358_v32 = vld [vmem:[%s1360_s8 + $0x11] sm:$0xff]  ;;  %v1092_v35 = vld [vmem:[%s1360_s8 + $0x21] sm:$0xff]  ;;  %v431_v37 = vpack.c.bf16 %v424_v34, %v423_v33 }
  0x2e   : > { %1064 = vmatmul.msk.bf16.vlgmr.msra.gmra.mxu0 %vm303_vm2, %v298_v18  ;;  %v365_v36 = vpack.c.bf16 %v358_v32, %v357_v31  ;;  %v564_v39 = vpack.c.bf16 %v1092_v35, %v358_v32  ;;  %v360_v40 = vld [vmem:[%s1360_s8 + $0x31] sm:$0xff]  ;;  %v425_v41 = vld [vmem:[%s1360_s8 + $0x22] sm:$0xff] }
  0x2f   : > { %592 = vmatpush.bf16.msrb.mxu0 %v583_v22  ;;  %v426_v42 = vld [vmem:[%s1360_s8 + $0x32] sm:$0xff]  ;;  %v1094_v43 = vld [vmem:[%s1360_s8 + $0x41] sm:$0xff]  ;;  %v366_v44 = vpack.c.bf16 %v360_v40, %v1092_v35  ;;  %v630_v1 = vpack.c.bf16 %v425_v41, %v424_v34 }
  0x30   : > { %725 = vmatpush.bf16.msra.mxu2 %v716_v24  ;;  %v432_v45 = vpack.c.bf16 %v426_v42, %v425_v41  ;;  %v565_v47 = vpack.c.bf16 %v1094_v43, %v360_v40  ;;  %v362_v48 = vld [vmem:[%s1360_s8 + $0x51] sm:$0xff]  ;;  %v427_v49 = vld [vmem:[%s1360_s8 + $0x42] sm:$0xff] }
  0x31   : > { %791 = vmatpush.bf16.msra.mxu3 %v782_v27  ;;  %658 = vmatpush.bf16.msra.mxu1 %v649_v28  ;;  %v428_v50 = vld [vmem:[%s1360_s8 + $0x52] sm:$0xff]  ;;  %v1096_v51 = vld [vmem:[%s1360_s8 + $0x61] sm:$0xff]  ;;  %v367_v52 = vpack.c.bf16 %v362_v48, %v1094_v43  ;;  %v631_v2 = vpack.c.bf16 %v427_v49, %v426_v42 }
  0x32   : > { %v433_v53 = vpack.c.bf16 %v428_v50, %v427_v49  ;;  %v566_v55 = vpack.c.bf16 %v1096_v51, %v362_v48  ;;  %v364_v56 = vld [vmem:[%s1360_s8 + $0x71] sm:$0xff]  ;;  %v429_v57 = vld [vmem:[%s1360_s8 + $0x62] sm:$0xff] }
  0x33   : > { %857 = vmatpush.bf16.msra.mxu0 %v848_v30  ;;  %v430_v58 = vld [vmem:[%s1360_s8 + $0x72] sm:$0xff]  ;;  %v1085_v59 = vld [vmem:[%s1360_s8 + $0x80] sm:$0xff]  ;;  %v368_v61 = vpack.c.bf16 %v364_v56, %v1096_v51  ;;  %v632_v3 = vpack.c.bf16 %v429_v57, %v428_v50 }
  0x34   : > { %v1098_v60 = vld [vmem:[%s1360_s8 + $0x81] sm:$0xff]  ;;  %v434_v62 = vpack.c.bf16 %v430_v58, %v429_v57  ;;  %v501_v63 = vpack.c.bf16 %v1085_v59, %v1397_v10  ;;  %v1137_v6 = vld [vmem:[%s1360_s8 + $0x91] sm:$0xff] }
  0x35   : > { %v567_v0 = vpack.c.bf16 %v1098_v60, %v364_v56  ;;  %v1111_v4 = vld [vmem:[%s1360_s8 + $0x82] sm:$0xff]  ;;  %v1150_v7 = vld [vmem:[%s1360_s8 + $0x92] sm:$0xff]  ;;  %v766_v11 = vpack.c.bf16 %v1137_v6, %v1098_v60 }
  0x36   : > { %v633_v8 = vpack.c.bf16 %v1111_v4, %v430_v58  ;;  %v832_v12 = vpack.c.bf16 %v1150_v7, %v1111_v4 }
  0x3b   : > { %1069 = vmatmul.msk.bf16.vlgmr.msrb.gmra.mxu1 %vm303_vm2, %v365_v36  ;;  %1074 = vmatmul.msk.bf16.vlgmr.msrb.gmra.mxu2 %vm303_vm2, %v431_v37 }
  0x3c   : > { %1087 = vmatmul.msk.bf16.vlgmr.msrb.gmra.mxu3 %vm303_vm2, %v498_v38 }
  0x3e   : > { %1100 = vmatmul.msk.bf16.vlgmr.msrb.gmra.mxu0 %vm303_vm2, %v564_v39 }
  0x4b   : > { %1070 = vmatmul.msk.bf16.gmra.mxu1 %vm303_vm2, %v366_v44  ;;  %1075 = vmatmul.msk.bf16.gmra.mxu2 %vm303_vm2, %v432_v45 }
  0x4c   : > { %1088 = vmatmul.msk.bf16.gmra.mxu3 %vm303_vm2, %v499_v46  ;;  %v282_v46 = vld [vmem:[#allocation2] sm:$0xff] }
  0x4e   : > { %1101 = vmatmul.msk.bf16.gmra.mxu0 %vm303_vm2, %v565_v47 }
  0x5b   : > { %1071 = vmatmul.msk.bf16.gmra.mxu1 %vm303_vm2, %v367_v52  ;;  %1076 = vmatmul.msk.bf16.gmra.mxu2 %vm303_vm2, %v433_v53 }
  0x5c   : > { %1089 = vmatmul.msk.bf16.gmra.mxu3 %vm303_vm2, %v500_v54  ;;  %v283_v54 = vld [vmem:[#allocation2 + $0x8] sm:$0xff] }
  0x5e   : > { %1102 = vmatmul.msk.bf16.gmra.mxu0 %vm303_vm2, %v566_v55 }
  0x6b   : > { %1072 = vmatmul.msk.bf16.gmra.mxu1 %vm303_vm2, %v368_v61  ;;  %1077 = vmatmul.msk.bf16.gmra.mxu2 %vm303_vm2, %v434_v62 }
  0x6c   : > { %1090 = vmatmul.msk.bf16.gmra.mxu3 %vm303_vm2, %v501_v63 }
  0x6e   : > { %1103 = vmatmul.msk.bf16.gmra.mxu0 %vm303_vm2, %v567_v0  ;;  %v284_v0 = vld [vmem:[#allocation2 + $0x10] sm:$0xff] }
  0x7b   : > { %1113 = vmatmul.msk.bf16.vlgmr.msra.gmra.mxu1 %vm303_vm2, %v630_v1  ;;  %1126 = vmatmul.msk.bf16.vlgmr.msra.gmra.mxu2 %vm303_vm2, %v1381_v5  ;;  %v1124_v5 = vld [vmem:[%s1360_s8 + $0x90] sm:$0xff] }
  0x7c   : > { %1139 = vmatmul.msk.bf16.vlgmr.msra.gmra.mxu3 %vm303_vm2, %v366_v44 }
  0x7e   : > { %1152 = vmatmul.msk.bf16.vlgmr.msra.gmra.mxu0 %vm303_vm2, %v432_v45 }
  0x8b   : > { %1114 = vmatmul.msk.bf16.gmra.mxu1 %vm303_vm2, %v631_v2  ;;  %1127 = vmatmul.msk.bf16.gmra.mxu2 %vm303_vm2, %v1394_v9  ;;  %v700_v9 = vpack.c.bf16 %v1124_v5, %v1085_v59 }
  0x8c   : > { %1140 = vmatmul.msk.bf16.gmra.mxu3 %vm303_vm2, %v367_v52 }
  0x8e   : > { %1153 = vmatmul.msk.bf16.gmra.mxu0 %vm303_vm2, %v433_v53 }
  0x9b   : > { %1115 = vmatmul.msk.bf16.gmra.mxu1 %vm303_vm2, %v632_v3  ;;  %1128 = vmatmul.msk.bf16.gmra.mxu2 %vm303_vm2, %v1403_v13 }
  0x9c   : > { %1141 = vmatmul.msk.bf16.gmra.mxu3 %vm303_vm2, %v368_v61 }
  0x9e   : > { %1154 = vmatmul.msk.bf16.gmra.mxu0 %vm303_vm2, %v434_v62 }
  0xa8   : > { %v334_v10 = vpop.f32.mrf.mxu1 }
  0xa9   : > { %v351_v3 = vadd.f32 %v334_v10, %v284_v0  ;;  %v287_v0 = vld [vmem:[#allocation2 + $0x28] sm:$0xff] }
  0xab   : > { %v329_v14 = vpop.f32.mrf.mxu0  ;;  %1116 = vmatmul.msk.bf16.gmra.mxu1 %vm303_vm2, %v633_v8  ;;  %1129 = vmatmul.msk.bf16.gmra.mxu2 %vm303_vm2, %v700_v9 }
  0xac   : > { %1142 = vmatmul.msk.bf16.gmra.mxu3 %vm303_vm2, %v766_v11  ;;  %v349_v48 = vadd.f32 %v329_v14, %v282_v46 }
  0xae   : > { %1155 = vmatmul.msk.bf16.gmra.mxu0 %vm303_vm2, %v832_v12  ;;  %v1490_v13 = vpop.f32.mrf.mxu2 }
  0xaf   : > { %v1492_v15 = vpop.f32.mrf.mxu3 }
  0xb0   : > { %v1494_v16 = vpop.f32.mrf.mxu1 }
  0xb3   : > { %v331_v17 = vpop.f32.mrf.mxu0 }
  0xb4   : > { %v350_v56 = vadd.f32 %v331_v17, %v283_v54 }
  0xb6   : > { %v1496_v18 = vpop.f32.mrf.mxu2 }
  0xb7   : > { %v1498_v19 = vpop.f32.mrf.mxu3 }
  0xb8   : > { %v395_v20 = vpop.f32.mrf.mxu1 }
  0xb9   : > { %v415_v51 = vadd.f32 %v395_v20, %v349_v48  ;;  %v285_v20 = vld [vmem:[#allocation2 + $0x18] sm:$0xff] }
  0xba   : > { %v352_v10 = vadd.f32 %v1494_v16, %v285_v20 }
  0xbb   : > { %v594_v21 = vpop.f32.mrf.mxu0 }
  0xbe   : > { %v461_v22 = vpop.f32.mrf.mxu2 }
  0xbf   : > { %v528_v23 = vpop.f32.mrf.mxu3  ;;  %v481_v53 = vadd.f32 %v461_v22, %v415_v51 }
  0xc0   : > { %v397_v24 = vpop.f32.mrf.mxu1 }
  0xc1   : > { %v548_v57 = vadd.f32 %v528_v23, %v481_v53  ;;  %v416_v60 = vadd.f32 %v397_v24, %v350_v56  ;;  %v286_v53 = vld [vmem:[#allocation2 + $0x20] sm:$0xff] }
  0xc2   : > { %v353_v16 = vadd.f32 %v1490_v13, %v286_v53 }
  0xc3   : > { %v596_v25 = vpop.f32.mrf.mxu0  ;;  %v614_v63 = vadd.f32 %v594_v21, %v548_v57 }
  0xc6   : > { %v463_v26 = vpop.f32.mrf.mxu2 }
  0xc7   : > { %v530_v27 = vpop.f32.mrf.mxu3  ;;  %v482_v62 = vadd.f32 %v463_v26, %v416_v60 }
  0xc8   : > { %v400_v28 = vpop.f32.mrf.mxu1 }
  0xc9   : > { %v549_v4 = vadd.f32 %v530_v27, %v482_v62  ;;  %v417_v8 = vadd.f32 %v400_v28, %v351_v3 }
  0xcb   : > { %v1500_v29 = vpop.f32.mrf.mxu0  ;;  %v615_v17 = vadd.f32 %v596_v25, %v549_v4 }
  0xce   : > { %v466_v30 = vpop.f32.mrf.mxu2 }
  0xcf   : > { %v533_v31 = vpop.f32.mrf.mxu3  ;;  %v483_v12 = vadd.f32 %v466_v30, %v417_v8  ;;  %v288_v8 = vld [vmem:[#allocation2 + $0x30] sm:$0xff] }
  0xd0   : > { %v402_v32 = vpop.f32.mrf.mxu1 }
  0xd1   : > { %v550_v23 = vadd.f32 %v533_v31, %v483_v12  ;;  %v418_v28 = vadd.f32 %v402_v32, %v352_v10 }
  0xd3   : > { %v1502_v33 = vpop.f32.mrf.mxu0  ;;  %v616_v25 = vadd.f32 %v1500_v29, %v550_v23  ;;  %v289_v23 = vld [vmem:[#allocation2 + $0x38] sm:$0xff] }
  0xd6   : > { %v468_v34 = vpop.f32.mrf.mxu2 }
  0xd7   : > { %v1504_v35 = vpop.f32.mrf.mxu3  ;;  %v484_v51 = vadd.f32 %v468_v34, %v418_v28 }
  0xd8   : > { %v1506_v36 = vpop.f32.mrf.mxu1 }
  0xd9   : > { %v551_v31 = vadd.f32 %v1504_v35, %v484_v51  ;;  %v419_v60 = vadd.f32 %v1506_v36, %v353_v16  ;;  %v354_v35 = vadd.f32 %v1496_v18, %v287_v0  ;;  %v355_v18 = vadd.f32 %v1492_v15, %v288_v8 }
  0xda   : > { %v356_v15 = vadd.f32 %v1498_v19, %v289_v23 }
  0xdb   : > { %v1508_v37 = vpop.f32.mrf.mxu0 }
  0xde   : > { %v1510_v38 = vpop.f32.mrf.mxu2 }
  0xdf   : > { %v1512_v39 = vpop.f32.mrf.mxu3  ;;  %v485_v62 = vadd.f32 %v1510_v38, %v419_v60 }
  0xe0   : > { %v1514_v40 = vpop.f32.mrf.mxu1 }
  0xe3   : > { %v1516_v41 = vpop.f32.mrf.mxu0 }
  0xe6   : > { %v1518_v42 = vpop.f32.mrf.mxu2 }
  0xe7   : > { %v1520_v43 = vpop.f32.mrf.mxu3 }
  0xe8   : > { %v1522_v44 = vpop.f32.mrf.mxu1 }
  0xeb   : > { %v1524_v45 = vpop.f32.mrf.mxu0 }
  0xee   : > { %v1526_v47 = vpop.f32.mrf.mxu2 }
  0xef   : > { %v1528_v49 = vpop.f32.mrf.mxu3 }
  0xf0   : > { %v1530_v50 = vpop.f32.mrf.mxu1 }
  0xf3   : > { %v1532_v52 = vpop.f32.mrf.mxu0 }
  0xf6   : > { %v1534_v55 = vpop.f32.mrf.mxu2 }
  0xf7   : > { %v1536_v58 = vpop.f32.mrf.mxu3 }
  0xf8   : > { %v660_v59 = vpop.f32.mrf.mxu1 }
  0xf9   : > { %v680_v1 = vadd.f32 %v660_v59, %v614_v63  ;;  %v617_v63 = vadd.f32 %v1502_v33, %v551_v31 }
  0xfb   : > { %v859_v61 = vpop.f32.mrf.mxu0 }
  0xfe   : > { %v727_v2 = vpop.f32.mrf.mxu2 }
  0xff   : > { %v747_v5 = vadd.f32 %v727_v2, %v680_v1  ;;  %v793_v6 = vpop.f32.mrf.mxu3  ;;  %v552_v2 = vadd.f32 %v1512_v39, %v485_v62 }
 0x100   : > { %v662_v7 = vpop.f32.mrf.mxu1 }
 0x101   : > { %v813_v9 = vadd.f32 %v793_v6, %v747_v5  ;;  %v681_v21 = vadd.f32 %v662_v7, %v615_v17  ;;  %v420_v5 = vadd.f32 %v1514_v40, %v354_v35  ;;  %v618_v33 = vadd.f32 %v1508_v37, %v552_v2 }
 0x102   : > { %v421_v40 = vadd.f32 %v1522_v44, %v355_v18  ;;  %v422_v44 = vadd.f32 %v1530_v50, %v356_v15 }
 0x103   : > { %v861_v11 = vpop.f32.mrf.mxu0  ;;  %v1538_v14 = vadd.f32 %v859_v61, %v813_v9  ;;  %v486_v6 = vadd.f32 %v1518_v42, %v420_v5 }
 0x104   : > { %v487_v42 = vadd.f32 %v1526_v47, %v421_v40  ;;  %v488_v47 = vadd.f32 %v1534_v55, %v422_v44 }
 0x105   : > { %888 = vst.msk [vmem:[#allocation2] sm:$0xff] %vm887_vm3, %v1538_v14  ;;  %v553_v39 = vadd.f32 %v1520_v43, %v486_v6 }
 0x106   : > { %v729_v22 = vpop.f32.mrf.mxu2  ;;  %v554_v43 = vadd.f32 %v1528_v49, %v487_v42 }
 0x107   : > { %v748_v24 = vadd.f32 %v729_v22, %v681_v21  ;;  %v795_v26 = vpop.f32.mrf.mxu3  ;;  %v619_v37 = vadd.f32 %v1516_v41, %v553_v39 }
 0x108   : > { %v665_v27 = vpop.f32.mrf.mxu1  ;;  %v620_v41 = vadd.f32 %v1524_v45, %v554_v43 }
 0x109   : > { %v814_v46 = vadd.f32 %v795_v26, %v748_v24  ;;  %v682_v54 = vadd.f32 %v665_v27, %v616_v25 }
 0x10b   : > { %v864_v48 = vpop.f32.mrf.mxu0  ;;  %v1543_v30 = vadd.f32 %v861_v11, %v814_v46 }
 0x10d   : > { %889 = vst.msk [vmem:[#allocation2 + $0x8] sm:$0xff] %vm887_vm3, %v1543_v30 }
 0x10e   : > { %v732_v56 = vpop.f32.mrf.mxu2 }
 0x10f   : > { %v749_v57 = vadd.f32 %v732_v56, %v682_v54  ;;  %v798_v59 = vpop.f32.mrf.mxu3  ;;  %v555_v56 = vadd.f32 %v1536_v58, %v488_v47 }
 0x110   : > { %v667_v32 = vpop.f32.mrf.mxu1 }
 0x111   : > { %v815_v34 = vadd.f32 %v798_v59, %v749_v57  ;;  %v683_v13 = vadd.f32 %v667_v32, %v617_v63  ;;  %v621_v50 = vadd.f32 %v1532_v52, %v555_v56 }
 0x113   : > { %v866_v61 = vpop.f32.mrf.mxu0  ;;  %v1552_v29 = vadd.f32 %v864_v48, %v815_v34 }
 0x115   : > { %890 = vst.msk [vmem:[#allocation2 + $0x10] sm:$0xff] %vm887_vm3, %v1552_v29 }
 0x116   : > { %v734_v1 = vpop.f32.mrf.mxu2 }
 0x117   : > { %v750_v3 = vadd.f32 %v734_v1, %v683_v13  ;;  %v800_v36 = vpop.f32.mrf.mxu3 }
 0x118   : > { %v670_v4 = vpop.f32.mrf.mxu1 }
 0x119   : > { %v816_v38 = vadd.f32 %v800_v36, %v750_v3  ;;  %v684_v11 = vadd.f32 %v670_v4, %v618_v33 }
 0x11b   : > { %v882_v7 = vadd.f32 %v866_v61, %v816_v38  ;;  %v869_v9 = vpop.f32.mrf.mxu0 }
 0x11d   : > { %891 = vst.msk [vmem:[#allocation2 + $0x18] sm:$0xff] %vm887_vm3, %v882_v7 }
 0x11e   : > { %v737_v12 = vpop.f32.mrf.mxu2 }
 0x11f   : > { %v751_v17 = vadd.f32 %v737_v12, %v684_v11  ;;  %v803_v20 = vpop.f32.mrf.mxu3 }
 0x120   : > { %v672_v21 = vpop.f32.mrf.mxu1 }
 0x121   : > { %v817_v22 = vadd.f32 %v803_v20, %v751_v17  ;;  %v685_v24 = vadd.f32 %v672_v21, %v619_v37 }
 0x123   : > { %v883_v10 = vadd.f32 %v869_v9, %v817_v22  ;;  %v871_v26 = vpop.f32.mrf.mxu0 }
 0x125   : > { %892 = vst.msk [vmem:[#allocation2 + $0x20] sm:$0xff] %vm887_vm3, %v883_v10 }
 0x126   : > { %v739_v27 = vpop.f32.mrf.mxu2 }
 0x127   : > { %v752_v28 = vadd.f32 %v739_v27, %v685_v24  ;;  %v805_v46 = vpop.f32.mrf.mxu3 }
 0x128   : > { %v675_v48 = vpop.f32.mrf.mxu1 }
 0x129   : > { %v818_v51 = vadd.f32 %v805_v46, %v752_v28  ;;  %v686_v53 = vadd.f32 %v675_v48, %v620_v41 }
 0x12b   : > { %v884_v25 = vadd.f32 %v871_v26, %v818_v51  ;;  %v874_v49 = vpop.f32.mrf.mxu0 }
 0x12d   : > { %893 = vst.msk [vmem:[#allocation2 + $0x28] sm:$0xff] %vm887_vm3, %v884_v25 }
 0x12e   : > { %v742_v54 = vpop.f32.mrf.mxu2 }
 0x12f   : > { %v753_v19 = vadd.f32 %v742_v54, %v686_v53  ;;  %v808_v16 = vpop.f32.mrf.mxu3 }
 0x130   : > { %v677_v57 = vpop.f32.mrf.mxu1 }
 0x131   : > { %v819_v31 = vadd.f32 %v808_v16, %v753_v19  ;;  %v687_v55 = vadd.f32 %v677_v57, %v621_v50 }
 0x133   : > { %v885_v59 = vadd.f32 %v874_v49, %v819_v31  ;;  %v876_v61 = vpop.f32.mrf.mxu0 }
 0x135   : > { %894 = vst.msk [vmem:[#allocation2 + $0x30] sm:$0xff] %vm887_vm3, %v885_v59 }
 0x136   : > { %v744_v32 = vpop.f32.mrf.mxu2 }
 0x137   : > { %v754_v60 = vadd.f32 %v744_v32, %v687_v55  ;;  %v810_v45 = vpop.f32.mrf.mxu3 }
 0x139   : > { %v820_v34 = vadd.f32 %v810_v45, %v754_v60  ;;  %899 = sbr.rel (%p1156_p11) target bundleno = 333 (0x14d), region = 44 }
 0x13b   : > { %v886_v62 = vadd.f32 %v876_v61, %v820_v34 }
 0x13d   : > { %895 = vst.msk [vmem:[#allocation2 + $0x38] sm:$0xff] %vm887_vm3, %v886_v62 }
 0x13e   : > { %v1222_v58 = vld [vmem:[%s1628_s2] ss:$0 sm:$0xff] }
 0x13f   : > { %v1223_v52 = vld [vmem:[%s1629_s3] ss:$0 sm:$0xff]  ;;  %v904_v63 = vmul.f32 %v1222_v58, %v1538_v14  ;;  %v905_v0 = vmul.f32 %v1222_v58, %v1543_v30  ;;  %v906_v13 = vmul.f32 %v1222_v58, %v1552_v29  ;;  %v907_v1 = vmul.f32 %v1222_v58, %v882_v7 }
 0x140   : > { %v908_v35 = vmul.f32 %v1222_v58, %v883_v10  ;;  %v909_v2 = vmul.f32 %v1222_v58, %v884_v25  ;;  %v910_v3 = vmul.f32 %v1222_v58, %v885_v59  ;;  %v911_v36 = vmul.f32 %v1222_v58, %v886_v62 }
 0x141   : > { %v916_v4 = vadd.f32 %v1223_v52, %v904_v63  ;;  %v917_v5 = vadd.f32 %v1223_v52, %v905_v0  ;;  %v918_v38 = vadd.f32 %v1223_v52, %v906_v13  ;;  %v919_v6 = vadd.f32 %v1223_v52, %v907_v1 }
 0x142   : > { %v920_v33 = vadd.f32 %v1223_v52, %v908_v35  ;;  %v921_v14 = vadd.f32 %v1223_v52, %v909_v2  ;;  %v922_v8 = vadd.f32 %v1223_v52, %v910_v3  ;;  %v923_v11 = vadd.f32 %v1223_v52, %v911_v36 }
 0x143   : > { %v924_v30 = vmax.f32 %v916_v4, 0.0  ;;  %v925_v29 = vmax.f32 %v917_v5, 0.0  ;;  %v926_v7 = vmax.f32 %v918_v38, 0.0  ;;  %v927_v9 = vmax.f32 %v919_v6, 0.0 }
 0x144   : > { %v928_v12 = vmax.f32 %v920_v33, 0.0  ;;  %v929_v18 = vmax.f32 %v921_v14, 0.0  ;;  %v930_v39 = vmax.f32 %v922_v8, 0.0  ;;  %v931_v17 = vmax.f32 %v923_v11, 0.0 }
 0x145   : > { %932 = vst.msk [vmem:[%s1371_s27] sm:$0xff] %vm887_vm3, %v924_v30 }
 0x146   : > { %933 = vst.msk [vmem:[%s1371_s27 + $0x8] sm:$0xff] %vm887_vm3, %v925_v29 }
 0x147   : > { %934 = vst.msk [vmem:[%s1371_s27 + $0x10] sm:$0xff] %vm887_vm3, %v926_v7 }
 0x148   : > { %935 = vst.msk [vmem:[%s1371_s27 + $0x18] sm:$0xff] %vm887_vm3, %v927_v9 }
 0x149   : > { %936 = vst.msk [vmem:[%s1371_s27 + $0x20] sm:$0xff] %vm887_vm3, %v928_v12 }
 0x14a   : > { %937 = vst.msk [vmem:[%s1371_s27 + $0x28] sm:$0xff] %vm887_vm3, %v929_v18 }
 0x14b   : > { %938 = vst.msk [vmem:[%s1371_s27 + $0x30] sm:$0xff] %vm887_vm3, %v930_v39 }
 0x14c   : > { %939 = vst.msk [vmem:[%s1371_s27 + $0x38] sm:$0xff] %vm887_vm3, %v931_v17 }
 0x14d PF: > { %s14_s21 = sadd.s32 1, %s1278_s21   ;;  %s1632_s29 = sld [smem:[#allocation3_spill]] }
 0x14e   : > { %p11_p12 = scmp.ge.s32.totalorder %s14_s21, 26   ;;  %s1633_s15 = smov %s1266_s18 }
 0x14f   : > { %s1634_s16 = smov %s1270_s19  ;;  %s1635_s17 = smov %s1274_s20 }
 0x150   : > { %s1636_s18 = smov %s1640_s22  ;;  %s1637_s19 = smov %s1644_s23 }
 0x151   :  { %13 = sbr.rel (!%p11_p12) target bundleno = 4 (0x4), region = 87 }
 0x153   : > { %s1638_s20 = smov %s1632_s29 }

// kernel: inception_block.5
= control target key start
LH: loop header
LB: loop body
LE: loop exit
PB: predicated region body
PF: predicated region fallthrough
CT: control target
= control target key end

     0   :  { %s1306_s15 = smov 0   ;;  %s1308_s16 = smov 0   ;;  %s1626_s0 = inlined_call_operand.vmem [shape: f32[2,6,10,10,8], index: 0, kind: input, shape index: {}]   ;;  %s1627_s1 = inlined_call_operand.vmem [shape: bf16[3,3,3,8,16], index: 1, kind: input, shape index: {}]   ;;  %s1628_s2 = inlined_call_operand.vmem [shape: f32[1,16], index: 2, kind: input, shape index: {}]   ;;  %s1629_s3 = inlined_call_operand.vmem [shape: f32[1,16], index: 3, kind: input, shape index: {}]   ;;  %s1630_s4 = inlined_call_operand.vmem [shape: f32[2,4,64,16], index: 4, kind: output, shape index: {}]  }
   0x1   :  { %s1310_s17 = smov 0   ;;  %s1312_s18 = smov 0  }
   0x2   :  { %s1314_s19 = smov 0   ;;  %s1316_s20 = smov 0  }
   0x3   :  { %s1318_s21 = smov 0  }
   0x4 LB: > { %s26_s22 = sadd.s32 1, %s1266_s18  ;;  %s29_s23 = sadd.s32 1, %s1270_s19  ;;  %s1278_s21 = sphi %s1318_s21, %s14_s21   ;;  %s1274_s20 = sphi %s1316_s20, %s1638_s20   ;;  %s1270_s19 = sphi %s1314_s19, %s1637_s19   ;;  %s1266_s18 = sphi %s1312_s18, %s1636_s18   ;;  %s1262_s17 = sphi %s1310_s17, %s1635_s17   ;;  %s1258_s16 = sphi %s1308_s16, %s1634_s16   ;;  %s1254_s15 = sphi %s1306_s15, %s1633_s15  }
   0x5   : > { %p27_p0 = scmp.ge.s32.totalorder %s26_s22, 3  ;;  %p1057_p1 = scmp.ge.s32.totalorder %s1278_s21, 1 }
   0x6   : > { %p203_p2 = scmp.lt.s32.totalorder %s1278_s21, 25  ;;  %s33_s24 = sadd.s32 1, %s1274_s20 }
   0x7   : > { %s1640_s22 = smov (%p27_p0, %s26_s22), 0  ;;  %s1642_s23 = smov (!%p27_p0, %s29_s23), %s1270_s19 }
   0x8   : > { %p204_p3 = pnand %p1057_p1, %p203_p2  ;;  %p31_p4 = scmp.ge.s32.totalorder %s1642_s23, 4 }
   0x9   : > { %s243_s25 = sadd.s32 (!%p204_p3), %s1254_s15, %s1258_s16  ;;  %p244_p6 = scmp.lt.s32.totalorder (!%p204_p3), %s1262_s17, 1 }
   0xa   : > { %s1644_s23 = smov (%p31_p4, %s1642_s23), 0  ;;  %s1646_s24 = smov (!%p31_p4, %s33_s24), %s1274_s20 }
   0xb   : > { %p35_p5 = scmp.ge.s32.totalorder %s1646_s24, 2  ;;  %207 = sbr.rel (%p204_p3) target bundleno = 333 (0x14d), region = 36 }
   0xc   : > { %p246_p7 = scmp.lt.s32.totalorder (!%p204_p3), %s243_s25, 5  ;;  %p254_p8 = scmp.lt.s32.totalorder (!%p204_p3), %s1254_s15, 2 }
   0xd   : > { %s1648_s24 = smov (%p35_p5, %s1646_s24), 0  ;;  %p261_p9 = scmp.lt.s32.totalorder (!%p204_p3), %s1258_s16, 3 }
   0xe   : > { %1631 = sst [smem:[#allocation3_spill]] %s1648_s24  ;;  %p1063_p10 = scmp.ne.s32.totalorder (!%p204_p3), %s1254_s15, 0 }
  0x10   : > { %s1650_s17 = smov (!%p244_p6, %s1262_s17), 1  ;;  %s1652_s25 = smov (!%p246_p7, %s243_s25), 5 }
  0x11   : > { %s1163_s26 = smul.u32 120, %s1650_s17  ;;  %s1061_s12 = sshll.u32 %s1650_s17, 5 }
  0x12   : > { %s1162_s27 = smul.u32 20, %s1652_s25  ;;  %s1654_s16 = smov (!%p261_p9, %s1258_s16), 3 }
  0x13   : > { %s255_s28 = scalar_select %p254_p8, %s1254_s15, 2 }
  0x14   : > { %s250_s29 = sadd.s32 %s1163_s26, %s1162_s27  ;;  %s1060_s13 = sshll.u32 %s1654_s16, 3 }
  0x15   : > { %s1058_s30 = sshll.u32 %s250_s29, 3  ;;  %s1164_s5 = smul.u32 36, %s255_s28 }
  0x16   : > { %s1360_s8 = scalar_lea.vmem %s1626_s0, %s1058_s30  ;;  %s265_s14 = sadd.s32 %s1061_s12, %s1060_s13 }
  0x17   : > { %s1365_s11 = scalar_lea.vmem %s1627_s1, %s1164_s5  ;;  %s1062_s25 = sshll.u32 %s265_s14, 3 }
  0x18   : > { %s1371_s27 = scalar_lea.vmem %s1630_s4, %s1062_s25  ;;  %272 = sbr.rel (%p1063_p10) target bundleno = 38 (0x26), region = 40 }
  0x1d   : > { %vm273_vm0 = vcmask 130048   ;;  %v1280_v0 = vmov 0.0  }
  0x1e   : > { %274 = vst.msk [vmem:[#allocation2] sm:$0xff] %vm273_vm0, %v1280_v0 }
  0x1f   : > { %275 = vst.msk [vmem:[#allocation2 + $0x8] sm:$0xff] %vm273_vm0, %v1280_v0 }
  0x20   : > { %276 = vst.msk [vmem:[#allocation2 + $0x10] sm:$0xff] %vm273_vm0, %v1280_v0 }
  0x21   : > { %277 = vst.msk [vmem:[#allocation2 + $0x18] sm:$0xff] %vm273_vm0, %v1280_v0 }
  0x22   : > { %278 = vst.msk [vmem:[#allocation2 + $0x20] sm:$0xff] %vm273_vm0, %v1280_v0 }
  0x23   : > { %279 = vst.msk [vmem:[#allocation2 + $0x28] sm:$0xff] %vm273_vm0, %v1280_v0 }
  0x24   : > { %280 = vst.msk [vmem:[#allocation2 + $0x30] sm:$0xff] %vm273_vm0, %v1280_v0 }
  0x25   : > { %281 = vst.msk [vmem:[#allocation2 + $0x38] sm:$0xff] %vm273_vm0, %v1280_v0 }
  0x26 PF: > { %v302_v1 = vld [vmem:[%s1365_s11] sm:$0xf]  ;;  %vm316_vm1 = vcmask 1043456   ;;  %v1377_v3 = vld [vmem:[%s1360_s8 + $0x30] sm:$0xff]  ;;  %vm303_vm2 = vcmask 64512   ;;  %vm887_vm3 = vcmask 130048  }
  0x27   : > { %v292_v2 = vld [vmem:[%s1360_s8 + $0x20] sm:$0xff]  ;;  %v318_v4 = vsel %vm316_vm1, %v302_v1, 0  ;;  %v1387_v7 = vld [vmem:[%s1360_s8 + $0x50] sm:$0xff]  ;;  %v1073_v11 = vld [vmem:[%s1365_s11 + $0x8] sm:$0xf]  ;;  %p1156_p11 = scmp.ne.s32.totalorder %s1254_s15, 2 }
  0x28   : > { %v1381_v5 = vpack.c.bf16 %v1377_v3, %v292_v2  ;;  %v1384_v6 = vld [vmem:[%s1360_s8 + $0x40] sm:$0xff]  ;;  %1159 = vmatpush.bf16.msra.mxu1 %v318_v4  ;;  %1160 = vmatpush.bf16.msra.mxu2 %v318_v4  ;;  %v1397_v10 = vld [vmem:[%s1360_s8 + $0x70] sm:$0xff]  ;;  %v450_v14 = vsel %vm316_vm1, %v1073_v11, 0  ;;  %v1086_v16 = vld [vmem:[%s1365_s11 + $0xc] sm:$0xf] }
  0x29   : > { %v1390_v8 = vld [vmem:[%s1360_s8 + $0x60] sm:$0xff]  ;;  %v1394_v9 = vpack.c.bf16 %v1387_v7, %v1384_v6  ;;  %1161 = vmatpush.bf16.msra.mxu3 %v318_v4  ;;  %327 = vmatpush.bf16.msra.mxu0 %v318_v4  ;;  %v291_v15 = vld [vmem:[%s1360_s8 + $0x10] sm:$0xff]  ;;  %v517_v19 = vsel %vm316_vm1, %v1086_v16, 0  ;;  %v1125_v23 = vld [vmem:[%s1365_s11 + $0x18] sm:$0xf]  ;;  %v499_v46 = vpack.c.bf16 %v1384_v6, %v1377_v3 }
  0x2a   : > { %v290_v12 = vld [vmem:[%s1360_s8] sm:$0xff]  ;;  %v1403_v13 = vpack.c.bf16 %v1397_v10, %v1390_v8  ;;  %v1099_v21 = vld [vmem:[%s1365_s11 + $0x10] sm:$0xf]  ;;  %v716_v24 = vsel %vm316_vm1, %v1125_v23, 0  ;;  %v1138_v25 = vld [vmem:[%s1365_s11 + $0x1c] sm:$0xf]  ;;  %v498_v38 = vpack.c.bf16 %v292_v2, %v291_v15  ;;  %v500_v54 = vpack.c.bf16 %v1390_v8, %v1387_v7 }
  0x2b   : > { %v1068_v17 = vld [vmem:[%s1365_s11 + $0x4] sm:$0xf]  ;;  %v298_v18 = vpack.c.bf16 %v291_v15, %v290_v12  ;;  %1065 = vmatmul.msk.bf16.vlgmr.msra.gmra.mxu1 %vm303_vm2, %v1381_v5  ;;  %1066 = vmatmul.msk.bf16.vlgmr.msra.gmra.mxu2 %vm303_vm2, %v1394_v9  ;;  %v583_v22 = vsel %vm316_vm1, %v1099_v21, 0  ;;  %v1112_v26 = vld [vmem:[%s1365_s11 + $0x14] sm:$0xf]  ;;  %v782_v27 = vsel %vm316_vm1, %v1138_v25, 0 }
  0x2c   : > { %459 = vmatpush.bf16.msrb.mxu2 %v450_v14  ;;  %v384_v20 = vsel %vm316_vm1, %v1068_v17, 0  ;;  %1067 = vmatmul.msk.bf16.vlgmr.msra.gmra.mxu3 %vm303_vm2, %v1403_v13  ;;  %v649_v28 = vsel %vm316_vm1, %v1112_v26, 0  ;;  %v1151_v29 = vld [vmem:[%s1365_s11 + $0x20] sm:$0xf]  ;;  %v358_v32 = vld [vmem:[%s1360_s8 + $0x11] sm:$0xff] }
  0x2d   : > { %1064 = vmatmul.msk.bf16.vlgmr.msra.gmra.mxu0 %vm303_vm2, %v298_v18  ;;  %526 = vmatpush.bf16.msrb.mxu3 %v517_v19  ;;  %v848_v30 = vsel %vm316_vm1, %v1151_v29, 0  ;;  %v357_v31 = vld [vmem:[%s1360_s8 + $0x1] sm:$0xff]  ;;  %v424_v34 = vld [vmem:[%s1360_s8 + $0x12] sm:$0xff] }
  0x2e   : > { %393 = vmatpush.bf16.msrb.mxu1 %v384_v20  ;;  %592 = vmatpush.bf16.msrb.mxu0 %v583_v22  ;;  %v423_v33 = vld [vmem:[%s1360_s8 + $0x2] sm:$0xff]  ;;  %v365_v36 = vpack.c.bf16 %v358_v32, %v357_v31  ;;  %v360_v40 = vld [vmem:[%s1360_s8 + $0x31] sm:$0xff] }
  0x2f   : > { %v1092_v35 = vld [vmem:[%s1360_s8 + $0x21] sm:$0xff]  ;;  %v431_v37 = vpack.c.bf16 %v424_v34, %v423_v33  ;;  %v426_v42 = vld [vmem:[%s1360_s8 + $0x32] sm:$0xff] }
  0x30   : > { %725 = vmatpush.bf16.msra.mxu2 %v716_v24  ;;  %v564_v39 = vpack.c.bf16 %v1092_v35, %v358_v32  ;;  %v425_v41 = vld [vmem:[%s1360_s8 + $0x22] sm:$0xff]  ;;  %v366_v44 = vpack.c.bf16 %v360_v40, %v1092_v35  ;;  %v362_v48 = vld [vmem:[%s1360_s8 + $0x51] sm:$0xff] }
  0x31   : > { %791 = vmatpush.bf16.msra.mxu3 %v782_v27  ;;  %v1094_v43 = vld [vmem:[%s1360_s8 + $0x41] sm:$0xff]  ;;  %v432_v45 = vpack.c.bf16 %v426_v42, %v425_v41  ;;  %v428_v50 = vld [vmem:[%s1360_s8 + $0x52] sm:$0xff]  ;;  %v630_v1 = vpack.c.bf16 %v425_v41, %v424_v34 }
  0x32   : > { %658 = vmatpush.bf16.msra.mxu1 %v649_v28  ;;  %857 = vmatpush.bf16.msra.mxu0 %v848_v30  ;;  %v565_v47 = vpack.c.bf16 %v1094_v43, %v360_v40  ;;  %v427_v49 = vld [vmem:[%s1360_s8 + $0x42] sm:$0xff]  ;;  %v367_v52 = vpack.c.bf16 %v362_v48, %v1094_v43  ;;  %v364_v56 = vld [vmem:[%s1360_s8 + $0x71] sm:$0xff] }
  0x33   : > { %v1096_v51 = vld [vmem:[%s1360_s8 + $0x61] sm:$0xff]  ;;  %v433_v53 = vpack.c.bf16 %v428_v50, %v427_v49  ;;  %v430_v58 = vld [vmem:[%s1360_s8 + $0x72] sm:$0xff]  ;;  %v631_v2 = vpack.c.bf16 %v427_v49, %v426_v42 }
  0x34   : > { %v566_v55 = vpack.c.bf16 %v1096_v51, %v362_v48  ;;  %v429_v57 = vld [vmem:[%s1360_s8 + $0x62] sm:$0xff]  ;;  %v368_v61 = vpack.c.bf16 %v364_v56, %v1096_v51  ;;  %v1137_v6 = vld [vmem:[%s1360_s8 + $0x91] sm:$0xff] }
  0x35   : > { %v1085_v59 = vld [vmem:[%s1360_s8 + $0x80] sm:$0xff]  ;;  %v434_v62 = vpack.c.bf16 %v430_v58, %v429_v57  ;;  %v632_v3 = vpack.c.bf16 %v429_v57, %v428_v50  ;;  %v1150_v7 = vld [vmem:[%s1360_s8 + $0x92] sm:$0xff] }
  0x36   : > { %v1098_v60 = vld [vmem:[%s1360_s8 + $0x81] sm:$0xff]  ;;  %v501_v63 = vpack.c.bf16 %v1085_v59, %v1397_v10 }
  0x37   : > { %v567_v0 = vpack.c.bf16 %v1098_v60, %v364_v56  ;;  %v1111_v4 = vld [vmem:[%s1360_s8 + $0x82] sm:$0xff]  ;;  %v766_v11 = vpack.c.bf16 %v1137_v6, %v1098_v60 }
  0x38   : > { %v633_v8 = vpack.c.bf16 %v1111_v4, %v430_v58  ;;  %v832_v12 = vpack.c.bf16 %v1150_v7, %v1111_v4 }
  0x3b   : > { %1069 = vmatmul.msk.bf16.vlgmr.msrb.gmra.mxu1 %vm303_vm2, %v365_v36  ;;  %1074 = vmatmul.msk.bf16.vlgmr.msrb.gmra.mxu2 %vm303_vm2, %v431_v37 }
  0x3c   : > { %1087 = vmatmul.msk.bf16.vlgmr.msrb.gmra.mxu3 %vm303_vm2, %v498_v38 }
  0x3d   : > { %1100 = vmatmul.msk.bf16.vlgmr.msrb.gmra.mxu0 %vm303_vm2, %v564_v39 }
  0x4b   : > { %1070 = vmatmul.msk.bf16.gmra.mxu1 %vm303_vm2, %v366_v44  ;;  %1075 = vmatmul.msk.bf16.gmra.mxu2 %vm303_vm2, %v432_v45 }
  0x4c   : > { %1088 = vmatmul.msk.bf16.gmra.mxu3 %vm303_vm2, %v499_v46  ;;  %v282_v46 = vld [vmem:[#allocation2] sm:$0xff] }
  0x4d   : > { %1101 = vmatmul.msk.bf16.gmra.mxu0 %vm303_vm2, %v565_v47 }
  0x5b   : > { %1071 = vmatmul.msk.bf16.gmra.mxu1 %vm303_vm2, %v367_v52  ;;  %1076 = vmatmul.msk.bf16.gmra.mxu2 %vm303_vm2, %v433_v53 }
  0x5c   : > { %1089 = vmatmul.msk.bf16.gmra.mxu3 %vm303_vm2, %v500_v54  ;;  %v283_v54 = vld [vmem:[#allocation2 + $0x8] sm:$0xff] }
  0x5d   : > { %1102 = vmatmul.msk.bf16.gmra.mxu0 %vm303_vm2, %v566_v55 }
  0x6b   : > { %1072 = vmatmul.msk.bf16.gmra.mxu1 %vm303_vm2, %v368_v61  ;;  %1077 = vmatmul.msk.bf16.gmra.mxu2 %vm303_vm2, %v434_v62 }
  0x6c   : > { %1090 = vmatmul.msk.bf16.gmra.mxu3 %vm303_vm2, %v501_v63 }
  0x6d   : > { %1103 = vmatmul.msk.bf16.gmra.mxu0 %vm303_vm2, %v567_v0  ;;  %v284_v0 = vld [vmem:[#allocation2 + $0x10] sm:$0xff] }
  0x7b   : > { %1113 = vmatmul.msk.bf16.vlgmr.msra.gmra.mxu1 %vm303_vm2, %v630_v1  ;;  %1126 = vmatmul.msk.bf16.vlgmr.msra.gmra.mxu2 %vm303_vm2, %v1381_v5  ;;  %v1124_v5 = vld [vmem:[%s1360_s8 + $0x90] sm:$0xff] }
  0x7c   : > { %1139 = vmatmul.msk.bf16.vlgmr.msra.gmra.mxu3 %vm303_vm2, %v366_v44 }
  0x7d   : > { %1152 = vmatmul.msk.bf16.vlgmr.msra.gmra.mxu0 %vm303_vm2, %v432_v45 }
  0x8b   : > { %1114 = vmatmul.msk.bf16.gmra.mxu1 %vm303_vm2, %v631_v2  ;;  %1127 = vmatmul.msk.bf16.gmra.mxu2 %vm303_vm2, %v1394_v9  ;;  %v700_v9 = vpack.c.bf16 %v1124_v5, %v1085_v59 }
  0x8c   : > { %1140 = vmatmul.msk.bf16.gmra.mxu3 %vm303_vm2, %v367_v52 }
  0x8d   : > { %1153 = vmatmul.msk.bf16.gmra.mxu0 %vm303_vm2, %v433_v53 }
  0x9b   : > { %1115 = vmatmul.msk.bf16.gmra.mxu1 %vm303_vm2, %v632_v3  ;;  %1128 = vmatmul.msk.bf16.gmra.mxu2 %vm303_vm2, %v1403_v13 }
  0x9c   : > { %1141 = vmatmul.msk.bf16.gmra.mxu3 %vm303_vm2, %v368_v61 }
  0x9d   : > { %1154 = vmatmul.msk.bf16.gmra.mxu0 %vm303_vm2, %v434_v62 }
  0xa8   : > { %v334_v10 = vpop.f32.mrf.mxu1 }
  0xa9   : > { %v351_v3 = vadd.f32 %v334_v10, %v284_v0  ;;  %v287_v0 = vld [vmem:[#allocation2 + $0x28] sm:$0xff] }
  0xaa   : > { %v329_v14 = vpop.f32.mrf.mxu0 }
  0xab   : > { %1116 = vmatmul.msk.bf16.gmra.mxu1 %vm303_vm2, %v633_v8  ;;  %1129 = vmatmul.msk.bf16.gmra.mxu2 %vm303_vm2, %v700_v9  ;;  %v349_v48 = vadd.f32 %v329_v14, %v282_v46 }
  0xac   : > { %1142 = vmatmul.msk.bf16.gmra.mxu3 %vm303_vm2, %v766_v11 }
  0xad   : > { %1155 = vmatmul.msk.bf16.gmra.mxu0 %vm303_vm2, %v832_v12 }
  0xae   : > { %v1490_v13 = vpop.f32.mrf.mxu2 }
  0xaf   : > { %v1492_v15 = vpop.f32.mrf.mxu3 }
  0xb0   : > { %v1494_v16 = vpop.f32.mrf.mxu1 }
  0xb2   : > { %v331_v17 = vpop.f32.mrf.mxu0 }
  0xb3   : > { %v350_v56 = vadd.f32 %v331_v17, %v283_v54 }
  0xb6   : > { %v1496_v18 = vpop.f32.mrf.mxu2 }
  0xb7   : > { %v1498_v19 = vpop.f32.mrf.mxu3 }
  0xb8   : > { %v395_v20 = vpop.f32.mrf.mxu1 }
  0xb9   : > { %v415_v51 = vadd.f32 %v395_v20, %v349_v48  ;;  %v285_v20 = vld [vmem:[#allocation2 + $0x18] sm:$0xff] }
  0xba   : > { %v594_v21 = vpop.f32.mrf.mxu0  ;;  %v352_v10 = vadd.f32 %v1494_v16, %v285_v20 }
  0xbe   : > { %v461_v22 = vpop.f32.mrf.mxu2 }
  0xbf   : > { %v528_v23 = vpop.f32.mrf.mxu3  ;;  %v481_v53 = vadd.f32 %v461_v22, %v415_v51 }
  0xc0   : > { %v397_v24 = vpop.f32.mrf.mxu1 }
  0xc1   : > { %v548_v57 = vadd.f32 %v528_v23, %v481_v53  ;;  %v416_v60 = vadd.f32 %v397_v24, %v350_v56  ;;  %v286_v53 = vld [vmem:[#allocation2 + $0x20] sm:$0xff] }
  0xc2   : > { %v596_v25 = vpop.f32.mrf.mxu0  ;;  %v353_v16 = vadd.f32 %v1490_v13, %v286_v53 }
  0xc3   : > { %v614_v63 = vadd.f32 %v594_v21, %v548_v57 }
  0xc6   : > { %v463_v26 = vpop.f32.mrf.mxu2 }
  0xc7   : > { %v530_v27 = vpop.f32.mrf.mxu3  ;;  %v482_v62 = vadd.f32 %v463_v26, %v416_v60 }
  0xc8   : > { %v400_v28 = vpop.f32.mrf.mxu1 }
  0xc9   : > { %v549_v4 = vadd.f32 %v530_v27, %v482_v62  ;;  %v417_v8 = vadd.f32 %v400_v28, %v351_v3 }
  0xca   : > { %v1500_v29 = vpop.f32.mrf.mxu0 }
  0xcb   : > { %v615_v17 = vadd.f32 %v596_v25, %v549_v4 }
  0xce   : > { %v466_v30 = vpop.f32.mrf.mxu2 }
  0xcf   : > { %v533_v31 = vpop.f32.mrf.mxu3  ;;  %v483_v12 = vadd.f32 %v466_v30, %v417_v8  ;;  %v288_v8 = vld [vmem:[#allocation2 + $0x30] sm:$0xff] }
  0xd0   : > { %v402_v32 = vpop.f32.mrf.mxu1 }
  0xd1   : > { %v550_v23 = vadd.f32 %v533_v31, %v483_v12  ;;  %v418_v28 = vadd.f32 %v402_v32, %v352_v10 }
  0xd2   : > { %v1502_v33 = vpop.f32.mrf.mxu0 }
  0xd3   : > { %v616_v25 = vadd.f32 %v1500_v29, %v550_v23  ;;  %v289_v23 = vld [vmem:[#allocation2 + $0x38] sm:$0xff] }
  0xd6   : > { %v468_v34 = vpop.f32.mrf.mxu2 }
  0xd7   : > { %v1504_v35 = vpop.f32.mrf.mxu3  ;;  %v484_v51 = vadd.f32 %v468_v34, %v418_v28 }
  0xd8   : > { %v1506_v36 = vpop.f32.mrf.mxu1 }
  0xd9   : > { %v551_v31 = vadd.f32 %v1504_v35, %v484_v51  ;;  %v419_v60 = vadd.f32 %v1506_v36, %v353_v16  ;;  %v354_v35 = vadd.f32 %v1496_v18, %v287_v0  ;;  %v355_v18 = vadd.f32 %v1492_v15, %v288_v8 }
  0xda   : > { %v1508_v37 = vpop.f32.mrf.mxu0  ;;  %v356_v15 = vadd.f32 %v1498_v19, %v289_v23 }
  0xde   : > { %v1510_v38 = vpop.f32.mrf.mxu2 }
  0xdf   : > { %v1512_v39 = vpop.f32.mrf.mxu3  ;;  %v485_v62 = vadd.f32 %v1510_v38, %v419_v60 }
  0xe0   : > { %v1514_v40 = vpop.f32.mrf.mxu1 }
  0xe2   : > { %v1516_v41 = vpop.f32.mrf.mxu0 }
  0xe6   : > { %v1518_v42 = vpop.f32.mrf.mxu2 }
  0xe7   : > { %v1520_v43 = vpop.f32.mrf.mxu3 }
  0xe8   : > { %v1522_v44 = vpop.f32.mrf.mxu1 }
  0xea   : > { %v1524_v45 = vpop.f32.mrf.mxu0 }
  0xee   : > { %v1526_v47 = vpop.f32.mrf.mxu2 }
  0xef   : > { %v1528_v49 = vpop.f32.mrf.mxu3 }
  0xf0   : > { %v1530_v50 = vpop.f32.mrf.mxu1 }
  0xf2   : > { %v1532_v52 = vpop.f32.mrf.mxu0 }
  0xf6   : > { %v1534_v55 = vpop.f32.mrf.mxu2 }
  0xf7   : > { %v1536_v58 = vpop.f32.mrf.mxu3 }
  0xf8   : > { %v660_v59 = vpop.f32.mrf.mxu1 }
  0xf9   : > { %v680_v1 = vadd.f32 %v660_v59, %v614_v63  ;;  %v617_v63 = vadd.f32 %v1502_v33, %v551_v31 }
  0xfa   : > { %v859_v61 = vpop.f32.mrf.mxu0 }
  0xfe   : > { %v727_v2 = vpop.f32.mrf.mxu2 }
  0xff   : > { %v747_v5 = vadd.f32 %v727_v2, %v680_v1  ;;  %v793_v6 = vpop.f32.mrf.mxu3  ;;  %v552_v2 = vadd.f32 %v1512_v39, %v485_v62 }
 0x100   : > { %v662_v7 = vpop.f32.mrf.mxu1 }
 0x101   : > { %v813_v9 = vadd.f32 %v793_v6, %v747_v5  ;;  %v681_v21 = vadd.f32 %v662_v7, %v615_v17  ;;  %v420_v5 = vadd.f32 %v1514_v40, %v354_v35  ;;  %v618_v33 = vadd.f32 %v1508_v37, %v552_v2 }
 0x102   : > { %v861_v11 = vpop.f32.mrf.mxu0  ;;  %v421_v40 = vadd.f32 %v1522_v44, %v355_v18  ;;  %v422_v44 = vadd.f32 %v1530_v50, %v356_v15 }
 0x103   : > { %v1538_v14 = vadd.f32 %v859_v61, %v813_v9  ;;  %v486_v6 = vadd.f32 %v1518_v42, %v420_v5 }
 0x104   : > { %v487_v42 = vadd.f32 %v1526_v47, %v421_v40  ;;  %v488_v47 = vadd.f32 %v1534_v55, %v422_v44 }
 0x105   : > { %888 = vst.msk [vmem:[#allocation2] sm:$0xff] %vm887_vm3, %v1538_v14  ;;  %v553_v39 = vadd.f32 %v1520_v43, %v486_v6 }
 0x106   : > { %v729_v22 = vpop.f32.mrf.mxu2  ;;  %v554_v43 = vadd.f32 %v1528_v49, %v487_v42 }
 0x107   : > { %v748_v24 = vadd.f32 %v729_v22, %v681_v21  ;;  %v795_v26 = vpop.f32.mrf.mxu3  ;;  %v619_v37 = vadd.f32 %v1516_v41, %v553_v39 }
 0x108   : > { %v665_v27 = vpop.f32.mrf.mxu1  ;;  %v620_v41 = vadd.f32 %v1524_v45, %v554_v43 }
 0x109   : > { %v814_v46 = vadd.f32 %v795_v26, %v748_v24  ;;  %v682_v54 = vadd.f32 %v665_v27, %v616_v25 }
 0x10a   : > { %v864_v48 = vpop.f32.mrf.mxu0 }
 0x10b   : > { %v1543_v30 = vadd.f32 %v861_v11, %v814_v46 }
 0x10d   : > { %889 = vst.msk [vmem:[#allocation2 + $0x8] sm:$0xff] %vm887_vm3, %v1543_v30 }
 0x10e   : > { %v732_v56 = vpop.f32.mrf.mxu2 }
 0x10f   : > { %v749_v57 = vadd.f32 %v732_v56, %v682_v54  ;;  %v798_v59 = vpop.f32.mrf.mxu3  ;;  %v555_v56 = vadd.f32 %v1536_v58, %v488_v47 }
 0x110   : > { %v667_v32 = vpop.f32.mrf.mxu1 }
 0x111   : > { %v815_v34 = vadd.f32 %v798_v59, %v749_v57  ;;  %v683_v13 = vadd.f32 %v667_v32, %v617_v63  ;;  %v621_v50 = vadd.f32 %v1532_v52, %v555_v56 }
 0x112   : > { %v866_v61 = vpop.f32.mrf.mxu0 }
 0x113   : > { %v1552_v29 = vadd.f32 %v864_v48, %v815_v34 }
 0x115   : > { %890 = vst.msk [vmem:[#allocation2 + $0x10] sm:$0xff] %vm887_vm3, %v1552_v29 }
 0x116   : > { %v734_v1 = vpop.f32.mrf.mxu2 }
 0x117   : > { %v750_v3 = vadd.f32 %v734_v1, %v683_v13  ;;  %v800_v36 = vpop.f32.mrf.mxu3 }
 0x118   : > { %v670_v4 = vpop.f32.mrf.mxu1 }
 0x119   : > { %v816_v38 = vadd.f32 %v800_v36, %v750_v3  ;;  %v684_v11 = vadd.f32 %v670_v4, %v618_v33 }
 0x11a   : > { %v869_v9 = vpop.f32.mrf.mxu0 }
 0x11b   : > { %v882_v7 = vadd.f32 %v866_v61, %v816_v38 }
 0x11d   : > { %891 = vst.msk [vmem:[#allocation2 + $0x18] sm:$0xff] %vm887_vm3, %v882_v7 }
 0x11e   : > { %v737_v12 = vpop.f32.mrf.mxu2 }
 0x11f   : > { %v751_v17 = vadd.f32 %v737_v12, %v684_v11  ;;  %v803_v20 = vpop.f32.mrf.mxu3 }
 0x120   : > { %v672_v21 = vpop.f32.mrf.mxu1 }
 0x121   : > { %v817_v22 = vadd.f32 %v803_v20, %v751_v17  ;;  %v685_v24 = vadd.f32 %v672_v21, %v619_v37 }
 0x122   : > { %v871_v26 = vpop.f32.mrf.mxu0 }
 0x123   : > { %v883_v10 = vadd.f32 %v869_v9, %v817_v22 }
 0x125   : > { %892 = vst.msk [vmem:[#allocation2 + $0x20] sm:$0xff] %vm887_vm3, %v883_v10 }
 0x126   : > { %v739_v27 = vpop.f32.mrf.mxu2 }
 0x127   : > { %v752_v28 = vadd.f32 %v739_v27, %v685_v24  ;;  %v805_v46 = vpop.f32.mrf.mxu3 }
 0x128   : > { %v675_v48 = vpop.f32.mrf.mxu1 }
 0x129   : > { %v818_v51 = vadd.f32 %v805_v46, %v752_v28  ;;  %v686_v53 = vadd.f32 %v675_v48, %v620_v41 }
 0x12a   : > { %v874_v49 = vpop.f32.mrf.mxu0 }
 0x12b   : > { %v884_v25 = vadd.f32 %v871_v26, %v818_v51 }
 0x12d   : > { %893 = vst.msk [vmem:[#allocation2 + $0x28] sm:$0xff] %vm887_vm3, %v884_v25 }
 0x12e   : > { %v742_v54 = vpop.f32.mrf.mxu2 }
 0x12f   : > { %v753_v19 = vadd.f32 %v742_v54, %v686_v53  ;;  %v808_v16 = vpop.f32.mrf.mxu3 }
 0x130   : > { %v677_v57 = vpop.f32.mrf.mxu1 }
 0x131   : > { %v819_v31 = vadd.f32 %v808_v16, %v753_v19  ;;  %v687_v55 = vadd.f32 %v677_v57, %v621_v50 }
 0x132   : > { %v876_v61 = vpop.f32.mrf.mxu0 }
 0x133   : > { %v885_v59 = vadd.f32 %v874_v49, %v819_v31 }
 0x135   : > { %894 = vst.msk [vmem:[#allocation2 + $0x30] sm:$0xff] %vm887_vm3, %v885_v59 }
 0x136   : > { %v744_v32 = vpop.f32.mrf.mxu2 }
 0x137   : > { %v754_v60 = vadd.f32 %v744_v32, %v687_v55  ;;  %v810_v45 = vpop.f32.mrf.mxu3 }
 0x139   : > { %v820_v34 = vadd.f32 %v810_v45, %v754_v60  ;;  %899 = sbr.rel (%p1156_p11) target bundleno = 333 (0x14d), region = 44 }
 0x13b   : > { %v886_v62 = vadd.f32 %v876_v61, %v820_v34 }
 0x13d   : > { %895 = vst.msk [vmem:[#allocation2 + $0x38] sm:$0xff] %vm887_vm3, %v886_v62 }
 0x13e   : > { %v1222_v58 = vld [vmem:[%s1628_s2] ss:$0 sm:$0xff] }
 0x13f   : > { %v1223_v52 = vld [vmem:[%s1629_s3] ss:$0 sm:$0xff]  ;;  %v904_v63 = vmul.f32 %v1222_v58, %v1538_v14  ;;  %v905_v0 = vmul.f32 %v1222_v58, %v1543_v30  ;;  %v906_v13 = vmul.f32 %v1222_v58, %v1552_v29  ;;  %v907_v1 = vmul.f32 %v1222_v58, %v882_v7 }
 0x140   : > { %v908_v35 = vmul.f32 %v1222_v58, %v883_v10  ;;  %v909_v2 = vmul.f32 %v1222_v58, %v884_v25  ;;  %v910_v3 = vmul.f32 %v1222_v58, %v885_v59  ;;  %v911_v36 = vmul.f32 %v1222_v58, %v886_v62 }
 0x141   : > { %v916_v4 = vadd.f32 %v1223_v52, %v904_v63  ;;  %v917_v5 = vadd.f32 %v1223_v52, %v905_v0  ;;  %v918_v38 = vadd.f32 %v1223_v52, %v906_v13  ;;  %v919_v6 = vadd.f32 %v1223_v52, %v907_v1 }
 0x142   : > { %v920_v33 = vadd.f32 %v1223_v52, %v908_v35  ;;  %v921_v14 = vadd.f32 %v1223_v52, %v909_v2  ;;  %v922_v8 = vadd.f32 %v1223_v52, %v910_v3  ;;  %v923_v11 = vadd.f32 %v1223_v52, %v911_v36 }
 0x143   : > { %v924_v30 = vmax.f32 %v916_v4, 0.0  ;;  %v925_v29 = vmax.f32 %v917_v5, 0.0  ;;  %v926_v7 = vmax.f32 %v918_v38, 0.0  ;;  %v927_v9 = vmax.f32 %v919_v6, 0.0 }
 0x144   : > { %v928_v12 = vmax.f32 %v920_v33, 0.0  ;;  %v929_v18 = vmax.f32 %v921_v14, 0.0  ;;  %v930_v39 = vmax.f32 %v922_v8, 0.0  ;;  %v931_v17 = vmax.f32 %v923_v11, 0.0 }
 0x145   : > { %932 = vst.msk [vmem:[%s1371_s27] sm:$0xff] %vm887_vm3, %v924_v30 }
 0x146   : > { %933 = vst.msk [vmem:[%s1371_s27 + $0x8] sm:$0xff] %vm887_vm3, %v925_v29 }
 0x147   : > { %934 = vst.msk [vmem:[%s1371_s27 + $0x10] sm:$0xff] %vm887_vm3, %v926_v7 }
 0x148   : > { %935 = vst.msk [vmem:[%s1371_s27 + $0x18] sm:$0xff] %vm887_vm3, %v927_v9 }
 0x149   : > { %936 = vst.msk [vmem:[%s1371_s27 + $0x20] sm:$0xff] %vm887_vm3, %v928_v12 }
 0x14a   : > { %937 = vst.msk [vmem:[%s1371_s27 + $0x28] sm:$0xff] %vm887_vm3, %v929_v18 }
 0x14b   : > { %938 = vst.msk [vmem:[%s1371_s27 + $0x30] sm:$0xff] %vm887_vm3, %v930_v39 }
 0x14c   : > { %939 = vst.msk [vmem:[%s1371_s27 + $0x38] sm:$0xff] %vm887_vm3, %v931_v17 }
 0x14d PF: > { %s14_s21 = sadd.s32 1, %s1278_s21   ;;  %s1632_s29 = sld [smem:[#allocation3_spill]] }
 0x14e   : > { %p11_p12 = scmp.ge.s32.totalorder %s14_s21, 26   ;;  %s1633_s15 = smov %s1266_s18 }
 0x14f   : > { %s1634_s16 = smov %s1270_s19  ;;  %s1635_s17 = smov %s1274_s20 }
 0x150   : > { %s1636_s18 = smov %s1640_s22  ;;  %s1637_s19 = smov %s1644_s23 }
 0x151   :  { %13 = sbr.rel (!%p11_p12) target bundleno = 4 (0x4), region = 87 }
 0x153   : > { %s1638_s20 = smov %s1632_s29 }

// kernel: inception_block.7
= control target key start
LH: loop header
LB: loop body
LE: loop exit
PB: predicated region body
PF: predicated region fallthrough
CT: control target
= control target key end

     0   :  { %s824_s15 = smov 0   ;;  %s826_s16 = smov 0   ;;  %s1083_s0 = inlined_call_operand.vmem [shape: f32[2,6,10,10,16], index: 0, kind: input, shape index: {}]   ;;  %s1084_s1 = inlined_call_operand.vmem [shape: bf16[16,8], index: 1, kind: input, shape index: {}]   ;;  %s1085_s2 = inlined_call_operand.vmem [shape: f32[1,8], index: 2, kind: input, shape index: {}]   ;;  %s1086_s3 = inlined_call_operand.vmem [shape: f32[1,8], index: 3, kind: input, shape index: {}]   ;;  %s1087_s4 = inlined_call_operand.vmem [shape: f32[2,4,64,8], index: 4, kind: output, shape index: {}]  }
   0x1   :  { %s828_s17 = smov 0   ;;  %s830_s18 = smov 0  }
   0x2   :  { %s832_s19 = smov 0   ;;  %s834_s20 = smov 0  }
   0x3   :  { %s836_s21 = smov 0  }
   0x4 LB: > { %s26_s22 = sadd.s32 1, %s785_s18  ;;  %s29_s23 = sadd.s32 1, %s789_s19  ;;  %s797_s21 = sphi %s836_s21, %s14_s21   ;;  %s793_s20 = sphi %s834_s20, %s1093_s20   ;;  %s789_s19 = sphi %s832_s19, %s1092_s19   ;;  %s785_s18 = sphi %s830_s18, %s1091_s18   ;;  %s781_s17 = sphi %s828_s17, %s1090_s17   ;;  %s777_s16 = sphi %s826_s16, %s1089_s16   ;;  %s773_s15 = sphi %s824_s15, %s1088_s15  }
   0x5   : > { %p27_p0 = scmp.ge.s32.totalorder %s26_s22, 3  ;;  %p661_p1 = scmp.ge.s32.totalorder %s797_s21, 1 }
   0x6   : > { %p193_p2 = scmp.lt.s32.totalorder %s797_s21, 25  ;;  %s33_s24 = sadd.s32 1, %s793_s20 }
   0x7   : > { %s1095_s22 = smov (%p27_p0, %s26_s22), 0  ;;  %s1097_s23 = smov (!%p27_p0, %s29_s23), %s789_s19 }
   0x8   : > { %p194_p3 = pnand %p661_p1, %p193_p2  ;;  %p31_p4 = scmp.ge.s32.totalorder %s1097_s23, 4 }
   0x9   : > { %s228_s25 = sadd.s32 (!%p194_p3), %s773_s15, %s777_s16  ;;  %p229_p6 = scmp.lt.s32.totalorder (!%p194_p3), %s781_s17, 1 }
   0xa   : > { %s1099_s23 = smov (%p31_p4, %s1097_s23), 0  ;;  %s1101_s24 = smov (!%p31_p4, %s33_s24), %s793_s20 }
   0xb   : > { %p35_p5 = scmp.ge.s32.totalorder %s1101_s24, 2  ;;  %197 = sbr.rel (%p194_p3) target bundleno = 238 (0xee), region = 36 }
   0xc   : > { %p231_p7 = scmp.lt.s32.totalorder (!%p194_p3), %s228_s25, 5  ;;  %p241_p8 = scmp.lt.s32.totalorder (!%p194_p3), %s777_s16, 3 }
   0xd   : > { %s1103_s24 = smov (%p35_p5, %s1101_s24), 0  ;;  %p666_p9 = scmp.ne.s32.totalorder (!%p194_p3), %s773_s15, 0 }
  0x10   : > { %s1105_s17 = smov (!%p229_p6, %s781_s17), 1  ;;  %s1107_s25 = smov (!%p231_p7, %s228_s25), 5  ;;  %vm289_vm0 = vcmask 1046528   ;;  %vm340_vm1 = vcmask 1045504  }
  0x11   : > { %s684_s26 = smul.u32 120, %s1105_s17  ;;  %s664_s28 = sshll.u32 %s1105_s17, 5 }
  0x12   : > { %s683_s27 = smul.u32 20, %s1107_s25  ;;  %s1109_s16 = smov (!%p241_p8, %s777_s16), 3 }
  0x13   : > { %s663_s5 = sshll.u32 %s1109_s16, 3 }
  0x14   : > { %s235_s29 = sadd.s32 %s684_s26, %s683_s27  ;;  %s245_s9 = sadd.s32 %s664_s28, %s663_s5 }
  0x15   : > { %s662_s30 = sshll.u32 %s235_s29, 3  ;;  %s665_s10 = sshll.u32 %s245_s9, 3 }
  0x16   : > { %s877_s8 = scalar_lea.vmem %s1083_s0, %s662_s30  ;;  %s891_s13 = scalar_lea.vmem %s1087_s4, %s665_s10 }
  0x17   : > { %v880_v0 = vld [vmem:[%s877_s8] sm:$0xff]  ;;  %v883_v1 = vld [vmem:[%s877_s8 + $0x8] sm:$0x3]  ;;  %v886_v2 = vld [vmem:[%s877_s8 + $0x10] sm:$0xff] }
  0x18   : > { %v894_v3 = vld [vmem:[%s877_s8 + $0x18] sm:$0x3]  ;;  %v897_v4 = vld [vmem:[%s877_s8 + $0x20] sm:$0xff]  ;;  %v900_v5 = vld [vmem:[%s877_s8 + $0x28] sm:$0x3]  ;;  %v290_v6 = vrot.slane %v880_v0, 1 }
  0x19   : > { %v904_v7 = vld [vmem:[%s877_s8 + $0x30] sm:$0xff]  ;;  %v907_v8 = vld [vmem:[%s877_s8 + $0x38] sm:$0x3]  ;;  %v291_v9 = vrot.slane %v883_v1, 1  ;;  %v293_v10 = vrot.slane %v886_v2, 1  ;;  %v912_v11 = vld [vmem:[%s877_s8 + $0x40] sm:$0xff] }
  0x1a   : > { %v915_v12 = vld [vmem:[%s877_s8 + $0x48] sm:$0x3]  ;;  %v918_v13 = vld [vmem:[%s877_s8 + $0x58] sm:$0x3]  ;;  %v294_v14 = vrot.slane %v894_v3, 1  ;;  %v922_v15 = vld [vmem:[%s877_s8 + $0x50] sm:$0xff] }
  0x1b   : > { %v925_v16 = vld [vmem:[%s877_s8 + $0x60] sm:$0xff]  ;;  %v928_v17 = vld [vmem:[%s877_s8 + $0x68] sm:$0x3]  ;;  %v931_v18 = vsel %vm289_vm0, %v290_v6, %v291_v9  ;;  %v296_v19 = vrot.slane %v897_v4, 1  ;;  %v297_v20 = vrot.slane %v900_v5, 1  ;;  %v936_v21 = vld [vmem:[%s877_s8 + $0x70] sm:$0xff] }
  0x1c   : > { %v939_v22 = vld [vmem:[%s877_s8 + $0x78] sm:$0x3]  ;;  %v942_v23 = vld [vmem:[%s877_s8 + $0x80] sm:$0xff]  ;;  %v945_v24 = vsel %vm289_vm0, %v293_v10, %v294_v14  ;;  %v299_v25 = vrot.slane %v904_v7, 1  ;;  %v330_v26 = vmax.f32 %v880_v0, %v931_v18  ;;  %v951_v27 = vld [vmem:[%s877_s8 + $0x88] sm:$0x3] }
  0x1d   : > { %v954_v28 = vld [vmem:[%s877_s8 + $0x90] sm:$0xff]  ;;  %v957_v29 = vsel %vm289_vm0, %v296_v19, %v297_v20  ;;  %v300_v30 = vrot.slane %v907_v8, 1  ;;  %v302_v31 = vrot.slane %v912_v11, 1  ;;  %v303_v32 = vrot.slane %v915_v12, 1  ;;  %v963_v33 = vld [vmem:[%s877_s8 + $0x98] sm:$0x3] }
  0x1e   : > { %v305_v34 = vrot.slane %v922_v15, 1  ;;  %v306_v35 = vrot.slane %v918_v13, 1  ;;  %v308_v36 = vrot.slane %v925_v16, 1  ;;  %v309_v37 = vrot.slane %v928_v17, 1 }
  0x1f   : > { %v301_v38 = vsel %vm289_vm0, %v299_v25, %v300_v30  ;;  %v304_v39 = vsel %vm289_vm0, %v302_v31, %v303_v32  ;;  %v311_v40 = vrot.slane %v936_v21, 1  ;;  %v312_v41 = vrot.slane %v939_v22, 1 }
  0x20   : > { %v307_v42 = vsel %vm289_vm0, %v305_v34, %v306_v35  ;;  %v310_v43 = vsel %vm289_vm0, %v308_v36, %v309_v37  ;;  %v314_v44 = vrot.slane %v942_v23, 1  ;;  %v315_v45 = vrot.slane %v951_v27, 1 }
  0x21   : > { %v313_v46 = vsel %vm289_vm0, %v311_v40, %v312_v41  ;;  %v317_v47 = vrot.slane %v954_v28, 1  ;;  %v318_v48 = vrot.slane %v963_v33, 1  ;;  %v331_v49 = vmax.f32 %v886_v2, %v945_v24 }
  0x22   : > { %v316_v50 = vsel %vm289_vm0, %v314_v44, %v315_v45  ;;  %v332_v51 = vmax.f32 %v897_v4, %v957_v29  ;;  %v333_v52 = vmax.f32 %v904_v7, %v301_v38  ;;  %v334_v53 = vmax.f32 %v912_v11, %v304_v39 }
  0x23   : > { %v319_v54 = vsel %vm289_vm0, %v317_v47, %v318_v48  ;;  %v335_v55 = vmax.f32 %v922_v15, %v307_v42  ;;  %v336_v56 = vmax.f32 %v925_v16, %v310_v43  ;;  %v337_v57 = vmax.f32 %v936_v21, %v313_v46 }
  0x24   : > { %v338_v58 = vmax.f32 %v942_v23, %v316_v50  ;;  %v339_v59 = vmax.f32 %v954_v28, %v319_v54  ;;  %v341_v60 = vrot.slane %v880_v0, 2  ;;  %v342_v61 = vrot.slane %v883_v1, 2 }
  0x25   : > { %v344_v62 = vrot.slane %v886_v2, 2  ;;  %v345_v63 = vrot.slane %v894_v3, 2  ;;  %v347_v6 = vrot.slane %v897_v4, 2  ;;  %v348_v9 = vrot.slane %v900_v5, 2 }
  0x26   : > { %v343_v10 = vsel %vm340_vm1, %v341_v60, %v342_v61  ;;  %v350_v14 = vrot.slane %v904_v7, 2  ;;  %v351_v19 = vrot.slane %v907_v8, 2  ;;  %v353_v20 = vrot.slane %v912_v11, 2 }
  0x27   : > { %v346_v24 = vsel %vm340_vm1, %v344_v62, %v345_v63  ;;  %v349_v1 = vsel %vm340_vm1, %v347_v6, %v348_v9  ;;  %v354_v2 = vrot.slane %v915_v12, 2  ;;  %v356_v3 = vrot.slane %v922_v15, 2 }
  0x28   : > { %v352_v4 = vsel %vm340_vm1, %v350_v14, %v351_v19  ;;  %v357_v5 = vrot.slane %v918_v13, 2  ;;  %v359_v25 = vrot.slane %v925_v16, 2  ;;  %v360_v7 = vrot.slane %v928_v17, 2 }
  0x29   : > { %v355_v8 = vsel %vm340_vm1, %v353_v20, %v354_v2  ;;  %v362_v11 = vrot.slane %v936_v21, 2  ;;  %v363_v29 = vrot.slane %v939_v22, 2  ;;  %v365_v30 = vrot.slane %v942_v23, 2 }
  0x2a   : > { %v358_v12 = vsel %vm340_vm1, %v356_v3, %v357_v5  ;;  %v361_v15 = vsel %vm340_vm1, %v359_v25, %v360_v7  ;;  %v366_v31 = vrot.slane %v951_v27, 2  ;;  %v368_v13 = vrot.slane %v954_v28, 2 }
  0x2b   : > { %v364_v16 = vsel %vm340_vm1, %v362_v11, %v363_v29  ;;  %v369_v17 = vrot.slane %v963_v33, 2  ;;  %v381_v21 = vmax.f32 %v330_v26, %v343_v10  ;;  %v382_v32 = vmax.f32 %v331_v49, %v346_v24 }
  0x2c   : > { %v367_v22 = vsel %vm340_vm1, %v365_v30, %v366_v31  ;;  %v383_v23 = vmax.f32 %v332_v51, %v349_v1  ;;  %v384_v34 = vmax.f32 %v333_v52, %v352_v4  ;;  %v385_v35 = vmax.f32 %v334_v53, %v355_v8 }
  0x2d   : > { %v370_v36 = vsel %vm340_vm1, %v368_v13, %v369_v17  ;;  %v386_v37 = vmax.f32 %v335_v55, %v358_v12  ;;  %v387_v27 = vmax.f32 %v336_v56, %v361_v15  ;;  %v388_v38 = vmax.f32 %v337_v57, %v364_v16 }
  0x2e   : > { %v389_v28 = vmax.f32 %v338_v58, %v367_v22  ;;  %v390_v39 = vmax.f32 %v339_v59, %v370_v36  ;;  %v391_v40 = vmax.f32 %v381_v21, %v382_v32  ;;  %v392_v41 = vmax.f32 %v382_v32, %v383_v23  ;;  %410 = sbr.rel (%p666_p9) target bundleno = 60 (0x3c), region = 40 }
  0x2f   : > { %v393_v33 = vmax.f32 %v383_v23, %v384_v34  ;;  %v394_v42 = vmax.f32 %v384_v34, %v385_v35  ;;  %v395_v43 = vmax.f32 %v385_v35, %v386_v37  ;;  %v396_v0 = vmax.f32 %v386_v37, %v387_v27 }
  0x30   : > { %v397_v18 = vmax.f32 %v387_v27, %v388_v38  ;;  %v398_v26 = vmax.f32 %v388_v38, %v389_v28  ;;  %v399_v44 = vmax.f32 %v391_v40, %v383_v23  ;;  %v400_v45 = vmax.f32 %v392_v41, %v384_v34 }
  0x31   : > { %v401_v46 = vmax.f32 %v393_v33, %v385_v35  ;;  %v402_v47 = vmax.f32 %v394_v42, %v386_v37  ;;  %v403_v48 = vmax.f32 %v395_v43, %v387_v27  ;;  %v404_v49 = vmax.f32 %v396_v0, %v388_v38 }
  0x32   : > { %v405_v50 = vmax.f32 %v397_v18, %v389_v28  ;;  %v406_v51 = vmax.f32 %v398_v26, %v390_v39 }
  0x33   : > { %vm411_vm2 = vcmask 130048  }
  0x34   : > { %412 = vst.msk [vmem:[#allocation2] sm:$0xff] %vm411_vm2, %v399_v44 }
  0x35   : > { %413 = vst.msk [vmem:[#allocation2 + $0x8] sm:$0xff] %vm411_vm2, %v400_v45 }
  0x36   : > { %414 = vst.msk [vmem:[#allocation2 + $0x10] sm:$0xff] %vm411_vm2, %v401_v46 }
  0x37   : > { %415 = vst.msk [vmem:[#allocation2 + $0x18] sm:$0xff] %vm411_vm2, %v402_v47 }
  0x38   : > { %416 = vst.msk [vmem:[#allocation2 + $0x20] sm:$0xff] %vm411_vm2, %v403_v48 }
  0x39   : > { %417 = vst.msk [vmem:[#allocation2 + $0x28] sm:$0xff] %vm411_vm2, %v404_v49 }
  0x3a   : > { %418 = vst.msk [vmem:[#allocation2 + $0x30] sm:$0xff] %vm411_vm2, %v405_v50 }
  0x3b   : > { %419 = vst.msk [vmem:[#allocation2 + $0x38] sm:$0xff] %vm411_vm2, %v406_v51 }
  0x3c PF: > { %p667_p10 = scmp.eq.s32.totalorder %s773_s15, 0 }
  0x3e   : > { %423 = sbr.rel (%p667_p10) target bundleno = 78 (0x4e), region = 44 }
  0x43   : > { %v424_v52 = vld [vmem:[#allocation2] sm:$0xff]  ;;  %vm440_vm3 = vcmask 130048   ;;  %v425_v53 = vld [vmem:[#allocation2 + $0x8] sm:$0xff]  ;;  %v426_v54 = vld [vmem:[#allocation2 + $0x10] sm:$0xff] }
  0x44   : > { %v432_v55 = vmax.f32 %v424_v52, %v399_v44  ;;  %v433_v56 = vmax.f32 %v425_v53, %v400_v45  ;;  %v434_v57 = vmax.f32 %v426_v54, %v401_v46  ;;  %v427_v58 = vld [vmem:[#allocation2 + $0x18] sm:$0xff]  ;;  %v428_v59 = vld [vmem:[#allocation2 + $0x20] sm:$0xff]  ;;  %v429_v60 = vld [vmem:[#allocation2 + $0x28] sm:$0xff] }
  0x45   : > { %v435_v61 = vmax.f32 %v427_v58, %v402_v47  ;;  %v430_v62 = vld [vmem:[#allocation2 + $0x30] sm:$0xff]  ;;  %v436_v63 = vmax.f32 %v428_v59, %v403_v48  ;;  %v431_v6 = vld [vmem:[#allocation2 + $0x38] sm:$0xff]  ;;  %v437_v9 = vmax.f32 %v429_v60, %v404_v49 }
  0x46   : > { %441 = vst.msk [vmem:[#allocation2] sm:$0xff] %vm440_vm3, %v432_v55  ;;  %v438_v10 = vmax.f32 %v430_v62, %v405_v50  ;;  %v439_v14 = vmax.f32 %v431_v6, %v406_v51 }
  0x47   : > { %442 = vst.msk [vmem:[#allocation2 + $0x8] sm:$0xff] %vm440_vm3, %v433_v56 }
  0x48   : > { %443 = vst.msk [vmem:[#allocation2 + $0x10] sm:$0xff] %vm440_vm3, %v434_v57 }
  0x49   : > { %444 = vst.msk [vmem:[#allocation2 + $0x18] sm:$0xff] %vm440_vm3, %v435_v61 }
  0x4a   : > { %445 = vst.msk [vmem:[#allocation2 + $0x20] sm:$0xff] %vm440_vm3, %v436_v63 }
  0x4b   : > { %446 = vst.msk [vmem:[#allocation2 + $0x28] sm:$0xff] %vm440_vm3, %v437_v9 }
  0x4c   : > { %447 = vst.msk [vmem:[#allocation2 + $0x30] sm:$0xff] %vm440_vm3, %v438_v10 }
  0x4d   : > { %448 = vst.msk [vmem:[#allocation2 + $0x38] sm:$0xff] %vm440_vm3, %v439_v14 }
  0x4e PF: > { %p668_p11 = scmp.ne.s32.totalorder %s773_s15, 2 }
  0x50   : > { %452 = sbr.rel (%p668_p11) target bundleno = 238 (0xee), region = 48 }
  0x55   : > { %v679_v19 = vld [vmem:[%s1084_s1] sm:$0xff]  ;;  %v454_v24 = vld [vmem:[#allocation2 + $0x8] sm:$0xff]  ;;  %v455_v2 = vld [vmem:[#allocation2 + $0x10] sm:$0xff]  ;;  %vm473_vm4 = vcmask 130048   ;;  %vm547_vm5 = vcmask 64512  }
  0x56   : > { %v453_v20 = vld [vmem:[#allocation2] sm:$0xff]  ;;  %v456_v3 = vld [vmem:[#allocation2 + $0x18] sm:$0xff]  ;;  %493 = vmatpush.bf16.msra.mxu0 %v679_v19  ;;  %680 = vmatpush.bf16.msra.mxu1 %v679_v19  ;;  %v458_v25 = vld [vmem:[#allocation2 + $0x28] sm:$0xff] }
  0x57   : > { %v461_v1 = vpack.c.bf16 %v454_v24, %v453_v20  ;;  %v457_v4 = vld [vmem:[#allocation2 + $0x20] sm:$0xff]  ;;  %v462_v5 = vpack.c.bf16 %v456_v3, %v455_v2  ;;  %v459_v7 = vld [vmem:[#allocation2 + $0x30] sm:$0xff]  ;;  %v460_v8 = vld [vmem:[#allocation2 + $0x38] sm:$0xff]  ;;  %681 = vmatpush.bf16.msra.mxu2 %v679_v19  ;;  %682 = vmatpush.bf16.msra.mxu3 %v679_v19 }
  0x58   : > { %v463_v11 = vpack.c.bf16 %v458_v25, %v457_v4  ;;  %v464_v29 = vpack.c.bf16 %v460_v8, %v459_v7  ;;  %v741_v30 = vld [vmem:[%s1085_s2] ss:$0 sm:$0xff] }
  0x59   : > { %673 = vmatmul.msk.bf16.vlgmr.msra.gmra.mxu0 %vm473_vm4, %v461_v1  ;;  %674 = vmatmul.msk.bf16.vlgmr.msra.gmra.mxu1 %vm473_vm4, %v462_v5  ;;  %v742_v12 = vld [vmem:[%s1086_s3] ss:$0 sm:$0xff] }
  0x5a   : > { %675 = vmatmul.msk.bf16.vlgmr.msra.gmra.mxu2 %vm473_vm4, %v463_v11  ;;  %676 = vmatmul.msk.bf16.vlgmr.msra.gmra.mxu3 %vm473_vm4, %v464_v29 }
  0xd6   : > { %v495_v15 = vpop.f32.mrf.mxu0  ;;  %v500_v31 = vpop.f32.mrf.mxu1 }
  0xd7   : > { %v519_v13 = vmul.f32 %v741_v30, %v495_v15  ;;  %v521_v16 = vmul.f32 %v741_v30, %v500_v31 }
  0xd9   : > { %v531_v17 = vadd.f32 %v742_v12, %v519_v13  ;;  %v533_v21 = vadd.f32 %v742_v12, %v521_v16 }
  0xdb   : > { %v539_v32 = vmax.f32 %v531_v17, 0.0  ;;  %v541_v22 = vmax.f32 %v533_v21, 0.0 }
  0xdd   : > { %548 = vst.msk [vmem:[%s891_s13] sm:$0xff] %vm547_vm5, %v539_v32  ;;  %v505_v23 = vpop.f32.mrf.mxu2  ;;  %v510_v34 = vpop.f32.mrf.mxu3 }
  0xde   : > { %550 = vst.msk [vmem:[%s891_s13 + $0x10] sm:$0xff] %vm547_vm5, %v541_v22  ;;  %v523_v35 = vmul.f32 %v741_v30, %v505_v23  ;;  %v525_v36 = vmul.f32 %v741_v30, %v510_v34  ;;  %v497_v37 = vpop.f32.mrf.mxu0  ;;  %v502_v27 = vpop.f32.mrf.mxu1 }
  0xdf   : > { %v520_v38 = vmul.f32 %v741_v30, %v497_v37  ;;  %v522_v28 = vmul.f32 %v741_v30, %v502_v27 }
  0xe0   : > { %v535_v39 = vadd.f32 %v742_v12, %v523_v35  ;;  %v537_v40 = vadd.f32 %v742_v12, %v525_v36 }
  0xe1   : > { %v532_v41 = vadd.f32 %v742_v12, %v520_v38  ;;  %v534_v33 = vadd.f32 %v742_v12, %v522_v28 }
  0xe2   : > { %v543_v42 = vmax.f32 %v535_v39, 0.0  ;;  %v545_v43 = vmax.f32 %v537_v40, 0.0 }
  0xe3   : > { %v540_v0 = vmax.f32 %v532_v41, 0.0  ;;  %v542_v18 = vmax.f32 %v534_v33, 0.0 }
  0xe4   : > { %552 = vst.msk [vmem:[%s891_s13 + $0x20] sm:$0xff] %vm547_vm5, %v543_v42 }
  0xe5   : > { %554 = vst.msk [vmem:[%s891_s13 + $0x30] sm:$0xff] %vm547_vm5, %v545_v43  ;;  %v507_v26 = vpop.f32.mrf.mxu2  ;;  %v512_v44 = vpop.f32.mrf.mxu3 }
  0xe6   : > { %549 = vst.msk [vmem:[%s891_s13 + $0x8] sm:$0xff] %vm547_vm5, %v540_v0  ;;  %v524_v45 = vmul.f32 %v741_v30, %v507_v26  ;;  %v526_v46 = vmul.f32 %v741_v30, %v512_v44 }
  0xe7   : > { %551 = vst.msk [vmem:[%s891_s13 + $0x18] sm:$0xff] %vm547_vm5, %v542_v18 }
  0xe8   : > { %v536_v47 = vadd.f32 %v742_v12, %v524_v45  ;;  %v538_v48 = vadd.f32 %v742_v12, %v526_v46 }
  0xea   : > { %v544_v49 = vmax.f32 %v536_v47, 0.0  ;;  %v546_v50 = vmax.f32 %v538_v48, 0.0 }
  0xec   : > { %553 = vst.msk [vmem:[%s891_s13 + $0x28] sm:$0xff] %vm547_vm5, %v544_v49 }
  0xed   : > { %555 = vst.msk [vmem:[%s891_s13 + $0x38] sm:$0xff] %vm547_vm5, %v546_v50 }
  0xee PF: > { %s14_s21 = sadd.s32 1, %s797_s21   ;;  %s1088_s15 = smov %s785_s18 }
  0xef   : > { %p11_p12 = scmp.ge.s32.totalorder %s14_s21, 26   ;;  %s1089_s16 = smov %s789_s19 }
  0xf0   : > { %s1090_s17 = smov %s793_s20  ;;  %s1091_s18 = smov %s1095_s22 }
  0xf1   : > { %s1092_s19 = smov %s1099_s23  ;;  %s1093_s20 = smov %s1103_s24 }
  0xf2   :  { %13 = sbr.rel (!%p11_p12) target bundleno = 4 (0x4), region = 78 }

</bundles_post_ra>
